<compile_context>
chip_gen: v7x
topology: tpu7x:2x2x1
jax: 0.10.0
libtpu: 0.0.40
codegen_flags: <defaults>
</compile_context>

<pallas_src>
import jax
import jax.numpy as jnp
import numpy as np
from jax import lax
from jax.experimental import pallas as pl
from jax.experimental.pallas import tpu as pltpu

# -------------------- config (dict_args analog) --------------------
NUM_LAYERS = 1
HIDDEN = 32
NUM_CLASSES = 3
EMB = 32
VOCAB = 50          # logical vocabulary
VOCAB_PAD = 64      # embedding table rows (padded for friendly tiling; rows >= VOCAB unused)
BATCH = 2
SEQ = 8


# -------------------- fused Pallas kernel --------------------
def rnn_fused_kernel(ids_ref, lens_ref, emb_ref, wih_ref, whh_ref, bih_ref,
                     bhh_ref, h0_ref, w1_ref, b1_ref, w2_ref, b2_ref, out_ref):
    """Embedding lookup + bidirectional GRU over prem & hyp + MLP classifier, fused.

    ids_ref:  (T*2B, 1)  i32  token ids, time-major; per-t stream order
                              [prem_b0..prem_b{B-1}, hyp_b0..hyp_b{B-1}]
    lens_ref: (2B, 1)    i32  valid lengths, same stream order
    emb_ref:  (Vp, E)    f32  embedding table (rows >= real vocab never selected)
    wih_ref:  (6, E, H)  f32  input->gate weights (transposed), index = dir*3 + gate(r,z,n)
    whh_ref:  (6, H, H)  f32  hidden->gate weights (transposed)
    bih_ref:  (6, 1, H)  f32
    bhh_ref:  (6, 1, H)  f32
    h0_ref:   (2, 2B, H) f32  initial hidden, [dir][stream]
    w1_ref:   (4H, H), b1_ref: (1, H), w2_ref: (H, C), b2_ref: (1, C)
    out_ref:  (B, C)     f32  logits
    """
    B = out_ref.shape[0]
    S = 2 * B                                # streams: prem batch rows then hyp batch rows
    T = ids_ref.shape[0] // S
    V = emb_ref.shape[0]

    # ---- embedding lookup: exact one-hot matmul (table is tiny & VMEM-resident) ----
    ids = ids_ref[...]                                                     # (T*S, 1)
    onehot = (ids == lax.broadcasted_iota(jnp.int32, (T * S, V), 1)).astype(jnp.float32)
    x = jnp.dot(onehot, emb_ref[...], preferred_element_type=jnp.float32)  # (T*S, E)

    # ---- hoisted input projection for ALL timesteps / both directions (off the serial path) ----
    gi = [[jnp.dot(x, wih_ref[3 * d + g], preferred_element_type=jnp.float32)
           + bih_ref[3 * d + g]
           for g in range(3)] for d in range(2)]                           # each (T*S, H)

    lens = lens_ref[...]                                                   # (S, 1) i32
    h = [h0_ref[0], h0_ref[1]]                                             # per-direction (S, H)

    # ---- recurrence: both sequences & both directions advance in one unrolled time loop ----
    for i in range(T):                       # static -> fully unrolled, all slices static
        new_h = []
        for d in range(2):                   # 0 = forward, 1 = backward
            t = i if d == 0 else T - 1 - i
            hd = h[d]
            gh_r = jnp.dot(hd, whh_ref[3 * d + 0], preferred_element_type=jnp.float32) + bhh_ref[3 * d + 0]
            gh_z = jnp.dot(hd, whh_ref[3 * d + 1], preferred_element_type=jnp.float32) + bhh_ref[3 * d + 1]
            gh_n = jnp.dot(hd, whh_ref[3 * d + 2], preferred_element_type=jnp.float32) + bhh_ref[3 * d + 2]
            gi_r = gi[d][0][S * t:S * (t + 1), :]
            gi_z = gi[d][1][S * t:S * (t + 1), :]
            gi_n = gi[d][2][S * t:S * (t + 1), :]
            r = jax.nn.sigmoid(gi_r + gh_r)
            z = jax.nn.sigmoid(gi_z + gh_z)
            n = jnp.tanh(gi_n + r * gh_n)                 # PyTorch GRU: b_hn inside r*(...)
            h_cand = (1.0 - z) * n + z * hd
            mask = lens > t                               # packed-sequence semantics: t < len
            new_h.append(jnp.where(mask, h_cand, hd))
        h = new_h

    h_f, h_b = h
    # lane-dense (B, 4H) feature slab: [prem_fwd | prem_bwd | hyp_fwd | hyp_bwd]
    feat = jnp.concatenate([h_f[0:B, :], h_b[0:B, :], h_f[B:S, :], h_b[B:S, :]], axis=1)

    # ---- classifier: linear1 -> (dropout: identity in eval) -> relu -> linear2 ----
    hid = jnp.dot(feat, w1_ref[...], preferred_element_type=jnp.float32) + b1_ref[...]
    hid = jnp.maximum(hid, 0.0)
    out_ref[...] = jnp.dot(hid, w2_ref[...], preferred_element_type=jnp.float32) + b2_ref[...]


# -------------------- wrapper --------------------
_VMEM = pl.BlockSpec(memory_space=pltpu.MemorySpace.VMEM)


@jax.jit
def rnn_forward(params, prem, prem_len, hyp, hyp_len):
    # Assumes prem and hyp share the same padded length (true for these inputs).
    B, T = prem.shape
    C = params["w2"].shape[-1]

    # time-major flattened token ids; per-t stream order [prem_b0..b{B-1}, hyp_b0..b{B-1}]
    ids = jnp.transpose(jnp.stack([prem, hyp], axis=0), (2, 0, 1)).reshape(T * 2 * B, 1)
    ids = ids.astype(jnp.int32)
    lens = jnp.concatenate([prem_len, hyp_len], axis=0).astype(jnp.int32)[:, None]   # (2B, 1)
    h0 = jnp.concatenate([params["h0_prem"], params["h0_hyp"]], axis=1)              # (2, 2B, H)

    return pl.pallas_call(
        rnn_fused_kernel,
        out_shape=jax.ShapeDtypeStruct((B, C), jnp.float32),
        in_specs=[_VMEM] * 12,
        out_specs=_VMEM,
    )(ids, lens, params["embedding"], params["gru_wih"], params["gru_whh"],
      params["gru_bih"], params["gru_bhh"], h0,
      params["w1"], params["b1"], params["w2"], params["b2"])


# -------------------- pure-JAX reference (for verification) --------------------
def _gru_dir_ref(x_tbe, lens_b1, h0, params, d):
    T = x_tbe.shape[0]
    wih, whh = params["gru_wih"], params["gru_whh"]
    bih, bhh = params["gru_bih"], params["gru_bhh"]
    h = h0
    order = range(T) if d == 0 else range(T - 1, -1, -1)
    for t in order:
        x_t = x_tbe[t]
        gi = [x_t @ wih[3 * d + g] + bih[3 * d + g] for g in range(3)]
        gh = [h @ whh[3 * d + g] + bhh[3 * d + g] for g in range(3)]
        r = jax.nn.sigmoid(gi[0] + gh[0])
        z = jax.nn.sigmoid(gi[1] + gh[1])
        n = jnp.tanh(gi[2] + r * gh[2])
        h_new = (1.0 - z) * n + z * h
        h = jnp.where(t < lens_b1, h_new, h)
    return h


def rnn_forward_ref(params, prem, prem_len, hyp, hyp_len):
    emb = params["embedding"]

    def encode(tokens, lens, h0):
        x = jnp.transpose(emb[tokens], (1, 0, 2))       # (T, B, E)
        lb = lens.astype(jnp.int32)[:, None]
        hf = _gru_dir_ref(x, lb, h0[0], params, 0)
        hb = _gru_dir_ref(x, lb, h0[1], params, 1)
        return jnp.concatenate([hf, hb], axis=1)

    feat = jnp.concatenate([encode(prem, prem_len, params["h0_prem"]),
                            encode(hyp, hyp_len, params["h0_hyp"])], axis=1)
    h = jnp.maximum(feat @ params["w1"] + params["b1"], 0.0)
    return h @ params["w2"] + params["b2"]


# -------------------- main --------------------
if __name__ == "__main__":
    key = jax.random.PRNGKey(0)
    ks = jax.random.split(key, 16)

    scale = 0.1
    params = {
        # embedding table padded to 64 rows; tokens are drawn from [0, VOCAB)
        "embedding": jax.random.normal(ks[0], (VOCAB_PAD, EMB), jnp.float32),
        # layer-0 bidirectional GRU weights, pre-transposed, gate-major: index = dir*3 + (r,z,n)
        "gru_wih": scale * jax.random.normal(ks[1], (6, EMB, HIDDEN), jnp.float32),
        "gru_whh": scale * jax.random.normal(ks[2], (6, HIDDEN, HIDDEN), jnp.float32),
        "gru_bih": scale * jax.random.normal(ks[3], (6, 1, HIDDEN), jnp.float32),
        "gru_bhh": scale * jax.random.normal(ks[4], (6, 1, HIDDEN), jnp.float32),
        # classifier
        "w1": scale * jax.random.normal(ks[5], (4 * HIDDEN, HIDDEN), jnp.float32),
        "b1": scale * jax.random.normal(ks[6], (1, HIDDEN), jnp.float32),
        "w2": scale * jax.random.normal(ks[7], (HIDDEN, NUM_CLASSES), jnp.float32),
        "b2": scale * jax.random.normal(ks[8], (1, NUM_CLASSES), jnp.float32),
        # init_hidden analog (deterministic "randn")
        "h0_prem": jax.random.normal(ks[9], (2, BATCH, HIDDEN), jnp.float32),
        "h0_hyp": jax.random.normal(ks[10], (2, BATCH, HIDDEN), jnp.float32),
    }

    prem = jax.random.randint(ks[11], (BATCH, SEQ), 0, VOCAB, jnp.int32)
    hyp = jax.random.randint(ks[12], (BATCH, SEQ), 0, VOCAB, jnp.int32)
    prem_len = jnp.array([SEQ, 5], dtype=jnp.int32)
    hyp_len = jnp.array([6, SEQ], dtype=jnp.int32)

    logits = rnn_forward(params, prem, prem_len, hyp, hyp_len)
    jax.block_until_ready(logits)

    ref = rnn_forward_ref(params, prem, prem_len, hyp, hyp_len)
    np.testing.assert_allclose(np.asarray(logits), np.asarray(ref), atol=2e-3, rtol=2e-3)

    assert logits.shape == (BATCH, NUM_CLASSES)
    print("KERNEL_OK")
</pallas_src>

<mosaic_0001>
module attributes {stable_mosaic.version = 11 : i64} {
  func.func @rnn_fused_kernel(%arg0: memref<32x1xi32, #tpu.memory_space<vmem>>, %arg1: memref<4x1xi32, #tpu.memory_space<vmem>>, %arg2: memref<64x32xf32, #tpu.memory_space<vmem>>, %arg3: memref<6x32x32xf32, #tpu.memory_space<vmem>>, %arg4: memref<6x32x32xf32, #tpu.memory_space<vmem>>, %arg5: memref<6x1x32xf32, #tpu.memory_space<vmem>>, %arg6: memref<6x1x32xf32, #tpu.memory_space<vmem>>, %arg7: memref<2x4x32xf32, #tpu.memory_space<vmem>>, %arg8: memref<128x32xf32, #tpu.memory_space<vmem>>, %arg9: memref<1x32xf32, #tpu.memory_space<vmem>>, %arg10: memref<32x3xf32, #tpu.memory_space<vmem>>, %arg11: memref<1x3xf32, #tpu.memory_space<vmem>>, %arg12: memref<2x3xf32, #tpu.memory_space<vmem>>) attributes {dimension_semantics = [], scalar_prefetch = 0 : i64, scratch_operands = 0 : i64, tpu.core_type = #tpu.core_type<tc>} {
    %c0 = arith.constant 0 : index
    %c0_0 = arith.constant 0 : index
    %0 = vector.load %arg0[%c0, %c0_0] : memref<32x1xi32, #tpu.memory_space<vmem>>, vector<32x1xi32>
    %1 = tpu.iota {dimensions = array<i32: 1>} : vector<32x64xi32>
    %2 = vector.broadcast %0 : vector<32x1xi32> to vector<32x64xi32>
    %3 = arith.cmpi eq, %2, %1 : vector<32x64xi32>
    %4 = arith.extui %3 : vector<32x64xi1> to vector<32x64xi32>
    %5 = arith.sitofp %4 : vector<32x64xi32> to vector<32x64xf32>
    %c0_1 = arith.constant 0 : index
    %c0_2 = arith.constant 0 : index
    %6 = vector.load %arg2[%c0_1, %c0_2] : memref<64x32xf32, #tpu.memory_space<vmem>>, vector<64x32xf32>
    %cst = arith.constant dense<0.000000e+00> : vector<32x32xf32>
    %7 = tpu.matmul %5, %6, %cst {dimension_numbers = #tpu.dot_dimension_numbers<[1], [0], [0], [1], [0, 0, 1, 1], [], []>} : vector<32x64xf32>, vector<64x32xf32>, vector<32x32xf32> -> vector<32x32xf32>
    %c0_3 = arith.constant 0 : index
    %c0_4 = arith.constant 0 : index
    %c0_5 = arith.constant 0 : index
    %8 = vector.load %arg3[%c0_3, %c0_4, %c0_5] : memref<6x32x32xf32, #tpu.memory_space<vmem>>, vector<1x32x32xf32>
    %9 = vector.shape_cast %8 : vector<1x32x32xf32> to vector<32x32xf32>
    %cst_6 = arith.constant dense<0.000000e+00> : vector<32x32xf32>
    %10 = tpu.matmul %7, %9, %cst_6 {dimension_numbers = #tpu.dot_dimension_numbers<[1], [0], [0], [1], [0, 0, 1, 1], [], []>} : vector<32x32xf32>, vector<32x32xf32>, vector<32x32xf32> -> vector<32x32xf32>
    %c0_7 = arith.constant 0 : index
    %c0_8 = arith.constant 0 : index
    %c0_9 = arith.constant 0 : index
    %11 = vector.load %arg5[%c0_7, %c0_8, %c0_9] : memref<6x1x32xf32, #tpu.memory_space<vmem>>, vector<1x1x32xf32>
    %12 = vector.shape_cast %11 : vector<1x1x32xf32> to vector<1x32xf32>
    %13 = vector.broadcast %12 : vector<1x32xf32> to vector<32x32xf32>
    %14 = arith.addf %10, %13 : vector<32x32xf32>
    %c1 = arith.constant 1 : index
    %c0_10 = arith.constant 0 : index
    %c0_11 = arith.constant 0 : index
    %15 = vector.load %arg3[%c1, %c0_10, %c0_11] : memref<6x32x32xf32, #tpu.memory_space<vmem>>, vector<1x32x32xf32>
    %16 = vector.shape_cast %15 : vector<1x32x32xf32> to vector<32x32xf32>
    %cst_12 = arith.constant dense<0.000000e+00> : vector<32x32xf32>
    %17 = tpu.matmul %7, %16, %cst_12 {dimension_numbers = #tpu.dot_dimension_numbers<[1], [0], [0], [1], [0, 0, 1, 1], [], []>} : vector<32x32xf32>, vector<32x32xf32>, vector<32x32xf32> -> vector<32x32xf32>
    %c1_13 = arith.constant 1 : index
    %c0_14 = arith.constant 0 : index
    %c0_15 = arith.constant 0 : index
    %18 = vector.load %arg5[%c1_13, %c0_14, %c0_15] : memref<6x1x32xf32, #tpu.memory_space<vmem>>, vector<1x1x32xf32>
    %19 = vector.shape_cast %18 : vector<1x1x32xf32> to vector<1x32xf32>
    %20 = vector.broadcast %19 : vector<1x32xf32> to vector<32x32xf32>
    %21 = arith.addf %17, %20 : vector<32x32xf32>
    %c2 = arith.constant 2 : index
    %c0_16 = arith.constant 0 : index
    %c0_17 = arith.constant 0 : index
    %22 = vector.load %arg3[%c2, %c0_16, %c0_17] : memref<6x32x32xf32, #tpu.memory_space<vmem>>, vector<1x32x32xf32>
    %23 = vector.shape_cast %22 : vector<1x32x32xf32> to vector<32x32xf32>
    %cst_18 = arith.constant dense<0.000000e+00> : vector<32x32xf32>
    %24 = tpu.matmul %7, %23, %cst_18 {dimension_numbers = #tpu.dot_dimension_numbers<[1], [0], [0], [1], [0, 0, 1, 1], [], []>} : vector<32x32xf32>, vector<32x32xf32>, vector<32x32xf32> -> vector<32x32xf32>
    %c2_19 = arith.constant 2 : index
    %c0_20 = arith.constant 0 : index
    %c0_21 = arith.constant 0 : index
    %25 = vector.load %arg5[%c2_19, %c0_20, %c0_21] : memref<6x1x32xf32, #tpu.memory_space<vmem>>, vector<1x1x32xf32>
    %26 = vector.shape_cast %25 : vector<1x1x32xf32> to vector<1x32xf32>
    %27 = vector.broadcast %26 : vector<1x32xf32> to vector<32x32xf32>
    %28 = arith.addf %24, %27 : vector<32x32xf32>
    %c3 = arith.constant 3 : index
    %c0_22 = arith.constant 0 : index
    %c0_23 = arith.constant 0 : index
    %29 = vector.load %arg3[%c3, %c0_22, %c0_23] : memref<6x32x32xf32, #tpu.memory_space<vmem>>, vector<1x32x32xf32>
    %30 = vector.shape_cast %29 : vector<1x32x32xf32> to vector<32x32xf32>
    %cst_24 = arith.constant dense<0.000000e+00> : vector<32x32xf32>
    %31 = tpu.matmul %7, %30, %cst_24 {dimension_numbers = #tpu.dot_dimension_numbers<[1], [0], [0], [1], [0, 0, 1, 1], [], []>} : vector<32x32xf32>, vector<32x32xf32>, vector<32x32xf32> -> vector<32x32xf32>
    %c3_25 = arith.constant 3 : index
    %c0_26 = arith.constant 0 : index
    %c0_27 = arith.constant 0 : index
    %32 = vector.load %arg5[%c3_25, %c0_26, %c0_27] : memref<6x1x32xf32, #tpu.memory_space<vmem>>, vector<1x1x32xf32>
    %33 = vector.shape_cast %32 : vector<1x1x32xf32> to vector<1x32xf32>
    %34 = vector.broadcast %33 : vector<1x32xf32> to vector<32x32xf32>
    %35 = arith.addf %31, %34 : vector<32x32xf32>
    %c4 = arith.constant 4 : index
    %c0_28 = arith.constant 0 : index
    %c0_29 = arith.constant 0 : index
    %36 = vector.load %arg3[%c4, %c0_28, %c0_29] : memref<6x32x32xf32, #tpu.memory_space<vmem>>, vector<1x32x32xf32>
    %37 = vector.shape_cast %36 : vector<1x32x32xf32> to vector<32x32xf32>
    %cst_30 = arith.constant dense<0.000000e+00> : vector<32x32xf32>
    %38 = tpu.matmul %7, %37, %cst_30 {dimension_numbers = #tpu.dot_dimension_numbers<[1], [0], [0], [1], [0, 0, 1, 1], [], []>} : vector<32x32xf32>, vector<32x32xf32>, vector<32x32xf32> -> vector<32x32xf32>
    %c4_31 = arith.constant 4 : index
    %c0_32 = arith.constant 0 : index
    %c0_33 = arith.constant 0 : index
    %39 = vector.load %arg5[%c4_31, %c0_32, %c0_33] : memref<6x1x32xf32, #tpu.memory_space<vmem>>, vector<1x1x32xf32>
    %40 = vector.shape_cast %39 : vector<1x1x32xf32> to vector<1x32xf32>
    %41 = vector.broadcast %40 : vector<1x32xf32> to vector<32x32xf32>
    %42 = arith.addf %38, %41 : vector<32x32xf32>
    %c5 = arith.constant 5 : index
    %c0_34 = arith.constant 0 : index
    %c0_35 = arith.constant 0 : index
    %43 = vector.load %arg3[%c5, %c0_34, %c0_35] : memref<6x32x32xf32, #tpu.memory_space<vmem>>, vector<1x32x32xf32>
    %44 = vector.shape_cast %43 : vector<1x32x32xf32> to vector<32x32xf32>
    %cst_36 = arith.constant dense<0.000000e+00> : vector<32x32xf32>
    %45 = tpu.matmul %7, %44, %cst_36 {dimension_numbers = #tpu.dot_dimension_numbers<[1], [0], [0], [1], [0, 0, 1, 1], [], []>} : vector<32x32xf32>, vector<32x32xf32>, vector<32x32xf32> -> vector<32x32xf32>
    %c5_37 = arith.constant 5 : index
    %c0_38 = arith.constant 0 : index
    %c0_39 = arith.constant 0 : index
    %46 = vector.load %arg5[%c5_37, %c0_38, %c0_39] : memref<6x1x32xf32, #tpu.memory_space<vmem>>, vector<1x1x32xf32>
    %47 = vector.shape_cast %46 : vector<1x1x32xf32> to vector<1x32xf32>
    %48 = vector.broadcast %47 : vector<1x32xf32> to vector<32x32xf32>
    %49 = arith.addf %45, %48 : vector<32x32xf32>
    %c0_40 = arith.constant 0 : index
    %c0_41 = arith.constant 0 : index
    %50 = vector.load %arg1[%c0_40, %c0_41] : memref<4x1xi32, #tpu.memory_space<vmem>>, vector<4x1xi32>
    %c0_42 = arith.constant 0 : index
    %c0_43 = arith.constant 0 : index
    %c0_44 = arith.constant 0 : index
    %51 = vector.load %arg7[%c0_42, %c0_43, %c0_44] : memref<2x4x32xf32, #tpu.memory_space<vmem>>, vector<1x4x32xf32>
    %52 = vector.shape_cast %51 : vector<1x4x32xf32> to vector<4x32xf32>
    %c1_45 = arith.constant 1 : index
    %c0_46 = arith.constant 0 : index
    %c0_47 = arith.constant 0 : index
    %53 = vector.load %arg7[%c1_45, %c0_46, %c0_47] : memref<2x4x32xf32, #tpu.memory_space<vmem>>, vector<1x4x32xf32>
    %54 = vector.shape_cast %53 : vector<1x4x32xf32> to vector<4x32xf32>
    %c0_48 = arith.constant 0 : index
    %c0_49 = arith.constant 0 : index
    %c0_50 = arith.constant 0 : index
    %55 = vector.load %arg4[%c0_48, %c0_49, %c0_50] : memref<6x32x32xf32, #tpu.memory_space<vmem>>, vector<1x32x32xf32>
    %56 = vector.shape_cast %55 : vector<1x32x32xf32> to vector<32x32xf32>
    %cst_51 = arith.constant dense<0.000000e+00> : vector<4x32xf32>
    %57 = tpu.matmul %52, %56, %cst_51 {dimension_numbers = #tpu.dot_dimension_numbers<[1], [0], [0], [1], [0, 0, 1, 1], [], []>} : vector<4x32xf32>, vector<32x32xf32>, vector<4x32xf32> -> vector<4x32xf32>
    %c0_52 = arith.constant 0 : index
    %c0_53 = arith.constant 0 : index
    %c0_54 = arith.constant 0 : index
    %58 = vector.load %arg6[%c0_52, %c0_53, %c0_54] : memref<6x1x32xf32, #tpu.memory_space<vmem>>, vector<1x1x32xf32>
    %59 = vector.shape_cast %58 : vector<1x1x32xf32> to vector<1x32xf32>
    %60 = vector.broadcast %59 : vector<1x32xf32> to vector<4x32xf32>
    %61 = arith.addf %57, %60 : vector<4x32xf32>
    %c1_55 = arith.constant 1 : index
    %c0_56 = arith.constant 0 : index
    %c0_57 = arith.constant 0 : index
    %62 = vector.load %arg4[%c1_55, %c0_56, %c0_57] : memref<6x32x32xf32, #tpu.memory_space<vmem>>, vector<1x32x32xf32>
    %63 = vector.shape_cast %62 : vector<1x32x32xf32> to vector<32x32xf32>
    %cst_58 = arith.constant dense<0.000000e+00> : vector<4x32xf32>
    %64 = tpu.matmul %52, %63, %cst_58 {dimension_numbers = #tpu.dot_dimension_numbers<[1], [0], [0], [1], [0, 0, 1, 1], [], []>} : vector<4x32xf32>, vector<32x32xf32>, vector<4x32xf32> -> vector<4x32xf32>
    %c1_59 = arith.constant 1 : index
    %c0_60 = arith.constant 0 : index
    %c0_61 = arith.constant 0 : index
    %65 = vector.load %arg6[%c1_59, %c0_60, %c0_61] : memref<6x1x32xf32, #tpu.memory_space<vmem>>, vector<1x1x32xf32>
    %66 = vector.shape_cast %65 : vector<1x1x32xf32> to vector<1x32xf32>
    %67 = vector.broadcast %66 : vector<1x32xf32> to vector<4x32xf32>
    %68 = arith.addf %64, %67 : vector<4x32xf32>
    %c2_62 = arith.constant 2 : index
    %c0_63 = arith.constant 0 : index
    %c0_64 = arith.constant 0 : index
    %69 = vector.load %arg4[%c2_62, %c0_63, %c0_64] : memref<6x32x32xf32, #tpu.memory_space<vmem>>, vector<1x32x32xf32>
    %70 = vector.shape_cast %69 : vector<1x32x32xf32> to vector<32x32xf32>
    %cst_65 = arith.constant dense<0.000000e+00> : vector<4x32xf32>
    %71 = tpu.matmul %52, %70, %cst_65 {dimension_numbers = #tpu.dot_dimension_numbers<[1], [0], [0], [1], [0, 0, 1, 1], [], []>} : vector<4x32xf32>, vector<32x32xf32>, vector<4x32xf32> -> vector<4x32xf32>
    %c2_66 = arith.constant 2 : index
    %c0_67 = arith.constant 0 : index
    %c0_68 = arith.constant 0 : index
    %72 = vector.load %arg6[%c2_66, %c0_67, %c0_68] : memref<6x1x32xf32, #tpu.memory_space<vmem>>, vector<1x1x32xf32>
    %73 = vector.shape_cast %72 : vector<1x1x32xf32> to vector<1x32xf32>
    %74 = vector.broadcast %73 : vector<1x32xf32> to vector<4x32xf32>
    %75 = arith.addf %71, %74 : vector<4x32xf32>
    %76 = vector.extract_strided_slice %14 {offsets = [0, 0], sizes = [4, 32], strides = [1, 1]} : vector<32x32xf32> to vector<4x32xf32>
    %77 = vector.extract_strided_slice %21 {offsets = [0, 0], sizes = [4, 32], strides = [1, 1]} : vector<32x32xf32> to vector<4x32xf32>
    %78 = vector.extract_strided_slice %28 {offsets = [0, 0], sizes = [4, 32], strides = [1, 1]} : vector<32x32xf32> to vector<4x32xf32>
    %79 = arith.addf %76, %61 : vector<4x32xf32>
    %80 = arith.negf %79 : vector<4x32xf32>
    %81 = math.exp %80 : vector<4x32xf32>
    %cst_69 = arith.constant 1.000000e+00 : f32
    %82 = vector.broadcast %cst_69 : f32 to vector<4x32xf32>
    %83 = arith.addf %82, %81 : vector<4x32xf32>
    %84 = arith.divf %82, %83 : vector<4x32xf32>
    %85 = arith.addf %77, %68 : vector<4x32xf32>
    %86 = arith.negf %85 : vector<4x32xf32>
    %87 = math.exp %86 : vector<4x32xf32>
    %cst_70 = arith.constant 1.000000e+00 : f32
    %88 = vector.broadcast %cst_70 : f32 to vector<4x32xf32>
    %89 = arith.addf %88, %87 : vector<4x32xf32>
    %90 = arith.divf %88, %89 : vector<4x32xf32>
    %91 = arith.mulf %84, %75 : vector<4x32xf32>
    %92 = arith.addf %78, %91 : vector<4x32xf32>
    %93 = math.tanh %92 : vector<4x32xf32>
    %cst_71 = arith.constant 1.000000e+00 : f32
    %94 = vector.broadcast %cst_71 : f32 to vector<4x32xf32>
    %95 = arith.subf %94, %90 : vector<4x32xf32>
    %96 = arith.mulf %95, %93 : vector<4x32xf32>
    %97 = arith.mulf %90, %52 : vector<4x32xf32>
    %98 = arith.addf %96, %97 : vector<4x32xf32>
    %c0_i32 = arith.constant 0 : i32
    %99 = vector.broadcast %c0_i32 : i32 to vector<4x1xi32>
    %100 = arith.cmpi sgt, %50, %99 : vector<4x1xi32>
    %101 = vector.shape_cast %100 : vector<4x1xi1> to vector<4x1xi1>
    %102 = vector.broadcast %101 : vector<4x1xi1> to vector<4x32xi1>
    %103 = arith.select %102, %98, %52 : vector<4x32xi1>, vector<4x32xf32>
    %c3_72 = arith.constant 3 : index
    %c0_73 = arith.constant 0 : index
    %c0_74 = arith.constant 0 : index
    %104 = vector.load %arg4[%c3_72, %c0_73, %c0_74] : memref<6x32x32xf32, #tpu.memory_space<vmem>>, vector<1x32x32xf32>
    %105 = vector.shape_cast %104 : vector<1x32x32xf32> to vector<32x32xf32>
    %cst_75 = arith.constant dense<0.000000e+00> : vector<4x32xf32>
    %106 = tpu.matmul %54, %105, %cst_75 {dimension_numbers = #tpu.dot_dimension_numbers<[1], [0], [0], [1], [0, 0, 1, 1], [], []>} : vector<4x32xf32>, vector<32x32xf32>, vector<4x32xf32> -> vector<4x32xf32>
    %c3_76 = arith.constant 3 : index
    %c0_77 = arith.constant 0 : index
    %c0_78 = arith.constant 0 : index
    %107 = vector.load %arg6[%c3_76, %c0_77, %c0_78] : memref<6x1x32xf32, #tpu.memory_space<vmem>>, vector<1x1x32xf32>
    %108 = vector.shape_cast %107 : vector<1x1x32xf32> to vector<1x32xf32>
    %109 = vector.broadcast %108 : vector<1x32xf32> to vector<4x32xf32>
    %110 = arith.addf %106, %109 : vector<4x32xf32>
    %c4_79 = arith.constant 4 : index
    %c0_80 = arith.constant 0 : index
    %c0_81 = arith.constant 0 : index
    %111 = vector.load %arg4[%c4_79, %c0_80, %c0_81] : memref<6x32x32xf32, #tpu.memory_space<vmem>>, vector<1x32x32xf32>
    %112 = vector.shape_cast %111 : vector<1x32x32xf32> to vector<32x32xf32>
    %cst_82 = arith.constant dense<0.000000e+00> : vector<4x32xf32>
    %113 = tpu.matmul %54, %112, %cst_82 {dimension_numbers = #tpu.dot_dimension_numbers<[1], [0], [0], [1], [0, 0, 1, 1], [], []>} : vector<4x32xf32>, vector<32x32xf32>, vector<4x32xf32> -> vector<4x32xf32>
    %c4_83 = arith.constant 4 : index
    %c0_84 = arith.constant 0 : index
    %c0_85 = arith.constant 0 : index
    %114 = vector.load %arg6[%c4_83, %c0_84, %c0_85] : memref<6x1x32xf32, #tpu.memory_space<vmem>>, vector<1x1x32xf32>
    %115 = vector.shape_cast %114 : vector<1x1x32xf32> to vector<1x32xf32>
    %116 = vector.broadcast %115 : vector<1x32xf32> to vector<4x32xf32>
    %117 = arith.addf %113, %116 : vector<4x32xf32>
    %c5_86 = arith.constant 5 : index
    %c0_87 = arith.constant 0 : index
    %c0_88 = arith.constant 0 : index
    %118 = vector.load %arg4[%c5_86, %c0_87, %c0_88] : memref<6x32x32xf32, #tpu.memory_space<vmem>>, vector<1x32x32xf32>
    %119 = vector.shape_cast %118 : vector<1x32x32xf32> to vector<32x32xf32>
    %cst_89 = arith.constant dense<0.000000e+00> : vector<4x32xf32>
    %120 = tpu.matmul %54, %119, %cst_89 {dimension_numbers = #tpu.dot_dimension_numbers<[1], [0], [0], [1], [0, 0, 1, 1], [], []>} : vector<4x32xf32>, vector<32x32xf32>, vector<4x32xf32> -> vector<4x32xf32>
    %c5_90 = arith.constant 5 : index
    %c0_91 = arith.constant 0 : index
    %c0_92 = arith.constant 0 : index
    %121 = vector.load %arg6[%c5_90, %c0_91, %c0_92] : memref<6x1x32xf32, #tpu.memory_space<vmem>>, vector<1x1x32xf32>
    %122 = vector.shape_cast %121 : vector<1x1x32xf32> to vector<1x32xf32>
    %123 = vector.broadcast %122 : vector<1x32xf32> to vector<4x32xf32>
    %124 = arith.addf %120, %123 : vector<4x32xf32>
    %125 = vector.extract_strided_slice %35 {offsets = [28, 0], sizes = [4, 32], strides = [1, 1]} : vector<32x32xf32> to vector<4x32xf32>
    %126 = vector.extract_strided_slice %42 {offsets = [28, 0], sizes = [4, 32], strides = [1, 1]} : vector<32x32xf32> to vector<4x32xf32>
    %127 = vector.extract_strided_slice %49 {offsets = [28, 0], sizes = [4, 32], strides = [1, 1]} : vector<32x32xf32> to vector<4x32xf32>
    %128 = arith.addf %125, %110 : vector<4x32xf32>
    %129 = arith.negf %128 : vector<4x32xf32>
    %130 = math.exp %129 : vector<4x32xf32>
    %cst_93 = arith.constant 1.000000e+00 : f32
    %131 = vector.broadcast %cst_93 : f32 to vector<4x32xf32>
    %132 = arith.addf %131, %130 : vector<4x32xf32>
    %133 = arith.divf %131, %132 : vector<4x32xf32>
    %134 = arith.addf %126, %117 : vector<4x32xf32>
    %135 = arith.negf %134 : vector<4x32xf32>
    %136 = math.exp %135 : vector<4x32xf32>
    %cst_94 = arith.constant 1.000000e+00 : f32
    %137 = vector.broadcast %cst_94 : f32 to vector<4x32xf32>
    %138 = arith.addf %137, %136 : vector<4x32xf32>
    %139 = arith.divf %137, %138 : vector<4x32xf32>
    %140 = arith.mulf %133, %124 : vector<4x32xf32>
    %141 = arith.addf %127, %140 : vector<4x32xf32>
    %142 = math.tanh %141 : vector<4x32xf32>
    %cst_95 = arith.constant 1.000000e+00 : f32
    %143 = vector.broadcast %cst_95 : f32 to vector<4x32xf32>
    %144 = arith.subf %143, %139 : vector<4x32xf32>
    %145 = arith.mulf %144, %142 : vector<4x32xf32>
    %146 = arith.mulf %139, %54 : vector<4x32xf32>
    %147 = arith.addf %145, %146 : vector<4x32xf32>
    %c7_i32 = arith.constant 7 : i32
    %148 = vector.broadcast %c7_i32 : i32 to vector<4x1xi32>
    %149 = arith.cmpi sgt, %50, %148 : vector<4x1xi32>
    %150 = vector.shape_cast %149 : vector<4x1xi1> to vector<4x1xi1>
    %151 = vector.broadcast %150 : vector<4x1xi1> to vector<4x32xi1>
    %152 = arith.select %151, %147, %54 : vector<4x32xi1>, vector<4x32xf32>
    %c0_96 = arith.constant 0 : index
    %c0_97 = arith.constant 0 : index
    %c0_98 = arith.constant 0 : index
    %153 = vector.load %arg4[%c0_96, %c0_97, %c0_98] : memref<6x32x32xf32, #tpu.memory_space<vmem>>, vector<1x32x32xf32>
    %154 = vector.shape_cast %153 : vector<1x32x32xf32> to vector<32x32xf32>
    %cst_99 = arith.constant dense<0.000000e+00> : vector<4x32xf32>
    %155 = tpu.matmul %103, %154, %cst_99 {dimension_numbers = #tpu.dot_dimension_numbers<[1], [0], [0], [1], [0, 0, 1, 1], [], []>} : vector<4x32xf32>, vector<32x32xf32>, vector<4x32xf32> -> vector<4x32xf32>
    %c0_100 = arith.constant 0 : index
    %c0_101 = arith.constant 0 : index
    %c0_102 = arith.constant 0 : index
    %156 = vector.load %arg6[%c0_100, %c0_101, %c0_102] : memref<6x1x32xf32, #tpu.memory_space<vmem>>, vector<1x1x32xf32>
    %157 = vector.shape_cast %156 : vector<1x1x32xf32> to vector<1x32xf32>
    %158 = vector.broadcast %157 : vector<1x32xf32> to vector<4x32xf32>
    %159 = arith.addf %155, %158 : vector<4x32xf32>
    %c1_103 = arith.constant 1 : index
    %c0_104 = arith.constant 0 : index
    %c0_105 = arith.constant 0 : index
    %160 = vector.load %arg4[%c1_103, %c0_104, %c0_105] : memref<6x32x32xf32, #tpu.memory_space<vmem>>, vector<1x32x32xf32>
    %161 = vector.shape_cast %160 : vector<1x32x32xf32> to vector<32x32xf32>
    %cst_106 = arith.constant dense<0.000000e+00> : vector<4x32xf32>
    %162 = tpu.matmul %103, %161, %cst_106 {dimension_numbers = #tpu.dot_dimension_numbers<[1], [0], [0], [1], [0, 0, 1, 1], [], []>} : vector<4x32xf32>, vector<32x32xf32>, vector<4x32xf32> -> vector<4x32xf32>
    %c1_107 = arith.constant 1 : index
    %c0_108 = arith.constant 0 : index
    %c0_109 = arith.constant 0 : index
    %163 = vector.load %arg6[%c1_107, %c0_108, %c0_109] : memref<6x1x32xf32, #tpu.memory_space<vmem>>, vector<1x1x32xf32>
    %164 = vector.shape_cast %163 : vector<1x1x32xf32> to vector<1x32xf32>
    %165 = vector.broadcast %164 : vector<1x32xf32> to vector<4x32xf32>
    %166 = arith.addf %162, %165 : vector<4x32xf32>
    %c2_110 = arith.constant 2 : index
    %c0_111 = arith.constant 0 : index
    %c0_112 = arith.constant 0 : index
    %167 = vector.load %arg4[%c2_110, %c0_111, %c0_112] : memref<6x32x32xf32, #tpu.memory_space<vmem>>, vector<1x32x32xf32>
    %168 = vector.shape_cast %167 : vector<1x32x32xf32> to vector<32x32xf32>
    %cst_113 = arith.constant dense<0.000000e+00> : vector<4x32xf32>
    %169 = tpu.matmul %103, %168, %cst_113 {dimension_numbers = #tpu.dot_dimension_numbers<[1], [0], [0], [1], [0, 0, 1, 1], [], []>} : vector<4x32xf32>, vector<32x32xf32>, vector<4x32xf32> -> vector<4x32xf32>
    %c2_114 = arith.constant 2 : index
    %c0_115 = arith.constant 0 : index
    %c0_116 = arith.constant 0 : index
    %170 = vector.load %arg6[%c2_114, %c0_115, %c0_116] : memref<6x1x32xf32, #tpu.memory_space<vmem>>, vector<1x1x32xf32>
    %171 = vector.shape_cast %170 : vector<1x1x32xf32> to vector<1x32xf32>
    %172 = vector.broadcast %171 : vector<1x32xf32> to vector<4x32xf32>
    %173 = arith.addf %169, %172 : vector<4x32xf32>
    %174 = vector.extract_strided_slice %14 {offsets = [4, 0], sizes = [4, 32], strides = [1, 1]} : vector<32x32xf32> to vector<4x32xf32>
    %175 = vector.extract_strided_slice %21 {offsets = [4, 0], sizes = [4, 32], strides = [1, 1]} : vector<32x32xf32> to vector<4x32xf32>
    %176 = vector.extract_strided_slice %28 {offsets = [4, 0], sizes = [4, 32], strides = [1, 1]} : vector<32x32xf32> to vector<4x32xf32>
    %177 = arith.addf %174, %159 : vector<4x32xf32>
    %178 = arith.negf %177 : vector<4x32xf32>
    %179 = math.exp %178 : vector<4x32xf32>
    %cst_117 = arith.constant 1.000000e+00 : f32
    %180 = vector.broadcast %cst_117 : f32 to vector<4x32xf32>
    %181 = arith.addf %180, %179 : vector<4x32xf32>
    %182 = arith.divf %180, %181 : vector<4x32xf32>
    %183 = arith.addf %175, %166 : vector<4x32xf32>
    %184 = arith.negf %183 : vector<4x32xf32>
    %185 = math.exp %184 : vector<4x32xf32>
    %cst_118 = arith.constant 1.000000e+00 : f32
    %186 = vector.broadcast %cst_118 : f32 to vector<4x32xf32>
    %187 = arith.addf %186, %185 : vector<4x32xf32>
    %188 = arith.divf %186, %187 : vector<4x32xf32>
    %189 = arith.mulf %182, %173 : vector<4x32xf32>
    %190 = arith.addf %176, %189 : vector<4x32xf32>
    %191 = math.tanh %190 : vector<4x32xf32>
    %cst_119 = arith.constant 1.000000e+00 : f32
    %192 = vector.broadcast %cst_119 : f32 to vector<4x32xf32>
    %193 = arith.subf %192, %188 : vector<4x32xf32>
    %194 = arith.mulf %193, %191 : vector<4x32xf32>
    %195 = arith.mulf %188, %103 : vector<4x32xf32>
    %196 = arith.addf %194, %195 : vector<4x32xf32>
    %c1_i32 = arith.constant 1 : i32
    %197 = vector.broadcast %c1_i32 : i32 to vector<4x1xi32>
    %198 = arith.cmpi sgt, %50, %197 : vector<4x1xi32>
    %199 = vector.shape_cast %198 : vector<4x1xi1> to vector<4x1xi1>
    %200 = vector.broadcast %199 : vector<4x1xi1> to vector<4x32xi1>
    %201 = arith.select %200, %196, %103 : vector<4x32xi1>, vector<4x32xf32>
    %c3_120 = arith.constant 3 : index
    %c0_121 = arith.constant 0 : index
    %c0_122 = arith.constant 0 : index
    %202 = vector.load %arg4[%c3_120, %c0_121, %c0_122] : memref<6x32x32xf32, #tpu.memory_space<vmem>>, vector<1x32x32xf32>
    %203 = vector.shape_cast %202 : vector<1x32x32xf32> to vector<32x32xf32>
    %cst_123 = arith.constant dense<0.000000e+00> : vector<4x32xf32>
    %204 = tpu.matmul %152, %203, %cst_123 {dimension_numbers = #tpu.dot_dimension_numbers<[1], [0], [0], [1], [0, 0, 1, 1], [], []>} : vector<4x32xf32>, vector<32x32xf32>, vector<4x32xf32> -> vector<4x32xf32>
    %c3_124 = arith.constant 3 : index
    %c0_125 = arith.constant 0 : index
    %c0_126 = arith.constant 0 : index
    %205 = vector.load %arg6[%c3_124, %c0_125, %c0_126] : memref<6x1x32xf32, #tpu.memory_space<vmem>>, vector<1x1x32xf32>
    %206 = vector.shape_cast %205 : vector<1x1x32xf32> to vector<1x32xf32>
    %207 = vector.broadcast %206 : vector<1x32xf32> to vector<4x32xf32>
    %208 = arith.addf %204, %207 : vector<4x32xf32>
    %c4_127 = arith.constant 4 : index
    %c0_128 = arith.constant 0 : index
    %c0_129 = arith.constant 0 : index
    %209 = vector.load %arg4[%c4_127, %c0_128, %c0_129] : memref<6x32x32xf32, #tpu.memory_space<vmem>>, vector<1x32x32xf32>
    %210 = vector.shape_cast %209 : vector<1x32x32xf32> to vector<32x32xf32>
    %cst_130 = arith.constant dense<0.000000e+00> : vector<4x32xf32>
    %211 = tpu.matmul %152, %210, %cst_130 {dimension_numbers = #tpu.dot_dimension_numbers<[1], [0], [0], [1], [0, 0, 1, 1], [], []>} : vector<4x32xf32>, vector<32x32xf32>, vector<4x32xf32> -> vector<4x32xf32>
    %c4_131 = arith.constant 4 : index
    %c0_132 = arith.constant 0 : index
    %c0_133 = arith.constant 0 : index
    %212 = vector.load %arg6[%c4_131, %c0_132, %c0_133] : memref<6x1x32xf32, #tpu.memory_space<vmem>>, vector<1x1x32xf32>
    %213 = vector.shape_cast %212 : vector<1x1x32xf32> to vector<1x32xf32>
    %214 = vector.broadcast %213 : vector<1x32xf32> to vector<4x32xf32>
    %215 = arith.addf %211, %214 : vector<4x32xf32>
    %c5_134 = arith.constant 5 : index
    %c0_135 = arith.constant 0 : index
    %c0_136 = arith.constant 0 : index
    %216 = vector.load %arg4[%c5_134, %c0_135, %c0_136] : memref<6x32x32xf32, #tpu.memory_space<vmem>>, vector<1x32x32xf32>
    %217 = vector.shape_cast %216 : vector<1x32x32xf32> to vector<32x32xf32>
    %cst_137 = arith.constant dense<0.000000e+00> : vector<4x32xf32>
    %218 = tpu.matmul %152, %217, %cst_137 {dimension_numbers = #tpu.dot_dimension_numbers<[1], [0], [0], [1], [0, 0, 1, 1], [], []>} : vector<4x32xf32>, vector<32x32xf32>, vector<4x32xf32> -> vector<4x32xf32>
    %c5_138 = arith.constant 5 : index
    %c0_139 = arith.constant 0 : index
    %c0_140 = arith.constant 0 : index
    %219 = vector.load %arg6[%c5_138, %c0_139, %c0_140] : memref<6x1x32xf32, #tpu.memory_space<vmem>>, vector<1x1x32xf32>
    %220 = vector.shape_cast %219 : vector<1x1x32xf32> to vector<1x32xf32>
    %221 = vector.broadcast %220 : vector<1x32xf32> to vector<4x32xf32>
    %222 = arith.addf %218, %221 : vector<4x32xf32>
    %223 = vector.extract_strided_slice %35 {offsets = [24, 0], sizes = [4, 32], strides = [1, 1]} : vector<32x32xf32> to vector<4x32xf32>
    %224 = vector.extract_strided_slice %42 {offsets = [24, 0], sizes = [4, 32], strides = [1, 1]} : vector<32x32xf32> to vector<4x32xf32>
    %225 = vector.extract_strided_slice %49 {offsets = [24, 0], sizes = [4, 32], strides = [1, 1]} : vector<32x32xf32> to vector<4x32xf32>
    %226 = arith.addf %223, %208 : vector<4x32xf32>
    %227 = arith.negf %226 : vector<4x32xf32>
    %228 = math.exp %227 : vector<4x32xf32>
    %cst_141 = arith.constant 1.000000e+00 : f32
    %229 = vector.broadcast %cst_141 : f32 to vector<4x32xf32>
    %230 = arith.addf %229, %228 : vector<4x32xf32>
    %231 = arith.divf %229, %230 : vector<4x32xf32>
    %232 = arith.addf %224, %215 : vector<4x32xf32>
    %233 = arith.negf %232 : vector<4x32xf32>
    %234 = math.exp %233 : vector<4x32xf32>
    %cst_142 = arith.constant 1.000000e+00 : f32
    %235 = vector.broadcast %cst_142 : f32 to vector<4x32xf32>
    %236 = arith.addf %235, %234 : vector<4x32xf32>
    %237 = arith.divf %235, %236 : vector<4x32xf32>
    %238 = arith.mulf %231, %222 : vector<4x32xf32>
    %239 = arith.addf %225, %238 : vector<4x32xf32>
    %240 = math.tanh %239 : vector<4x32xf32>
    %cst_143 = arith.constant 1.000000e+00 : f32
    %241 = vector.broadcast %cst_143 : f32 to vector<4x32xf32>
    %242 = arith.subf %241, %237 : vector<4x32xf32>
    %243 = arith.mulf %242, %240 : vector<4x32xf32>
    %244 = arith.mulf %237, %152 : vector<4x32xf32>
    %245 = arith.addf %243, %244 : vector<4x32xf32>
    %c6_i32 = arith.constant 6 : i32
    %246 = vector.broadcast %c6_i32 : i32 to vector<4x1xi32>
    %247 = arith.cmpi sgt, %50, %246 : vector<4x1xi32>
    %248 = vector.shape_cast %247 : vector<4x1xi1> to vector<4x1xi1>
    %249 = vector.broadcast %248 : vector<4x1xi1> to vector<4x32xi1>
    %250 = arith.select %249, %245, %152 : vector<4x32xi1>, vector<4x32xf32>
    %c0_144 = arith.constant 0 : index
    %c0_145 = arith.constant 0 : index
    %c0_146 = arith.constant 0 : index
    %251 = vector.load %arg4[%c0_144, %c0_145, %c0_146] : memref<6x32x32xf32, #tpu.memory_space<vmem>>, vector<1x32x32xf32>
    %252 = vector.shape_cast %251 : vector<1x32x32xf32> to vector<32x32xf32>
    %cst_147 = arith.constant dense<0.000000e+00> : vector<4x32xf32>
    %253 = tpu.matmul %201, %252, %cst_147 {dimension_numbers = #tpu.dot_dimension_numbers<[1], [0], [0], [1], [0, 0, 1, 1], [], []>} : vector<4x32xf32>, vector<32x32xf32>, vector<4x32xf32> -> vector<4x32xf32>
    %c0_148 = arith.constant 0 : index
    %c0_149 = arith.constant 0 : index
    %c0_150 = arith.constant 0 : index
    %254 = vector.load %arg6[%c0_148, %c0_149, %c0_150] : memref<6x1x32xf32, #tpu.memory_space<vmem>>, vector<1x1x32xf32>
    %255 = vector.shape_cast %254 : vector<1x1x32xf32> to vector<1x32xf32>
    %256 = vector.broadcast %255 : vector<1x32xf32> to vector<4x32xf32>
    %257 = arith.addf %253, %256 : vector<4x32xf32>
    %c1_151 = arith.constant 1 : index
    %c0_152 = arith.constant 0 : index
    %c0_153 = arith.constant 0 : index
    %258 = vector.load %arg4[%c1_151, %c0_152, %c0_153] : memref<6x32x32xf32, #tpu.memory_space<vmem>>, vector<1x32x32xf32>
    %259 = vector.shape_cast %258 : vector<1x32x32xf32> to vector<32x32xf32>
    %cst_154 = arith.constant dense<0.000000e+00> : vector<4x32xf32>
    %260 = tpu.matmul %201, %259, %cst_154 {dimension_numbers = #tpu.dot_dimension_numbers<[1], [0], [0], [1], [0, 0, 1, 1], [], []>} : vector<4x32xf32>, vector<32x32xf32>, vector<4x32xf32> -> vector<4x32xf32>
    %c1_155 = arith.constant 1 : index
    %c0_156 = arith.constant 0 : index
    %c0_157 = arith.constant 0 : index
    %261 = vector.load %arg6[%c1_155, %c0_156, %c0_157] : memref<6x1x32xf32, #tpu.memory_space<vmem>>, vector<1x1x32xf32>
    %262 = vector.shape_cast %261 : vector<1x1x32xf32> to vector<1x32xf32>
    %263 = vector.broadcast %262 : vector<1x32xf32> to vector<4x32xf32>
    %264 = arith.addf %260, %263 : vector<4x32xf32>
    %c2_158 = arith.constant 2 : index
    %c0_159 = arith.constant 0 : index
    %c0_160 = arith.constant 0 : index
    %265 = vector.load %arg4[%c2_158, %c0_159, %c0_160] : memref<6x32x32xf32, #tpu.memory_space<vmem>>, vector<1x32x32xf32>
    %266 = vector.shape_cast %265 : vector<1x32x32xf32> to vector<32x32xf32>
    %cst_161 = arith.constant dense<0.000000e+00> : vector<4x32xf32>
    %267 = tpu.matmul %201, %266, %cst_161 {dimension_numbers = #tpu.dot_dimension_numbers<[1], [0], [0], [1], [0, 0, 1, 1], [], []>} : vector<4x32xf32>, vector<32x32xf32>, vector<4x32xf32> -> vector<4x32xf32>
    %c2_162 = arith.constant 2 : index
    %c0_163 = arith.constant 0 : index
    %c0_164 = arith.constant 0 : index
    %268 = vector.load %arg6[%c2_162, %c0_163, %c0_164] : memref<6x1x32xf32, #tpu.memory_space<vmem>>, vector<1x1x32xf32>
    %269 = vector.shape_cast %268 : vector<1x1x32xf32> to vector<1x32xf32>
    %270 = vector.broadcast %269 : vector<1x32xf32> to vector<4x32xf32>
    %271 = arith.addf %267, %270 : vector<4x32xf32>
    %272 = vector.extract_strided_slice %14 {offsets = [8, 0], sizes = [4, 32], strides = [1, 1]} : vector<32x32xf32> to vector<4x32xf32>
    %273 = vector.extract_strided_slice %21 {offsets = [8, 0], sizes = [4, 32], strides = [1, 1]} : vector<32x32xf32> to vector<4x32xf32>
    %274 = vector.extract_strided_slice %28 {offsets = [8, 0], sizes = [4, 32], strides = [1, 1]} : vector<32x32xf32> to vector<4x32xf32>
    %275 = arith.addf %272, %257 : vector<4x32xf32>
    %276 = arith.negf %275 : vector<4x32xf32>
    %277 = math.exp %276 : vector<4x32xf32>
    %cst_165 = arith.constant 1.000000e+00 : f32
    %278 = vector.broadcast %cst_165 : f32 to vector<4x32xf32>
    %279 = arith.addf %278, %277 : vector<4x32xf32>
    %280 = arith.divf %278, %279 : vector<4x32xf32>
    %281 = arith.addf %273, %264 : vector<4x32xf32>
    %282 = arith.negf %281 : vector<4x32xf32>
    %283 = math.exp %282 : vector<4x32xf32>
    %cst_166 = arith.constant 1.000000e+00 : f32
    %284 = vector.broadcast %cst_166 : f32 to vector<4x32xf32>
    %285 = arith.addf %284, %283 : vector<4x32xf32>
    %286 = arith.divf %284, %285 : vector<4x32xf32>
    %287 = arith.mulf %280, %271 : vector<4x32xf32>
    %288 = arith.addf %274, %287 : vector<4x32xf32>
    %289 = math.tanh %288 : vector<4x32xf32>
    %cst_167 = arith.constant 1.000000e+00 : f32
    %290 = vector.broadcast %cst_167 : f32 to vector<4x32xf32>
    %291 = arith.subf %290, %286 : vector<4x32xf32>
    %292 = arith.mulf %291, %289 : vector<4x32xf32>
    %293 = arith.mulf %286, %201 : vector<4x32xf32>
    %294 = arith.addf %292, %293 : vector<4x32xf32>
    %c2_i32 = arith.constant 2 : i32
    %295 = vector.broadcast %c2_i32 : i32 to vector<4x1xi32>
    %296 = arith.cmpi sgt, %50, %295 : vector<4x1xi32>
    %297 = vector.shape_cast %296 : vector<4x1xi1> to vector<4x1xi1>
    %298 = vector.broadcast %297 : vector<4x1xi1> to vector<4x32xi1>
    %299 = arith.select %298, %294, %201 : vector<4x32xi1>, vector<4x32xf32>
    %c3_168 = arith.constant 3 : index
    %c0_169 = arith.constant 0 : index
    %c0_170 = arith.constant 0 : index
    %300 = vector.load %arg4[%c3_168, %c0_169, %c0_170] : memref<6x32x32xf32, #tpu.memory_space<vmem>>, vector<1x32x32xf32>
    %301 = vector.shape_cast %300 : vector<1x32x32xf32> to vector<32x32xf32>
    %cst_171 = arith.constant dense<0.000000e+00> : vector<4x32xf32>
    %302 = tpu.matmul %250, %301, %cst_171 {dimension_numbers = #tpu.dot_dimension_numbers<[1], [0], [0], [1], [0, 0, 1, 1], [], []>} : vector<4x32xf32>, vector<32x32xf32>, vector<4x32xf32> -> vector<4x32xf32>
    %c3_172 = arith.constant 3 : index
    %c0_173 = arith.constant 0 : index
    %c0_174 = arith.constant 0 : index
    %303 = vector.load %arg6[%c3_172, %c0_173, %c0_174] : memref<6x1x32xf32, #tpu.memory_space<vmem>>, vector<1x1x32xf32>
    %304 = vector.shape_cast %303 : vector<1x1x32xf32> to vector<1x32xf32>
    %305 = vector.broadcast %304 : vector<1x32xf32> to vector<4x32xf32>
    %306 = arith.addf %302, %305 : vector<4x32xf32>
    %c4_175 = arith.constant 4 : index
    %c0_176 = arith.constant 0 : index
    %c0_177 = arith.constant 0 : index
    %307 = vector.load %arg4[%c4_175, %c0_176, %c0_177] : memref<6x32x32xf32, #tpu.memory_space<vmem>>, vector<1x32x32xf32>
    %308 = vector.shape_cast %307 : vector<1x32x32xf32> to vector<32x32xf32>
    %cst_178 = arith.constant dense<0.000000e+00> : vector<4x32xf32>
    %309 = tpu.matmul %250, %308, %cst_178 {dimension_numbers = #tpu.dot_dimension_numbers<[1], [0], [0], [1], [0, 0, 1, 1], [], []>} : vector<4x32xf32>, vector<32x32xf32>, vector<4x32xf32> -> vector<4x32xf32>
    %c4_179 = arith.constant 4 : index
    %c0_180 = arith.constant 0 : index
    %c0_181 = arith.constant 0 : index
    %310 = vector.load %arg6[%c4_179, %c0_180, %c0_181] : memref<6x1x32xf32, #tpu.memory_space<vmem>>, vector<1x1x32xf32>
    %311 = vector.shape_cast %310 : vector<1x1x32xf32> to vector<1x32xf32>
    %312 = vector.broadcast %311 : vector<1x32xf32> to vector<4x32xf32>
    %313 = arith.addf %309, %312 : vector<4x32xf32>
    %c5_182 = arith.constant 5 : index
    %c0_183 = arith.constant 0 : index
    %c0_184 = arith.constant 0 : index
    %314 = vector.load %arg4[%c5_182, %c0_183, %c0_184] : memref<6x32x32xf32, #tpu.memory_space<vmem>>, vector<1x32x32xf32>
    %315 = vector.shape_cast %314 : vector<1x32x32xf32> to vector<32x32xf32>
    %cst_185 = arith.constant dense<0.000000e+00> : vector<4x32xf32>
    %316 = tpu.matmul %250, %315, %cst_185 {dimension_numbers = #tpu.dot_dimension_numbers<[1], [0], [0], [1], [0, 0, 1, 1], [], []>} : vector<4x32xf32>, vector<32x32xf32>, vector<4x32xf32> -> vector<4x32xf32>
    %c5_186 = arith.constant 5 : index
    %c0_187 = arith.constant 0 : index
    %c0_188 = arith.constant 0 : index
    %317 = vector.load %arg6[%c5_186, %c0_187, %c0_188] : memref<6x1x32xf32, #tpu.memory_space<vmem>>, vector<1x1x32xf32>
    %318 = vector.shape_cast %317 : vector<1x1x32xf32> to vector<1x32xf32>
    %319 = vector.broadcast %318 : vector<1x32xf32> to vector<4x32xf32>
    %320 = arith.addf %316, %319 : vector<4x32xf32>
    %321 = vector.extract_strided_slice %35 {offsets = [20, 0], sizes = [4, 32], strides = [1, 1]} : vector<32x32xf32> to vector<4x32xf32>
    %322 = vector.extract_strided_slice %42 {offsets = [20, 0], sizes = [4, 32], strides = [1, 1]} : vector<32x32xf32> to vector<4x32xf32>
    %323 = vector.extract_strided_slice %49 {offsets = [20, 0], sizes = [4, 32], strides = [1, 1]} : vector<32x32xf32> to vector<4x32xf32>
    %324 = arith.addf %321, %306 : vector<4x32xf32>
    %325 = arith.negf %324 : vector<4x32xf32>
    %326 = math.exp %325 : vector<4x32xf32>
    %cst_189 = arith.constant 1.000000e+00 : f32
    %327 = vector.broadcast %cst_189 : f32 to vector<4x32xf32>
    %328 = arith.addf %327, %326 : vector<4x32xf32>
    %329 = arith.divf %327, %328 : vector<4x32xf32>
    %330 = arith.addf %322, %313 : vector<4x32xf32>
    %331 = arith.negf %330 : vector<4x32xf32>
    %332 = math.exp %331 : vector<4x32xf32>
    %cst_190 = arith.constant 1.000000e+00 : f32
    %333 = vector.broadcast %cst_190 : f32 to vector<4x32xf32>
    %334 = arith.addf %333, %332 : vector<4x32xf32>
    %335 = arith.divf %333, %334 : vector<4x32xf32>
    %336 = arith.mulf %329, %320 : vector<4x32xf32>
    %337 = arith.addf %323, %336 : vector<4x32xf32>
    %338 = math.tanh %337 : vector<4x32xf32>
    %cst_191 = arith.constant 1.000000e+00 : f32
    %339 = vector.broadcast %cst_191 : f32 to vector<4x32xf32>
    %340 = arith.subf %339, %335 : vector<4x32xf32>
    %341 = arith.mulf %340, %338 : vector<4x32xf32>
    %342 = arith.mulf %335, %250 : vector<4x32xf32>
    %343 = arith.addf %341, %342 : vector<4x32xf32>
    %c5_i32 = arith.constant 5 : i32
    %344 = vector.broadcast %c5_i32 : i32 to vector<4x1xi32>
    %345 = arith.cmpi sgt, %50, %344 : vector<4x1xi32>
    %346 = vector.shape_cast %345 : vector<4x1xi1> to vector<4x1xi1>
    %347 = vector.broadcast %346 : vector<4x1xi1> to vector<4x32xi1>
    %348 = arith.select %347, %343, %250 : vector<4x32xi1>, vector<4x32xf32>
    %c0_192 = arith.constant 0 : index
    %c0_193 = arith.constant 0 : index
    %c0_194 = arith.constant 0 : index
    %349 = vector.load %arg4[%c0_192, %c0_193, %c0_194] : memref<6x32x32xf32, #tpu.memory_space<vmem>>, vector<1x32x32xf32>
    %350 = vector.shape_cast %349 : vector<1x32x32xf32> to vector<32x32xf32>
    %cst_195 = arith.constant dense<0.000000e+00> : vector<4x32xf32>
    %351 = tpu.matmul %299, %350, %cst_195 {dimension_numbers = #tpu.dot_dimension_numbers<[1], [0], [0], [1], [0, 0, 1, 1], [], []>} : vector<4x32xf32>, vector<32x32xf32>, vector<4x32xf32> -> vector<4x32xf32>
    %c0_196 = arith.constant 0 : index
    %c0_197 = arith.constant 0 : index
    %c0_198 = arith.constant 0 : index
    %352 = vector.load %arg6[%c0_196, %c0_197, %c0_198] : memref<6x1x32xf32, #tpu.memory_space<vmem>>, vector<1x1x32xf32>
    %353 = vector.shape_cast %352 : vector<1x1x32xf32> to vector<1x32xf32>
    %354 = vector.broadcast %353 : vector<1x32xf32> to vector<4x32xf32>
    %355 = arith.addf %351, %354 : vector<4x32xf32>
    %c1_199 = arith.constant 1 : index
    %c0_200 = arith.constant 0 : index
    %c0_201 = arith.constant 0 : index
    %356 = vector.load %arg4[%c1_199, %c0_200, %c0_201] : memref<6x32x32xf32, #tpu.memory_space<vmem>>, vector<1x32x32xf32>
    %357 = vector.shape_cast %356 : vector<1x32x32xf32> to vector<32x32xf32>
    %cst_202 = arith.constant dense<0.000000e+00> : vector<4x32xf32>
    %358 = tpu.matmul %299, %357, %cst_202 {dimension_numbers = #tpu.dot_dimension_numbers<[1], [0], [0], [1], [0, 0, 1, 1], [], []>} : vector<4x32xf32>, vector<32x32xf32>, vector<4x32xf32> -> vector<4x32xf32>
    %c1_203 = arith.constant 1 : index
    %c0_204 = arith.constant 0 : index
    %c0_205 = arith.constant 0 : index
    %359 = vector.load %arg6[%c1_203, %c0_204, %c0_205] : memref<6x1x32xf32, #tpu.memory_space<vmem>>, vector<1x1x32xf32>
    %360 = vector.shape_cast %359 : vector<1x1x32xf32> to vector<1x32xf32>
    %361 = vector.broadcast %360 : vector<1x32xf32> to vector<4x32xf32>
    %362 = arith.addf %358, %361 : vector<4x32xf32>
    %c2_206 = arith.constant 2 : index
    %c0_207 = arith.constant 0 : index
    %c0_208 = arith.constant 0 : index
    %363 = vector.load %arg4[%c2_206, %c0_207, %c0_208] : memref<6x32x32xf32, #tpu.memory_space<vmem>>, vector<1x32x32xf32>
    %364 = vector.shape_cast %363 : vector<1x32x32xf32> to vector<32x32xf32>
    %cst_209 = arith.constant dense<0.000000e+00> : vector<4x32xf32>
    %365 = tpu.matmul %299, %364, %cst_209 {dimension_numbers = #tpu.dot_dimension_numbers<[1], [0], [0], [1], [0, 0, 1, 1], [], []>} : vector<4x32xf32>, vector<32x32xf32>, vector<4x32xf32> -> vector<4x32xf32>
    %c2_210 = arith.constant 2 : index
    %c0_211 = arith.constant 0 : index
    %c0_212 = arith.constant 0 : index
    %366 = vector.load %arg6[%c2_210, %c0_211, %c0_212] : memref<6x1x32xf32, #tpu.memory_space<vmem>>, vector<1x1x32xf32>
    %367 = vector.shape_cast %366 : vector<1x1x32xf32> to vector<1x32xf32>
    %368 = vector.broadcast %367 : vector<1x32xf32> to vector<4x32xf32>
    %369 = arith.addf %365, %368 : vector<4x32xf32>
    %370 = vector.extract_strided_slice %14 {offsets = [12, 0], sizes = [4, 32], strides = [1, 1]} : vector<32x32xf32> to vector<4x32xf32>
    %371 = vector.extract_strided_slice %21 {offsets = [12, 0], sizes = [4, 32], strides = [1, 1]} : vector<32x32xf32> to vector<4x32xf32>
    %372 = vector.extract_strided_slice %28 {offsets = [12, 0], sizes = [4, 32], strides = [1, 1]} : vector<32x32xf32> to vector<4x32xf32>
    %373 = arith.addf %370, %355 : vector<4x32xf32>
    %374 = arith.negf %373 : vector<4x32xf32>
    %375 = math.exp %374 : vector<4x32xf32>
    %cst_213 = arith.constant 1.000000e+00 : f32
    %376 = vector.broadcast %cst_213 : f32 to vector<4x32xf32>
    %377 = arith.addf %376, %375 : vector<4x32xf32>
    %378 = arith.divf %376, %377 : vector<4x32xf32>
    %379 = arith.addf %371, %362 : vector<4x32xf32>
    %380 = arith.negf %379 : vector<4x32xf32>
    %381 = math.exp %380 : vector<4x32xf32>
    %cst_214 = arith.constant 1.000000e+00 : f32
    %382 = vector.broadcast %cst_214 : f32 to vector<4x32xf32>
    %383 = arith.addf %382, %381 : vector<4x32xf32>
    %384 = arith.divf %382, %383 : vector<4x32xf32>
    %385 = arith.mulf %378, %369 : vector<4x32xf32>
    %386 = arith.addf %372, %385 : vector<4x32xf32>
    %387 = math.tanh %386 : vector<4x32xf32>
    %cst_215 = arith.constant 1.000000e+00 : f32
    %388 = vector.broadcast %cst_215 : f32 to vector<4x32xf32>
    %389 = arith.subf %388, %384 : vector<4x32xf32>
    %390 = arith.mulf %389, %387 : vector<4x32xf32>
    %391 = arith.mulf %384, %299 : vector<4x32xf32>
    %392 = arith.addf %390, %391 : vector<4x32xf32>
    %c3_i32 = arith.constant 3 : i32
    %393 = vector.broadcast %c3_i32 : i32 to vector<4x1xi32>
    %394 = arith.cmpi sgt, %50, %393 : vector<4x1xi32>
    %395 = vector.shape_cast %394 : vector<4x1xi1> to vector<4x1xi1>
    %396 = vector.broadcast %395 : vector<4x1xi1> to vector<4x32xi1>
    %397 = arith.select %396, %392, %299 : vector<4x32xi1>, vector<4x32xf32>
    %c3_216 = arith.constant 3 : index
    %c0_217 = arith.constant 0 : index
    %c0_218 = arith.constant 0 : index
    %398 = vector.load %arg4[%c3_216, %c0_217, %c0_218] : memref<6x32x32xf32, #tpu.memory_space<vmem>>, vector<1x32x32xf32>
    %399 = vector.shape_cast %398 : vector<1x32x32xf32> to vector<32x32xf32>
    %cst_219 = arith.constant dense<0.000000e+00> : vector<4x32xf32>
    %400 = tpu.matmul %348, %399, %cst_219 {dimension_numbers = #tpu.dot_dimension_numbers<[1], [0], [0], [1], [0, 0, 1, 1], [], []>} : vector<4x32xf32>, vector<32x32xf32>, vector<4x32xf32> -> vector<4x32xf32>
    %c3_220 = arith.constant 3 : index
    %c0_221 = arith.constant 0 : index
    %c0_222 = arith.constant 0 : index
    %401 = vector.load %arg6[%c3_220, %c0_221, %c0_222] : memref<6x1x32xf32, #tpu.memory_space<vmem>>, vector<1x1x32xf32>
    %402 = vector.shape_cast %401 : vector<1x1x32xf32> to vector<1x32xf32>
    %403 = vector.broadcast %402 : vector<1x32xf32> to vector<4x32xf32>
    %404 = arith.addf %400, %403 : vector<4x32xf32>
    %c4_223 = arith.constant 4 : index
    %c0_224 = arith.constant 0 : index
    %c0_225 = arith.constant 0 : index
    %405 = vector.load %arg4[%c4_223, %c0_224, %c0_225] : memref<6x32x32xf32, #tpu.memory_space<vmem>>, vector<1x32x32xf32>
    %406 = vector.shape_cast %405 : vector<1x32x32xf32> to vector<32x32xf32>
    %cst_226 = arith.constant dense<0.000000e+00> : vector<4x32xf32>
    %407 = tpu.matmul %348, %406, %cst_226 {dimension_numbers = #tpu.dot_dimension_numbers<[1], [0], [0], [1], [0, 0, 1, 1], [], []>} : vector<4x32xf32>, vector<32x32xf32>, vector<4x32xf32> -> vector<4x32xf32>
    %c4_227 = arith.constant 4 : index
    %c0_228 = arith.constant 0 : index
    %c0_229 = arith.constant 0 : index
    %408 = vector.load %arg6[%c4_227, %c0_228, %c0_229] : memref<6x1x32xf32, #tpu.memory_space<vmem>>, vector<1x1x32xf32>
    %409 = vector.shape_cast %408 : vector<1x1x32xf32> to vector<1x32xf32>
    %410 = vector.broadcast %409 : vector<1x32xf32> to vector<4x32xf32>
    %411 = arith.addf %407, %410 : vector<4x32xf32>
    %c5_230 = arith.constant 5 : index
    %c0_231 = arith.constant 0 : index
    %c0_232 = arith.constant 0 : index
    %412 = vector.load %arg4[%c5_230, %c0_231, %c0_232] : memref<6x32x32xf32, #tpu.memory_space<vmem>>, vector<1x32x32xf32>
    %413 = vector.shape_cast %412 : vector<1x32x32xf32> to vector<32x32xf32>
    %cst_233 = arith.constant dense<0.000000e+00> : vector<4x32xf32>
    %414 = tpu.matmul %348, %413, %cst_233 {dimension_numbers = #tpu.dot_dimension_numbers<[1], [0], [0], [1], [0, 0, 1, 1], [], []>} : vector<4x32xf32>, vector<32x32xf32>, vector<4x32xf32> -> vector<4x32xf32>
    %c5_234 = arith.constant 5 : index
    %c0_235 = arith.constant 0 : index
    %c0_236 = arith.constant 0 : index
    %415 = vector.load %arg6[%c5_234, %c0_235, %c0_236] : memref<6x1x32xf32, #tpu.memory_space<vmem>>, vector<1x1x32xf32>
    %416 = vector.shape_cast %415 : vector<1x1x32xf32> to vector<1x32xf32>
    %417 = vector.broadcast %416 : vector<1x32xf32> to vector<4x32xf32>
    %418 = arith.addf %414, %417 : vector<4x32xf32>
    %419 = vector.extract_strided_slice %35 {offsets = [16, 0], sizes = [4, 32], strides = [1, 1]} : vector<32x32xf32> to vector<4x32xf32>
    %420 = vector.extract_strided_slice %42 {offsets = [16, 0], sizes = [4, 32], strides = [1, 1]} : vector<32x32xf32> to vector<4x32xf32>
    %421 = vector.extract_strided_slice %49 {offsets = [16, 0], sizes = [4, 32], strides = [1, 1]} : vector<32x32xf32> to vector<4x32xf32>
    %422 = arith.addf %419, %404 : vector<4x32xf32>
    %423 = arith.negf %422 : vector<4x32xf32>
    %424 = math.exp %423 : vector<4x32xf32>
    %cst_237 = arith.constant 1.000000e+00 : f32
    %425 = vector.broadcast %cst_237 : f32 to vector<4x32xf32>
    %426 = arith.addf %425, %424 : vector<4x32xf32>
    %427 = arith.divf %425, %426 : vector<4x32xf32>
    %428 = arith.addf %420, %411 : vector<4x32xf32>
    %429 = arith.negf %428 : vector<4x32xf32>
    %430 = math.exp %429 : vector<4x32xf32>
    %cst_238 = arith.constant 1.000000e+00 : f32
    %431 = vector.broadcast %cst_238 : f32 to vector<4x32xf32>
    %432 = arith.addf %431, %430 : vector<4x32xf32>
    %433 = arith.divf %431, %432 : vector<4x32xf32>
    %434 = arith.mulf %427, %418 : vector<4x32xf32>
    %435 = arith.addf %421, %434 : vector<4x32xf32>
    %436 = math.tanh %435 : vector<4x32xf32>
    %cst_239 = arith.constant 1.000000e+00 : f32
    %437 = vector.broadcast %cst_239 : f32 to vector<4x32xf32>
    %438 = arith.subf %437, %433 : vector<4x32xf32>
    %439 = arith.mulf %438, %436 : vector<4x32xf32>
    %440 = arith.mulf %433, %348 : vector<4x32xf32>
    %441 = arith.addf %439, %440 : vector<4x32xf32>
    %c4_i32 = arith.constant 4 : i32
    %442 = vector.broadcast %c4_i32 : i32 to vector<4x1xi32>
    %443 = arith.cmpi sgt, %50, %442 : vector<4x1xi32>
    %444 = vector.shape_cast %443 : vector<4x1xi1> to vector<4x1xi1>
    %445 = vector.broadcast %444 : vector<4x1xi1> to vector<4x32xi1>
    %446 = arith.select %445, %441, %348 : vector<4x32xi1>, vector<4x32xf32>
    %c0_240 = arith.constant 0 : index
    %c0_241 = arith.constant 0 : index
    %c0_242 = arith.constant 0 : index
    %447 = vector.load %arg4[%c0_240, %c0_241, %c0_242] : memref<6x32x32xf32, #tpu.memory_space<vmem>>, vector<1x32x32xf32>
    %448 = vector.shape_cast %447 : vector<1x32x32xf32> to vector<32x32xf32>
    %cst_243 = arith.constant dense<0.000000e+00> : vector<4x32xf32>
    %449 = tpu.matmul %397, %448, %cst_243 {dimension_numbers = #tpu.dot_dimension_numbers<[1], [0], [0], [1], [0, 0, 1, 1], [], []>} : vector<4x32xf32>, vector<32x32xf32>, vector<4x32xf32> -> vector<4x32xf32>
    %c0_244 = arith.constant 0 : index
    %c0_245 = arith.constant 0 : index
    %c0_246 = arith.constant 0 : index
    %450 = vector.load %arg6[%c0_244, %c0_245, %c0_246] : memref<6x1x32xf32, #tpu.memory_space<vmem>>, vector<1x1x32xf32>
    %451 = vector.shape_cast %450 : vector<1x1x32xf32> to vector<1x32xf32>
    %452 = vector.broadcast %451 : vector<1x32xf32> to vector<4x32xf32>
    %453 = arith.addf %449, %452 : vector<4x32xf32>
    %c1_247 = arith.constant 1 : index
    %c0_248 = arith.constant 0 : index
    %c0_249 = arith.constant 0 : index
    %454 = vector.load %arg4[%c1_247, %c0_248, %c0_249] : memref<6x32x32xf32, #tpu.memory_space<vmem>>, vector<1x32x32xf32>
    %455 = vector.shape_cast %454 : vector<1x32x32xf32> to vector<32x32xf32>
    %cst_250 = arith.constant dense<0.000000e+00> : vector<4x32xf32>
    %456 = tpu.matmul %397, %455, %cst_250 {dimension_numbers = #tpu.dot_dimension_numbers<[1], [0], [0], [1], [0, 0, 1, 1], [], []>} : vector<4x32xf32>, vector<32x32xf32>, vector<4x32xf32> -> vector<4x32xf32>
    %c1_251 = arith.constant 1 : index
    %c0_252 = arith.constant 0 : index
    %c0_253 = arith.constant 0 : index
    %457 = vector.load %arg6[%c1_251, %c0_252, %c0_253] : memref<6x1x32xf32, #tpu.memory_space<vmem>>, vector<1x1x32xf32>
    %458 = vector.shape_cast %457 : vector<1x1x32xf32> to vector<1x32xf32>
    %459 = vector.broadcast %458 : vector<1x32xf32> to vector<4x32xf32>
    %460 = arith.addf %456, %459 : vector<4x32xf32>
    %c2_254 = arith.constant 2 : index
    %c0_255 = arith.constant 0 : index
    %c0_256 = arith.constant 0 : index
    %461 = vector.load %arg4[%c2_254, %c0_255, %c0_256] : memref<6x32x32xf32, #tpu.memory_space<vmem>>, vector<1x32x32xf32>
    %462 = vector.shape_cast %461 : vector<1x32x32xf32> to vector<32x32xf32>
    %cst_257 = arith.constant dense<0.000000e+00> : vector<4x32xf32>
    %463 = tpu.matmul %397, %462, %cst_257 {dimension_numbers = #tpu.dot_dimension_numbers<[1], [0], [0], [1], [0, 0, 1, 1], [], []>} : vector<4x32xf32>, vector<32x32xf32>, vector<4x32xf32> -> vector<4x32xf32>
    %c2_258 = arith.constant 2 : index
    %c0_259 = arith.constant 0 : index
    %c0_260 = arith.constant 0 : index
    %464 = vector.load %arg6[%c2_258, %c0_259, %c0_260] : memref<6x1x32xf32, #tpu.memory_space<vmem>>, vector<1x1x32xf32>
    %465 = vector.shape_cast %464 : vector<1x1x32xf32> to vector<1x32xf32>
    %466 = vector.broadcast %465 : vector<1x32xf32> to vector<4x32xf32>
    %467 = arith.addf %463, %466 : vector<4x32xf32>
    %468 = vector.extract_strided_slice %14 {offsets = [16, 0], sizes = [4, 32], strides = [1, 1]} : vector<32x32xf32> to vector<4x32xf32>
    %469 = vector.extract_strided_slice %21 {offsets = [16, 0], sizes = [4, 32], strides = [1, 1]} : vector<32x32xf32> to vector<4x32xf32>
    %470 = vector.extract_strided_slice %28 {offsets = [16, 0], sizes = [4, 32], strides = [1, 1]} : vector<32x32xf32> to vector<4x32xf32>
    %471 = arith.addf %468, %453 : vector<4x32xf32>
    %472 = arith.negf %471 : vector<4x32xf32>
    %473 = math.exp %472 : vector<4x32xf32>
    %cst_261 = arith.constant 1.000000e+00 : f32
    %474 = vector.broadcast %cst_261 : f32 to vector<4x32xf32>
    %475 = arith.addf %474, %473 : vector<4x32xf32>
    %476 = arith.divf %474, %475 : vector<4x32xf32>
    %477 = arith.addf %469, %460 : vector<4x32xf32>
    %478 = arith.negf %477 : vector<4x32xf32>
    %479 = math.exp %478 : vector<4x32xf32>
    %cst_262 = arith.constant 1.000000e+00 : f32
    %480 = vector.broadcast %cst_262 : f32 to vector<4x32xf32>
    %481 = arith.addf %480, %479 : vector<4x32xf32>
    %482 = arith.divf %480, %481 : vector<4x32xf32>
    %483 = arith.mulf %476, %467 : vector<4x32xf32>
    %484 = arith.addf %470, %483 : vector<4x32xf32>
    %485 = math.tanh %484 : vector<4x32xf32>
    %cst_263 = arith.constant 1.000000e+00 : f32
    %486 = vector.broadcast %cst_263 : f32 to vector<4x32xf32>
    %487 = arith.subf %486, %482 : vector<4x32xf32>
    %488 = arith.mulf %487, %485 : vector<4x32xf32>
    %489 = arith.mulf %482, %397 : vector<4x32xf32>
    %490 = arith.addf %488, %489 : vector<4x32xf32>
    %c4_i32_264 = arith.constant 4 : i32
    %491 = vector.broadcast %c4_i32_264 : i32 to vector<4x1xi32>
    %492 = arith.cmpi sgt, %50, %491 : vector<4x1xi32>
    %493 = vector.shape_cast %492 : vector<4x1xi1> to vector<4x1xi1>
    %494 = vector.broadcast %493 : vector<4x1xi1> to vector<4x32xi1>
    %495 = arith.select %494, %490, %397 : vector<4x32xi1>, vector<4x32xf32>
    %c3_265 = arith.constant 3 : index
    %c0_266 = arith.constant 0 : index
    %c0_267 = arith.constant 0 : index
    %496 = vector.load %arg4[%c3_265, %c0_266, %c0_267] : memref<6x32x32xf32, #tpu.memory_space<vmem>>, vector<1x32x32xf32>
    %497 = vector.shape_cast %496 : vector<1x32x32xf32> to vector<32x32xf32>
    %cst_268 = arith.constant dense<0.000000e+00> : vector<4x32xf32>
    %498 = tpu.matmul %446, %497, %cst_268 {dimension_numbers = #tpu.dot_dimension_numbers<[1], [0], [0], [1], [0, 0, 1, 1], [], []>} : vector<4x32xf32>, vector<32x32xf32>, vector<4x32xf32> -> vector<4x32xf32>
    %c3_269 = arith.constant 3 : index
    %c0_270 = arith.constant 0 : index
    %c0_271 = arith.constant 0 : index
    %499 = vector.load %arg6[%c3_269, %c0_270, %c0_271] : memref<6x1x32xf32, #tpu.memory_space<vmem>>, vector<1x1x32xf32>
    %500 = vector.shape_cast %499 : vector<1x1x32xf32> to vector<1x32xf32>
    %501 = vector.broadcast %500 : vector<1x32xf32> to vector<4x32xf32>
    %502 = arith.addf %498, %501 : vector<4x32xf32>
    %c4_272 = arith.constant 4 : index
    %c0_273 = arith.constant 0 : index
    %c0_274 = arith.constant 0 : index
    %503 = vector.load %arg4[%c4_272, %c0_273, %c0_274] : memref<6x32x32xf32, #tpu.memory_space<vmem>>, vector<1x32x32xf32>
    %504 = vector.shape_cast %503 : vector<1x32x32xf32> to vector<32x32xf32>
    %cst_275 = arith.constant dense<0.000000e+00> : vector<4x32xf32>
    %505 = tpu.matmul %446, %504, %cst_275 {dimension_numbers = #tpu.dot_dimension_numbers<[1], [0], [0], [1], [0, 0, 1, 1], [], []>} : vector<4x32xf32>, vector<32x32xf32>, vector<4x32xf32> -> vector<4x32xf32>
    %c4_276 = arith.constant 4 : index
    %c0_277 = arith.constant 0 : index
    %c0_278 = arith.constant 0 : index
    %506 = vector.load %arg6[%c4_276, %c0_277, %c0_278] : memref<6x1x32xf32, #tpu.memory_space<vmem>>, vector<1x1x32xf32>
    %507 = vector.shape_cast %506 : vector<1x1x32xf32> to vector<1x32xf32>
    %508 = vector.broadcast %507 : vector<1x32xf32> to vector<4x32xf32>
    %509 = arith.addf %505, %508 : vector<4x32xf32>
    %c5_279 = arith.constant 5 : index
    %c0_280 = arith.constant 0 : index
    %c0_281 = arith.constant 0 : index
    %510 = vector.load %arg4[%c5_279, %c0_280, %c0_281] : memref<6x32x32xf32, #tpu.memory_space<vmem>>, vector<1x32x32xf32>
    %511 = vector.shape_cast %510 : vector<1x32x32xf32> to vector<32x32xf32>
    %cst_282 = arith.constant dense<0.000000e+00> : vector<4x32xf32>
    %512 = tpu.matmul %446, %511, %cst_282 {dimension_numbers = #tpu.dot_dimension_numbers<[1], [0], [0], [1], [0, 0, 1, 1], [], []>} : vector<4x32xf32>, vector<32x32xf32>, vector<4x32xf32> -> vector<4x32xf32>
    %c5_283 = arith.constant 5 : index
    %c0_284 = arith.constant 0 : index
    %c0_285 = arith.constant 0 : index
    %513 = vector.load %arg6[%c5_283, %c0_284, %c0_285] : memref<6x1x32xf32, #tpu.memory_space<vmem>>, vector<1x1x32xf32>
    %514 = vector.shape_cast %513 : vector<1x1x32xf32> to vector<1x32xf32>
    %515 = vector.broadcast %514 : vector<1x32xf32> to vector<4x32xf32>
    %516 = arith.addf %512, %515 : vector<4x32xf32>
    %517 = vector.extract_strided_slice %35 {offsets = [12, 0], sizes = [4, 32], strides = [1, 1]} : vector<32x32xf32> to vector<4x32xf32>
    %518 = vector.extract_strided_slice %42 {offsets = [12, 0], sizes = [4, 32], strides = [1, 1]} : vector<32x32xf32> to vector<4x32xf32>
    %519 = vector.extract_strided_slice %49 {offsets = [12, 0], sizes = [4, 32], strides = [1, 1]} : vector<32x32xf32> to vector<4x32xf32>
    %520 = arith.addf %517, %502 : vector<4x32xf32>
    %521 = arith.negf %520 : vector<4x32xf32>
    %522 = math.exp %521 : vector<4x32xf32>
    %cst_286 = arith.constant 1.000000e+00 : f32
    %523 = vector.broadcast %cst_286 : f32 to vector<4x32xf32>
    %524 = arith.addf %523, %522 : vector<4x32xf32>
    %525 = arith.divf %523, %524 : vector<4x32xf32>
    %526 = arith.addf %518, %509 : vector<4x32xf32>
    %527 = arith.negf %526 : vector<4x32xf32>
    %528 = math.exp %527 : vector<4x32xf32>
    %cst_287 = arith.constant 1.000000e+00 : f32
    %529 = vector.broadcast %cst_287 : f32 to vector<4x32xf32>
    %530 = arith.addf %529, %528 : vector<4x32xf32>
    %531 = arith.divf %529, %530 : vector<4x32xf32>
    %532 = arith.mulf %525, %516 : vector<4x32xf32>
    %533 = arith.addf %519, %532 : vector<4x32xf32>
    %534 = math.tanh %533 : vector<4x32xf32>
    %cst_288 = arith.constant 1.000000e+00 : f32
    %535 = vector.broadcast %cst_288 : f32 to vector<4x32xf32>
    %536 = arith.subf %535, %531 : vector<4x32xf32>
    %537 = arith.mulf %536, %534 : vector<4x32xf32>
    %538 = arith.mulf %531, %446 : vector<4x32xf32>
    %539 = arith.addf %537, %538 : vector<4x32xf32>
    %c3_i32_289 = arith.constant 3 : i32
    %540 = vector.broadcast %c3_i32_289 : i32 to vector<4x1xi32>
    %541 = arith.cmpi sgt, %50, %540 : vector<4x1xi32>
    %542 = vector.shape_cast %541 : vector<4x1xi1> to vector<4x1xi1>
    %543 = vector.broadcast %542 : vector<4x1xi1> to vector<4x32xi1>
    %544 = arith.select %543, %539, %446 : vector<4x32xi1>, vector<4x32xf32>
    %c0_290 = arith.constant 0 : index
    %c0_291 = arith.constant 0 : index
    %c0_292 = arith.constant 0 : index
    %545 = vector.load %arg4[%c0_290, %c0_291, %c0_292] : memref<6x32x32xf32, #tpu.memory_space<vmem>>, vector<1x32x32xf32>
    %546 = vector.shape_cast %545 : vector<1x32x32xf32> to vector<32x32xf32>
    %cst_293 = arith.constant dense<0.000000e+00> : vector<4x32xf32>
    %547 = tpu.matmul %495, %546, %cst_293 {dimension_numbers = #tpu.dot_dimension_numbers<[1], [0], [0], [1], [0, 0, 1, 1], [], []>} : vector<4x32xf32>, vector<32x32xf32>, vector<4x32xf32> -> vector<4x32xf32>
    %c0_294 = arith.constant 0 : index
    %c0_295 = arith.constant 0 : index
    %c0_296 = arith.constant 0 : index
    %548 = vector.load %arg6[%c0_294, %c0_295, %c0_296] : memref<6x1x32xf32, #tpu.memory_space<vmem>>, vector<1x1x32xf32>
    %549 = vector.shape_cast %548 : vector<1x1x32xf32> to vector<1x32xf32>
    %550 = vector.broadcast %549 : vector<1x32xf32> to vector<4x32xf32>
    %551 = arith.addf %547, %550 : vector<4x32xf32>
    %c1_297 = arith.constant 1 : index
    %c0_298 = arith.constant 0 : index
    %c0_299 = arith.constant 0 : index
    %552 = vector.load %arg4[%c1_297, %c0_298, %c0_299] : memref<6x32x32xf32, #tpu.memory_space<vmem>>, vector<1x32x32xf32>
    %553 = vector.shape_cast %552 : vector<1x32x32xf32> to vector<32x32xf32>
    %cst_300 = arith.constant dense<0.000000e+00> : vector<4x32xf32>
    %554 = tpu.matmul %495, %553, %cst_300 {dimension_numbers = #tpu.dot_dimension_numbers<[1], [0], [0], [1], [0, 0, 1, 1], [], []>} : vector<4x32xf32>, vector<32x32xf32>, vector<4x32xf32> -> vector<4x32xf32>
    %c1_301 = arith.constant 1 : index
    %c0_302 = arith.constant 0 : index
    %c0_303 = arith.constant 0 : index
    %555 = vector.load %arg6[%c1_301, %c0_302, %c0_303] : memref<6x1x32xf32, #tpu.memory_space<vmem>>, vector<1x1x32xf32>
    %556 = vector.shape_cast %555 : vector<1x1x32xf32> to vector<1x32xf32>
    %557 = vector.broadcast %556 : vector<1x32xf32> to vector<4x32xf32>
    %558 = arith.addf %554, %557 : vector<4x32xf32>
    %c2_304 = arith.constant 2 : index
    %c0_305 = arith.constant 0 : index
    %c0_306 = arith.constant 0 : index
    %559 = vector.load %arg4[%c2_304, %c0_305, %c0_306] : memref<6x32x32xf32, #tpu.memory_space<vmem>>, vector<1x32x32xf32>
    %560 = vector.shape_cast %559 : vector<1x32x32xf32> to vector<32x32xf32>
    %cst_307 = arith.constant dense<0.000000e+00> : vector<4x32xf32>
    %561 = tpu.matmul %495, %560, %cst_307 {dimension_numbers = #tpu.dot_dimension_numbers<[1], [0], [0], [1], [0, 0, 1, 1], [], []>} : vector<4x32xf32>, vector<32x32xf32>, vector<4x32xf32> -> vector<4x32xf32>
    %c2_308 = arith.constant 2 : index
    %c0_309 = arith.constant 0 : index
    %c0_310 = arith.constant 0 : index
    %562 = vector.load %arg6[%c2_308, %c0_309, %c0_310] : memref<6x1x32xf32, #tpu.memory_space<vmem>>, vector<1x1x32xf32>
    %563 = vector.shape_cast %562 : vector<1x1x32xf32> to vector<1x32xf32>
    %564 = vector.broadcast %563 : vector<1x32xf32> to vector<4x32xf32>
    %565 = arith.addf %561, %564 : vector<4x32xf32>
    %566 = vector.extract_strided_slice %14 {offsets = [20, 0], sizes = [4, 32], strides = [1, 1]} : vector<32x32xf32> to vector<4x32xf32>
    %567 = vector.extract_strided_slice %21 {offsets = [20, 0], sizes = [4, 32], strides = [1, 1]} : vector<32x32xf32> to vector<4x32xf32>
    %568 = vector.extract_strided_slice %28 {offsets = [20, 0], sizes = [4, 32], strides = [1, 1]} : vector<32x32xf32> to vector<4x32xf32>
    %569 = arith.addf %566, %551 : vector<4x32xf32>
    %570 = arith.negf %569 : vector<4x32xf32>
    %571 = math.exp %570 : vector<4x32xf32>
    %cst_311 = arith.constant 1.000000e+00 : f32
    %572 = vector.broadcast %cst_311 : f32 to vector<4x32xf32>
    %573 = arith.addf %572, %571 : vector<4x32xf32>
    %574 = arith.divf %572, %573 : vector<4x32xf32>
    %575 = arith.addf %567, %558 : vector<4x32xf32>
    %576 = arith.negf %575 : vector<4x32xf32>
    %577 = math.exp %576 : vector<4x32xf32>
    %cst_312 = arith.constant 1.000000e+00 : f32
    %578 = vector.broadcast %cst_312 : f32 to vector<4x32xf32>
    %579 = arith.addf %578, %577 : vector<4x32xf32>
    %580 = arith.divf %578, %579 : vector<4x32xf32>
    %581 = arith.mulf %574, %565 : vector<4x32xf32>
    %582 = arith.addf %568, %581 : vector<4x32xf32>
    %583 = math.tanh %582 : vector<4x32xf32>
    %cst_313 = arith.constant 1.000000e+00 : f32
    %584 = vector.broadcast %cst_313 : f32 to vector<4x32xf32>
    %585 = arith.subf %584, %580 : vector<4x32xf32>
    %586 = arith.mulf %585, %583 : vector<4x32xf32>
    %587 = arith.mulf %580, %495 : vector<4x32xf32>
    %588 = arith.addf %586, %587 : vector<4x32xf32>
    %c5_i32_314 = arith.constant 5 : i32
    %589 = vector.broadcast %c5_i32_314 : i32 to vector<4x1xi32>
    %590 = arith.cmpi sgt, %50, %589 : vector<4x1xi32>
    %591 = vector.shape_cast %590 : vector<4x1xi1> to vector<4x1xi1>
    %592 = vector.broadcast %591 : vector<4x1xi1> to vector<4x32xi1>
    %593 = arith.select %592, %588, %495 : vector<4x32xi1>, vector<4x32xf32>
    %c3_315 = arith.constant 3 : index
    %c0_316 = arith.constant 0 : index
    %c0_317 = arith.constant 0 : index
    %594 = vector.load %arg4[%c3_315, %c0_316, %c0_317] : memref<6x32x32xf32, #tpu.memory_space<vmem>>, vector<1x32x32xf32>
    %595 = vector.shape_cast %594 : vector<1x32x32xf32> to vector<32x32xf32>
    %cst_318 = arith.constant dense<0.000000e+00> : vector<4x32xf32>
    %596 = tpu.matmul %544, %595, %cst_318 {dimension_numbers = #tpu.dot_dimension_numbers<[1], [0], [0], [1], [0, 0, 1, 1], [], []>} : vector<4x32xf32>, vector<32x32xf32>, vector<4x32xf32> -> vector<4x32xf32>
    %c3_319 = arith.constant 3 : index
    %c0_320 = arith.constant 0 : index
    %c0_321 = arith.constant 0 : index
    %597 = vector.load %arg6[%c3_319, %c0_320, %c0_321] : memref<6x1x32xf32, #tpu.memory_space<vmem>>, vector<1x1x32xf32>
    %598 = vector.shape_cast %597 : vector<1x1x32xf32> to vector<1x32xf32>
    %599 = vector.broadcast %598 : vector<1x32xf32> to vector<4x32xf32>
    %600 = arith.addf %596, %599 : vector<4x32xf32>
    %c4_322 = arith.constant 4 : index
    %c0_323 = arith.constant 0 : index
    %c0_324 = arith.constant 0 : index
    %601 = vector.load %arg4[%c4_322, %c0_323, %c0_324] : memref<6x32x32xf32, #tpu.memory_space<vmem>>, vector<1x32x32xf32>
    %602 = vector.shape_cast %601 : vector<1x32x32xf32> to vector<32x32xf32>
    %cst_325 = arith.constant dense<0.000000e+00> : vector<4x32xf32>
    %603 = tpu.matmul %544, %602, %cst_325 {dimension_numbers = #tpu.dot_dimension_numbers<[1], [0], [0], [1], [0, 0, 1, 1], [], []>} : vector<4x32xf32>, vector<32x32xf32>, vector<4x32xf32> -> vector<4x32xf32>
    %c4_326 = arith.constant 4 : index
    %c0_327 = arith.constant 0 : index
    %c0_328 = arith.constant 0 : index
    %604 = vector.load %arg6[%c4_326, %c0_327, %c0_328] : memref<6x1x32xf32, #tpu.memory_space<vmem>>, vector<1x1x32xf32>
    %605 = vector.shape_cast %604 : vector<1x1x32xf32> to vector<1x32xf32>
    %606 = vector.broadcast %605 : vector<1x32xf32> to vector<4x32xf32>
    %607 = arith.addf %603, %606 : vector<4x32xf32>
    %c5_329 = arith.constant 5 : index
    %c0_330 = arith.constant 0 : index
    %c0_331 = arith.constant 0 : index
    %608 = vector.load %arg4[%c5_329, %c0_330, %c0_331] : memref<6x32x32xf32, #tpu.memory_space<vmem>>, vector<1x32x32xf32>
    %609 = vector.shape_cast %608 : vector<1x32x32xf32> to vector<32x32xf32>
    %cst_332 = arith.constant dense<0.000000e+00> : vector<4x32xf32>
    %610 = tpu.matmul %544, %609, %cst_332 {dimension_numbers = #tpu.dot_dimension_numbers<[1], [0], [0], [1], [0, 0, 1, 1], [], []>} : vector<4x32xf32>, vector<32x32xf32>, vector<4x32xf32> -> vector<4x32xf32>
    %c5_333 = arith.constant 5 : index
    %c0_334 = arith.constant 0 : index
    %c0_335 = arith.constant 0 : index
    %611 = vector.load %arg6[%c5_333, %c0_334, %c0_335] : memref<6x1x32xf32, #tpu.memory_space<vmem>>, vector<1x1x32xf32>
    %612 = vector.shape_cast %611 : vector<1x1x32xf32> to vector<1x32xf32>
    %613 = vector.broadcast %612 : vector<1x32xf32> to vector<4x32xf32>
    %614 = arith.addf %610, %613 : vector<4x32xf32>
    %615 = vector.extract_strided_slice %35 {offsets = [8, 0], sizes = [4, 32], strides = [1, 1]} : vector<32x32xf32> to vector<4x32xf32>
    %616 = vector.extract_strided_slice %42 {offsets = [8, 0], sizes = [4, 32], strides = [1, 1]} : vector<32x32xf32> to vector<4x32xf32>
    %617 = vector.extract_strided_slice %49 {offsets = [8, 0], sizes = [4, 32], strides = [1, 1]} : vector<32x32xf32> to vector<4x32xf32>
    %618 = arith.addf %615, %600 : vector<4x32xf32>
    %619 = arith.negf %618 : vector<4x32xf32>
    %620 = math.exp %619 : vector<4x32xf32>
    %cst_336 = arith.constant 1.000000e+00 : f32
    %621 = vector.broadcast %cst_336 : f32 to vector<4x32xf32>
    %622 = arith.addf %621, %620 : vector<4x32xf32>
    %623 = arith.divf %621, %622 : vector<4x32xf32>
    %624 = arith.addf %616, %607 : vector<4x32xf32>
    %625 = arith.negf %624 : vector<4x32xf32>
    %626 = math.exp %625 : vector<4x32xf32>
    %cst_337 = arith.constant 1.000000e+00 : f32
    %627 = vector.broadcast %cst_337 : f32 to vector<4x32xf32>
    %628 = arith.addf %627, %626 : vector<4x32xf32>
    %629 = arith.divf %627, %628 : vector<4x32xf32>
    %630 = arith.mulf %623, %614 : vector<4x32xf32>
    %631 = arith.addf %617, %630 : vector<4x32xf32>
    %632 = math.tanh %631 : vector<4x32xf32>
    %cst_338 = arith.constant 1.000000e+00 : f32
    %633 = vector.broadcast %cst_338 : f32 to vector<4x32xf32>
    %634 = arith.subf %633, %629 : vector<4x32xf32>
    %635 = arith.mulf %634, %632 : vector<4x32xf32>
    %636 = arith.mulf %629, %544 : vector<4x32xf32>
    %637 = arith.addf %635, %636 : vector<4x32xf32>
    %c2_i32_339 = arith.constant 2 : i32
    %638 = vector.broadcast %c2_i32_339 : i32 to vector<4x1xi32>
    %639 = arith.cmpi sgt, %50, %638 : vector<4x1xi32>
    %640 = vector.shape_cast %639 : vector<4x1xi1> to vector<4x1xi1>
    %641 = vector.broadcast %640 : vector<4x1xi1> to vector<4x32xi1>
    %642 = arith.select %641, %637, %544 : vector<4x32xi1>, vector<4x32xf32>
    %c0_340 = arith.constant 0 : index
    %c0_341 = arith.constant 0 : index
    %c0_342 = arith.constant 0 : index
    %643 = vector.load %arg4[%c0_340, %c0_341, %c0_342] : memref<6x32x32xf32, #tpu.memory_space<vmem>>, vector<1x32x32xf32>
    %644 = vector.shape_cast %643 : vector<1x32x32xf32> to vector<32x32xf32>
    %cst_343 = arith.constant dense<0.000000e+00> : vector<4x32xf32>
    %645 = tpu.matmul %593, %644, %cst_343 {dimension_numbers = #tpu.dot_dimension_numbers<[1], [0], [0], [1], [0, 0, 1, 1], [], []>} : vector<4x32xf32>, vector<32x32xf32>, vector<4x32xf32> -> vector<4x32xf32>
    %c0_344 = arith.constant 0 : index
    %c0_345 = arith.constant 0 : index
    %c0_346 = arith.constant 0 : index
    %646 = vector.load %arg6[%c0_344, %c0_345, %c0_346] : memref<6x1x32xf32, #tpu.memory_space<vmem>>, vector<1x1x32xf32>
    %647 = vector.shape_cast %646 : vector<1x1x32xf32> to vector<1x32xf32>
    %648 = vector.broadcast %647 : vector<1x32xf32> to vector<4x32xf32>
    %649 = arith.addf %645, %648 : vector<4x32xf32>
    %c1_347 = arith.constant 1 : index
    %c0_348 = arith.constant 0 : index
    %c0_349 = arith.constant 0 : index
    %650 = vector.load %arg4[%c1_347, %c0_348, %c0_349] : memref<6x32x32xf32, #tpu.memory_space<vmem>>, vector<1x32x32xf32>
    %651 = vector.shape_cast %650 : vector<1x32x32xf32> to vector<32x32xf32>
    %cst_350 = arith.constant dense<0.000000e+00> : vector<4x32xf32>
    %652 = tpu.matmul %593, %651, %cst_350 {dimension_numbers = #tpu.dot_dimension_numbers<[1], [0], [0], [1], [0, 0, 1, 1], [], []>} : vector<4x32xf32>, vector<32x32xf32>, vector<4x32xf32> -> vector<4x32xf32>
    %c1_351 = arith.constant 1 : index
    %c0_352 = arith.constant 0 : index
    %c0_353 = arith.constant 0 : index
    %653 = vector.load %arg6[%c1_351, %c0_352, %c0_353] : memref<6x1x32xf32, #tpu.memory_space<vmem>>, vector<1x1x32xf32>
    %654 = vector.shape_cast %653 : vector<1x1x32xf32> to vector<1x32xf32>
    %655 = vector.broadcast %654 : vector<1x32xf32> to vector<4x32xf32>
    %656 = arith.addf %652, %655 : vector<4x32xf32>
    %c2_354 = arith.constant 2 : index
    %c0_355 = arith.constant 0 : index
    %c0_356 = arith.constant 0 : index
    %657 = vector.load %arg4[%c2_354, %c0_355, %c0_356] : memref<6x32x32xf32, #tpu.memory_space<vmem>>, vector<1x32x32xf32>
    %658 = vector.shape_cast %657 : vector<1x32x32xf32> to vector<32x32xf32>
    %cst_357 = arith.constant dense<0.000000e+00> : vector<4x32xf32>
    %659 = tpu.matmul %593, %658, %cst_357 {dimension_numbers = #tpu.dot_dimension_numbers<[1], [0], [0], [1], [0, 0, 1, 1], [], []>} : vector<4x32xf32>, vector<32x32xf32>, vector<4x32xf32> -> vector<4x32xf32>
    %c2_358 = arith.constant 2 : index
    %c0_359 = arith.constant 0 : index
    %c0_360 = arith.constant 0 : index
    %660 = vector.load %arg6[%c2_358, %c0_359, %c0_360] : memref<6x1x32xf32, #tpu.memory_space<vmem>>, vector<1x1x32xf32>
    %661 = vector.shape_cast %660 : vector<1x1x32xf32> to vector<1x32xf32>
    %662 = vector.broadcast %661 : vector<1x32xf32> to vector<4x32xf32>
    %663 = arith.addf %659, %662 : vector<4x32xf32>
    %664 = vector.extract_strided_slice %14 {offsets = [24, 0], sizes = [4, 32], strides = [1, 1]} : vector<32x32xf32> to vector<4x32xf32>
    %665 = vector.extract_strided_slice %21 {offsets = [24, 0], sizes = [4, 32], strides = [1, 1]} : vector<32x32xf32> to vector<4x32xf32>
    %666 = vector.extract_strided_slice %28 {offsets = [24, 0], sizes = [4, 32], strides = [1, 1]} : vector<32x32xf32> to vector<4x32xf32>
    %667 = arith.addf %664, %649 : vector<4x32xf32>
    %668 = arith.negf %667 : vector<4x32xf32>
    %669 = math.exp %668 : vector<4x32xf32>
    %cst_361 = arith.constant 1.000000e+00 : f32
    %670 = vector.broadcast %cst_361 : f32 to vector<4x32xf32>
    %671 = arith.addf %670, %669 : vector<4x32xf32>
    %672 = arith.divf %670, %671 : vector<4x32xf32>
    %673 = arith.addf %665, %656 : vector<4x32xf32>
    %674 = arith.negf %673 : vector<4x32xf32>
    %675 = math.exp %674 : vector<4x32xf32>
    %cst_362 = arith.constant 1.000000e+00 : f32
    %676 = vector.broadcast %cst_362 : f32 to vector<4x32xf32>
    %677 = arith.addf %676, %675 : vector<4x32xf32>
    %678 = arith.divf %676, %677 : vector<4x32xf32>
    %679 = arith.mulf %672, %663 : vector<4x32xf32>
    %680 = arith.addf %666, %679 : vector<4x32xf32>
    %681 = math.tanh %680 : vector<4x32xf32>
    %cst_363 = arith.constant 1.000000e+00 : f32
    %682 = vector.broadcast %cst_363 : f32 to vector<4x32xf32>
    %683 = arith.subf %682, %678 : vector<4x32xf32>
    %684 = arith.mulf %683, %681 : vector<4x32xf32>
    %685 = arith.mulf %678, %593 : vector<4x32xf32>
    %686 = arith.addf %684, %685 : vector<4x32xf32>
    %c6_i32_364 = arith.constant 6 : i32
    %687 = vector.broadcast %c6_i32_364 : i32 to vector<4x1xi32>
    %688 = arith.cmpi sgt, %50, %687 : vector<4x1xi32>
    %689 = vector.shape_cast %688 : vector<4x1xi1> to vector<4x1xi1>
    %690 = vector.broadcast %689 : vector<4x1xi1> to vector<4x32xi1>
    %691 = arith.select %690, %686, %593 : vector<4x32xi1>, vector<4x32xf32>
    %c3_365 = arith.constant 3 : index
    %c0_366 = arith.constant 0 : index
    %c0_367 = arith.constant 0 : index
    %692 = vector.load %arg4[%c3_365, %c0_366, %c0_367] : memref<6x32x32xf32, #tpu.memory_space<vmem>>, vector<1x32x32xf32>
    %693 = vector.shape_cast %692 : vector<1x32x32xf32> to vector<32x32xf32>
    %cst_368 = arith.constant dense<0.000000e+00> : vector<4x32xf32>
    %694 = tpu.matmul %642, %693, %cst_368 {dimension_numbers = #tpu.dot_dimension_numbers<[1], [0], [0], [1], [0, 0, 1, 1], [], []>} : vector<4x32xf32>, vector<32x32xf32>, vector<4x32xf32> -> vector<4x32xf32>
    %c3_369 = arith.constant 3 : index
    %c0_370 = arith.constant 0 : index
    %c0_371 = arith.constant 0 : index
    %695 = vector.load %arg6[%c3_369, %c0_370, %c0_371] : memref<6x1x32xf32, #tpu.memory_space<vmem>>, vector<1x1x32xf32>
    %696 = vector.shape_cast %695 : vector<1x1x32xf32> to vector<1x32xf32>
    %697 = vector.broadcast %696 : vector<1x32xf32> to vector<4x32xf32>
    %698 = arith.addf %694, %697 : vector<4x32xf32>
    %c4_372 = arith.constant 4 : index
    %c0_373 = arith.constant 0 : index
    %c0_374 = arith.constant 0 : index
    %699 = vector.load %arg4[%c4_372, %c0_373, %c0_374] : memref<6x32x32xf32, #tpu.memory_space<vmem>>, vector<1x32x32xf32>
    %700 = vector.shape_cast %699 : vector<1x32x32xf32> to vector<32x32xf32>
    %cst_375 = arith.constant dense<0.000000e+00> : vector<4x32xf32>
    %701 = tpu.matmul %642, %700, %cst_375 {dimension_numbers = #tpu.dot_dimension_numbers<[1], [0], [0], [1], [0, 0, 1, 1], [], []>} : vector<4x32xf32>, vector<32x32xf32>, vector<4x32xf32> -> vector<4x32xf32>
    %c4_376 = arith.constant 4 : index
    %c0_377 = arith.constant 0 : index
    %c0_378 = arith.constant 0 : index
    %702 = vector.load %arg6[%c4_376, %c0_377, %c0_378] : memref<6x1x32xf32, #tpu.memory_space<vmem>>, vector<1x1x32xf32>
    %703 = vector.shape_cast %702 : vector<1x1x32xf32> to vector<1x32xf32>
    %704 = vector.broadcast %703 : vector<1x32xf32> to vector<4x32xf32>
    %705 = arith.addf %701, %704 : vector<4x32xf32>
    %c5_379 = arith.constant 5 : index
    %c0_380 = arith.constant 0 : index
    %c0_381 = arith.constant 0 : index
    %706 = vector.load %arg4[%c5_379, %c0_380, %c0_381] : memref<6x32x32xf32, #tpu.memory_space<vmem>>, vector<1x32x32xf32>
    %707 = vector.shape_cast %706 : vector<1x32x32xf32> to vector<32x32xf32>
    %cst_382 = arith.constant dense<0.000000e+00> : vector<4x32xf32>
    %708 = tpu.matmul %642, %707, %cst_382 {dimension_numbers = #tpu.dot_dimension_numbers<[1], [0], [0], [1], [0, 0, 1, 1], [], []>} : vector<4x32xf32>, vector<32x32xf32>, vector<4x32xf32> -> vector<4x32xf32>
    %c5_383 = arith.constant 5 : index
    %c0_384 = arith.constant 0 : index
    %c0_385 = arith.constant 0 : index
    %709 = vector.load %arg6[%c5_383, %c0_384, %c0_385] : memref<6x1x32xf32, #tpu.memory_space<vmem>>, vector<1x1x32xf32>
    %710 = vector.shape_cast %709 : vector<1x1x32xf32> to vector<1x32xf32>
    %711 = vector.broadcast %710 : vector<1x32xf32> to vector<4x32xf32>
    %712 = arith.addf %708, %711 : vector<4x32xf32>
    %713 = vector.extract_strided_slice %35 {offsets = [4, 0], sizes = [4, 32], strides = [1, 1]} : vector<32x32xf32> to vector<4x32xf32>
    %714 = vector.extract_strided_slice %42 {offsets = [4, 0], sizes = [4, 32], strides = [1, 1]} : vector<32x32xf32> to vector<4x32xf32>
    %715 = vector.extract_strided_slice %49 {offsets = [4, 0], sizes = [4, 32], strides = [1, 1]} : vector<32x32xf32> to vector<4x32xf32>
    %716 = arith.addf %713, %698 : vector<4x32xf32>
    %717 = arith.negf %716 : vector<4x32xf32>
    %718 = math.exp %717 : vector<4x32xf32>
    %cst_386 = arith.constant 1.000000e+00 : f32
    %719 = vector.broadcast %cst_386 : f32 to vector<4x32xf32>
    %720 = arith.addf %719, %718 : vector<4x32xf32>
    %721 = arith.divf %719, %720 : vector<4x32xf32>
    %722 = arith.addf %714, %705 : vector<4x32xf32>
    %723 = arith.negf %722 : vector<4x32xf32>
    %724 = math.exp %723 : vector<4x32xf32>
    %cst_387 = arith.constant 1.000000e+00 : f32
    %725 = vector.broadcast %cst_387 : f32 to vector<4x32xf32>
    %726 = arith.addf %725, %724 : vector<4x32xf32>
    %727 = arith.divf %725, %726 : vector<4x32xf32>
    %728 = arith.mulf %721, %712 : vector<4x32xf32>
    %729 = arith.addf %715, %728 : vector<4x32xf32>
    %730 = math.tanh %729 : vector<4x32xf32>
    %cst_388 = arith.constant 1.000000e+00 : f32
    %731 = vector.broadcast %cst_388 : f32 to vector<4x32xf32>
    %732 = arith.subf %731, %727 : vector<4x32xf32>
    %733 = arith.mulf %732, %730 : vector<4x32xf32>
    %734 = arith.mulf %727, %642 : vector<4x32xf32>
    %735 = arith.addf %733, %734 : vector<4x32xf32>
    %c1_i32_389 = arith.constant 1 : i32
    %736 = vector.broadcast %c1_i32_389 : i32 to vector<4x1xi32>
    %737 = arith.cmpi sgt, %50, %736 : vector<4x1xi32>
    %738 = vector.shape_cast %737 : vector<4x1xi1> to vector<4x1xi1>
    %739 = vector.broadcast %738 : vector<4x1xi1> to vector<4x32xi1>
    %740 = arith.select %739, %735, %642 : vector<4x32xi1>, vector<4x32xf32>
    %c0_390 = arith.constant 0 : index
    %c0_391 = arith.constant 0 : index
    %c0_392 = arith.constant 0 : index
    %741 = vector.load %arg4[%c0_390, %c0_391, %c0_392] : memref<6x32x32xf32, #tpu.memory_space<vmem>>, vector<1x32x32xf32>
    %742 = vector.shape_cast %741 : vector<1x32x32xf32> to vector<32x32xf32>
    %cst_393 = arith.constant dense<0.000000e+00> : vector<4x32xf32>
    %743 = tpu.matmul %691, %742, %cst_393 {dimension_numbers = #tpu.dot_dimension_numbers<[1], [0], [0], [1], [0, 0, 1, 1], [], []>} : vector<4x32xf32>, vector<32x32xf32>, vector<4x32xf32> -> vector<4x32xf32>
    %c0_394 = arith.constant 0 : index
    %c0_395 = arith.constant 0 : index
    %c0_396 = arith.constant 0 : index
    %744 = vector.load %arg6[%c0_394, %c0_395, %c0_396] : memref<6x1x32xf32, #tpu.memory_space<vmem>>, vector<1x1x32xf32>
    %745 = vector.shape_cast %744 : vector<1x1x32xf32> to vector<1x32xf32>
    %746 = vector.broadcast %745 : vector<1x32xf32> to vector<4x32xf32>
    %747 = arith.addf %743, %746 : vector<4x32xf32>
    %c1_397 = arith.constant 1 : index
    %c0_398 = arith.constant 0 : index
    %c0_399 = arith.constant 0 : index
    %748 = vector.load %arg4[%c1_397, %c0_398, %c0_399] : memref<6x32x32xf32, #tpu.memory_space<vmem>>, vector<1x32x32xf32>
    %749 = vector.shape_cast %748 : vector<1x32x32xf32> to vector<32x32xf32>
    %cst_400 = arith.constant dense<0.000000e+00> : vector<4x32xf32>
    %750 = tpu.matmul %691, %749, %cst_400 {dimension_numbers = #tpu.dot_dimension_numbers<[1], [0], [0], [1], [0, 0, 1, 1], [], []>} : vector<4x32xf32>, vector<32x32xf32>, vector<4x32xf32> -> vector<4x32xf32>
    %c1_401 = arith.constant 1 : index
    %c0_402 = arith.constant 0 : index
    %c0_403 = arith.constant 0 : index
    %751 = vector.load %arg6[%c1_401, %c0_402, %c0_403] : memref<6x1x32xf32, #tpu.memory_space<vmem>>, vector<1x1x32xf32>
    %752 = vector.shape_cast %751 : vector<1x1x32xf32> to vector<1x32xf32>
    %753 = vector.broadcast %752 : vector<1x32xf32> to vector<4x32xf32>
    %754 = arith.addf %750, %753 : vector<4x32xf32>
    %c2_404 = arith.constant 2 : index
    %c0_405 = arith.constant 0 : index
    %c0_406 = arith.constant 0 : index
    %755 = vector.load %arg4[%c2_404, %c0_405, %c0_406] : memref<6x32x32xf32, #tpu.memory_space<vmem>>, vector<1x32x32xf32>
    %756 = vector.shape_cast %755 : vector<1x32x32xf32> to vector<32x32xf32>
    %cst_407 = arith.constant dense<0.000000e+00> : vector<4x32xf32>
    %757 = tpu.matmul %691, %756, %cst_407 {dimension_numbers = #tpu.dot_dimension_numbers<[1], [0], [0], [1], [0, 0, 1, 1], [], []>} : vector<4x32xf32>, vector<32x32xf32>, vector<4x32xf32> -> vector<4x32xf32>
    %c2_408 = arith.constant 2 : index
    %c0_409 = arith.constant 0 : index
    %c0_410 = arith.constant 0 : index
    %758 = vector.load %arg6[%c2_408, %c0_409, %c0_410] : memref<6x1x32xf32, #tpu.memory_space<vmem>>, vector<1x1x32xf32>
    %759 = vector.shape_cast %758 : vector<1x1x32xf32> to vector<1x32xf32>
    %760 = vector.broadcast %759 : vector<1x32xf32> to vector<4x32xf32>
    %761 = arith.addf %757, %760 : vector<4x32xf32>
    %762 = vector.extract_strided_slice %14 {offsets = [28, 0], sizes = [4, 32], strides = [1, 1]} : vector<32x32xf32> to vector<4x32xf32>
    %763 = vector.extract_strided_slice %21 {offsets = [28, 0], sizes = [4, 32], strides = [1, 1]} : vector<32x32xf32> to vector<4x32xf32>
    %764 = vector.extract_strided_slice %28 {offsets = [28, 0], sizes = [4, 32], strides = [1, 1]} : vector<32x32xf32> to vector<4x32xf32>
    %765 = arith.addf %762, %747 : vector<4x32xf32>
    %766 = arith.negf %765 : vector<4x32xf32>
    %767 = math.exp %766 : vector<4x32xf32>
    %cst_411 = arith.constant 1.000000e+00 : f32
    %768 = vector.broadcast %cst_411 : f32 to vector<4x32xf32>
    %769 = arith.addf %768, %767 : vector<4x32xf32>
    %770 = arith.divf %768, %769 : vector<4x32xf32>
    %771 = arith.addf %763, %754 : vector<4x32xf32>
    %772 = arith.negf %771 : vector<4x32xf32>
    %773 = math.exp %772 : vector<4x32xf32>
    %cst_412 = arith.constant 1.000000e+00 : f32
    %774 = vector.broadcast %cst_412 : f32 to vector<4x32xf32>
    %775 = arith.addf %774, %773 : vector<4x32xf32>
    %776 = arith.divf %774, %775 : vector<4x32xf32>
    %777 = arith.mulf %770, %761 : vector<4x32xf32>
    %778 = arith.addf %764, %777 : vector<4x32xf32>
    %779 = math.tanh %778 : vector<4x32xf32>
    %cst_413 = arith.constant 1.000000e+00 : f32
    %780 = vector.broadcast %cst_413 : f32 to vector<4x32xf32>
    %781 = arith.subf %780, %776 : vector<4x32xf32>
    %782 = arith.mulf %781, %779 : vector<4x32xf32>
    %783 = arith.mulf %776, %691 : vector<4x32xf32>
    %784 = arith.addf %782, %783 : vector<4x32xf32>
    %c7_i32_414 = arith.constant 7 : i32
    %785 = vector.broadcast %c7_i32_414 : i32 to vector<4x1xi32>
    %786 = arith.cmpi sgt, %50, %785 : vector<4x1xi32>
    %787 = vector.shape_cast %786 : vector<4x1xi1> to vector<4x1xi1>
    %788 = vector.broadcast %787 : vector<4x1xi1> to vector<4x32xi1>
    %789 = arith.select %788, %784, %691 : vector<4x32xi1>, vector<4x32xf32>
    %c3_415 = arith.constant 3 : index
    %c0_416 = arith.constant 0 : index
    %c0_417 = arith.constant 0 : index
    %790 = vector.load %arg4[%c3_415, %c0_416, %c0_417] : memref<6x32x32xf32, #tpu.memory_space<vmem>>, vector<1x32x32xf32>
    %791 = vector.shape_cast %790 : vector<1x32x32xf32> to vector<32x32xf32>
    %cst_418 = arith.constant dense<0.000000e+00> : vector<4x32xf32>
    %792 = tpu.matmul %740, %791, %cst_418 {dimension_numbers = #tpu.dot_dimension_numbers<[1], [0], [0], [1], [0, 0, 1, 1], [], []>} : vector<4x32xf32>, vector<32x32xf32>, vector<4x32xf32> -> vector<4x32xf32>
    %c3_419 = arith.constant 3 : index
    %c0_420 = arith.constant 0 : index
    %c0_421 = arith.constant 0 : index
    %793 = vector.load %arg6[%c3_419, %c0_420, %c0_421] : memref<6x1x32xf32, #tpu.memory_space<vmem>>, vector<1x1x32xf32>
    %794 = vector.shape_cast %793 : vector<1x1x32xf32> to vector<1x32xf32>
    %795 = vector.broadcast %794 : vector<1x32xf32> to vector<4x32xf32>
    %796 = arith.addf %792, %795 : vector<4x32xf32>
    %c4_422 = arith.constant 4 : index
    %c0_423 = arith.constant 0 : index
    %c0_424 = arith.constant 0 : index
    %797 = vector.load %arg4[%c4_422, %c0_423, %c0_424] : memref<6x32x32xf32, #tpu.memory_space<vmem>>, vector<1x32x32xf32>
    %798 = vector.shape_cast %797 : vector<1x32x32xf32> to vector<32x32xf32>
    %cst_425 = arith.constant dense<0.000000e+00> : vector<4x32xf32>
    %799 = tpu.matmul %740, %798, %cst_425 {dimension_numbers = #tpu.dot_dimension_numbers<[1], [0], [0], [1], [0, 0, 1, 1], [], []>} : vector<4x32xf32>, vector<32x32xf32>, vector<4x32xf32> -> vector<4x32xf32>
    %c4_426 = arith.constant 4 : index
    %c0_427 = arith.constant 0 : index
    %c0_428 = arith.constant 0 : index
    %800 = vector.load %arg6[%c4_426, %c0_427, %c0_428] : memref<6x1x32xf32, #tpu.memory_space<vmem>>, vector<1x1x32xf32>
    %801 = vector.shape_cast %800 : vector<1x1x32xf32> to vector<1x32xf32>
    %802 = vector.broadcast %801 : vector<1x32xf32> to vector<4x32xf32>
    %803 = arith.addf %799, %802 : vector<4x32xf32>
    %c5_429 = arith.constant 5 : index
    %c0_430 = arith.constant 0 : index
    %c0_431 = arith.constant 0 : index
    %804 = vector.load %arg4[%c5_429, %c0_430, %c0_431] : memref<6x32x32xf32, #tpu.memory_space<vmem>>, vector<1x32x32xf32>
    %805 = vector.shape_cast %804 : vector<1x32x32xf32> to vector<32x32xf32>
    %cst_432 = arith.constant dense<0.000000e+00> : vector<4x32xf32>
    %806 = tpu.matmul %740, %805, %cst_432 {dimension_numbers = #tpu.dot_dimension_numbers<[1], [0], [0], [1], [0, 0, 1, 1], [], []>} : vector<4x32xf32>, vector<32x32xf32>, vector<4x32xf32> -> vector<4x32xf32>
    %c5_433 = arith.constant 5 : index
    %c0_434 = arith.constant 0 : index
    %c0_435 = arith.constant 0 : index
    %807 = vector.load %arg6[%c5_433, %c0_434, %c0_435] : memref<6x1x32xf32, #tpu.memory_space<vmem>>, vector<1x1x32xf32>
    %808 = vector.shape_cast %807 : vector<1x1x32xf32> to vector<1x32xf32>
    %809 = vector.broadcast %808 : vector<1x32xf32> to vector<4x32xf32>
    %810 = arith.addf %806, %809 : vector<4x32xf32>
    %811 = vector.extract_strided_slice %35 {offsets = [0, 0], sizes = [4, 32], strides = [1, 1]} : vector<32x32xf32> to vector<4x32xf32>
    %812 = vector.extract_strided_slice %42 {offsets = [0, 0], sizes = [4, 32], strides = [1, 1]} : vector<32x32xf32> to vector<4x32xf32>
    %813 = vector.extract_strided_slice %49 {offsets = [0, 0], sizes = [4, 32], strides = [1, 1]} : vector<32x32xf32> to vector<4x32xf32>
    %814 = arith.addf %811, %796 : vector<4x32xf32>
    %815 = arith.negf %814 : vector<4x32xf32>
    %816 = math.exp %815 : vector<4x32xf32>
    %cst_436 = arith.constant 1.000000e+00 : f32
    %817 = vector.broadcast %cst_436 : f32 to vector<4x32xf32>
    %818 = arith.addf %817, %816 : vector<4x32xf32>
    %819 = arith.divf %817, %818 : vector<4x32xf32>
    %820 = arith.addf %812, %803 : vector<4x32xf32>
    %821 = arith.negf %820 : vector<4x32xf32>
    %822 = math.exp %821 : vector<4x32xf32>
    %cst_437 = arith.constant 1.000000e+00 : f32
    %823 = vector.broadcast %cst_437 : f32 to vector<4x32xf32>
    %824 = arith.addf %823, %822 : vector<4x32xf32>
    %825 = arith.divf %823, %824 : vector<4x32xf32>
    %826 = arith.mulf %819, %810 : vector<4x32xf32>
    %827 = arith.addf %813, %826 : vector<4x32xf32>
    %828 = math.tanh %827 : vector<4x32xf32>
    %cst_438 = arith.constant 1.000000e+00 : f32
    %829 = vector.broadcast %cst_438 : f32 to vector<4x32xf32>
    %830 = arith.subf %829, %825 : vector<4x32xf32>
    %831 = arith.mulf %830, %828 : vector<4x32xf32>
    %832 = arith.mulf %825, %740 : vector<4x32xf32>
    %833 = arith.addf %831, %832 : vector<4x32xf32>
    %c0_i32_439 = arith.constant 0 : i32
    %834 = vector.broadcast %c0_i32_439 : i32 to vector<4x1xi32>
    %835 = arith.cmpi sgt, %50, %834 : vector<4x1xi32>
    %836 = vector.shape_cast %835 : vector<4x1xi1> to vector<4x1xi1>
    %837 = vector.broadcast %836 : vector<4x1xi1> to vector<4x32xi1>
    %838 = arith.select %837, %833, %740 : vector<4x32xi1>, vector<4x32xf32>
    %839 = vector.extract_strided_slice %789 {offsets = [0, 0], sizes = [2, 32], strides = [1, 1]} : vector<4x32xf32> to vector<2x32xf32>
    %840 = vector.extract_strided_slice %838 {offsets = [0, 0], sizes = [2, 32], strides = [1, 1]} : vector<4x32xf32> to vector<2x32xf32>
    %841 = vector.extract_strided_slice %789 {offsets = [2, 0], sizes = [2, 32], strides = [1, 1]} : vector<4x32xf32> to vector<2x32xf32>
    %842 = vector.extract_strided_slice %838 {offsets = [2, 0], sizes = [2, 32], strides = [1, 1]} : vector<4x32xf32> to vector<2x32xf32>
    %843 = tpu.concatenate %839, %840, %841, %842 in 1 : vector<2x32xf32>, vector<2x32xf32>, vector<2x32xf32>, vector<2x32xf32> -> vector<2x128xf32>
    %c0_440 = arith.constant 0 : index
    %c0_441 = arith.constant 0 : index
    %844 = vector.load %arg8[%c0_440, %c0_441] : memref<128x32xf32, #tpu.memory_space<vmem>>, vector<128x32xf32>
    %cst_442 = arith.constant dense<0.000000e+00> : vector<2x32xf32>
    %845 = tpu.matmul %843, %844, %cst_442 {dimension_numbers = #tpu.dot_dimension_numbers<[1], [0], [0], [1], [0, 0, 1, 1], [], []>} : vector<2x128xf32>, vector<128x32xf32>, vector<2x32xf32> -> vector<2x32xf32>
    %c0_443 = arith.constant 0 : index
    %c0_444 = arith.constant 0 : index
    %846 = vector.load %arg9[%c0_443, %c0_444] : memref<1x32xf32, #tpu.memory_space<vmem>>, vector<1x32xf32>
    %847 = vector.broadcast %846 : vector<1x32xf32> to vector<2x32xf32>
    %848 = arith.addf %845, %847 : vector<2x32xf32>
    %cst_445 = arith.constant 0.000000e+00 : f32
    %849 = vector.broadcast %cst_445 : f32 to vector<2x32xf32>
    %850 = arith.maximumf %848, %849 : vector<2x32xf32>
    %c0_446 = arith.constant 0 : index
    %c0_447 = arith.constant 0 : index
    %851 = vector.load %arg10[%c0_446, %c0_447] : memref<32x3xf32, #tpu.memory_space<vmem>>, vector<32x3xf32>
    %cst_448 = arith.constant dense<0.000000e+00> : vector<2x3xf32>
    %852 = tpu.matmul %850, %851, %cst_448 {dimension_numbers = #tpu.dot_dimension_numbers<[1], [0], [0], [1], [0, 0, 1, 1], [], []>} : vector<2x32xf32>, vector<32x3xf32>, vector<2x3xf32> -> vector<2x3xf32>
    %c0_449 = arith.constant 0 : index
    %c0_450 = arith.constant 0 : index
    %853 = vector.load %arg11[%c0_449, %c0_450] : memref<1x3xf32, #tpu.memory_space<vmem>>, vector<1x3xf32>
    %854 = vector.broadcast %853 : vector<1x3xf32> to vector<2x3xf32>
    %855 = arith.addf %852, %854 : vector<2x3xf32>
    %c0_451 = arith.constant 0 : index
    %c0_452 = arith.constant 0 : index
    %856 = vector.load %arg12[%c0_451, %c0_452] : memref<2x3xf32, #tpu.memory_space<vmem>>, vector<2x3xf32>
    tpu.vector_store %arg12[%c0_451, %c0_452], %855 {strides = array<i32>} : memref<2x3xf32, #tpu.memory_space<vmem>>, vector<2x3xf32>,
    return
  }
}

</mosaic_0001>

<bundles_post_ra>
// kernel: rnn_forward.1
= control target key start
LH: loop header
LB: loop body
LE: loop exit
PB: predicated region body
PF: predicated region fallthrough
CT: control target
= control target key end

     0   :  { %17 = vsyncpa [#allocation3], 0  ;;  %s8090_s0 = inlined_call_operand.vmem [shape: s32[32,1], index: 0, kind: input, shape index: {}]   ;;  %s8091_s1 = inlined_call_operand.vmem [shape: s32[4,1], index: 1, kind: input, shape index: {}]   ;;  %s8092_s2 = inlined_call_operand.vmem [shape: f32[64,32], index: 2, kind: input, shape index: {}]   ;;  %s8093_s3 = inlined_call_operand.vmem [shape: f32[6,32,32], index: 3, kind: input, shape index: {}]   ;;  %s8094_s4 = inlined_call_operand.vmem [shape: f32[6,32,32], index: 4, kind: input, shape index: {}]   ;;  %s8095_s5 = inlined_call_operand.hbm [shape: f32[6,1,32], index: 5, kind: input, shape index: {}]   ;;  %s8096_s6 = inlined_call_operand.hbm [shape: f32[6,1,32], index: 6, kind: input, shape index: {}]   ;;  %s8097_s7 = inlined_call_operand.vmem [shape: f32[2,4,32], index: 7, kind: input, shape index: {}]   ;;  %s8098_s8 = inlined_call_operand.vmem [shape: f32[128,32], index: 8, kind: input, shape index: {}]   ;;  %s8099_s9 = inlined_call_operand.hbm [shape: f32[1,32], index: 9, kind: input, shape index: {}]   ;;  %s8100_s10 = inlined_call_operand.vmem [shape: f32[32,3], index: 10, kind: input, shape index: {}]   ;;  %s8101_s11 = inlined_call_operand.hbm [shape: f32[1,3], index: 11, kind: input, shape index: {}]   ;;  %s8102_s12 = inlined_call_operand.hbm [shape: f32[2,3], index: 12, kind: output, shape index: {}]  }
   0x1   :  { %18 = vsyncpa [#allocation6], 0 }
   0x2   :  { %19 = vsyncpa [#allocation9], 0 }
   0x3   :  { %20 = vsyncpa [#allocation4], 0  ;;  %s6894_s21 = smov [#allocation5]   ;;  %s6895_s23 = smov [#allocation2]  }
   0x4   :  { %s48_s22 = sshll.u32 %s6894_s21, 4  ;;  %s36_s24 = sshll.u32 %s6895_s23, 4  ;;  %s49_s22 = int_to_ptr.vmem [resolvable:$true] %s48_s22  ;;  %s6973_s24 = int_to_ptr.vmem [resolvable:$true] %s36_s24 }
   0x5   :  { %s6776_s27 = scalar_lea.hbm %s8096_s6, 96 }
   0x6   :  { %p6777_p0 = scmp.ne.s32.totalorder %s8096_s6, %s6776_s27  ;;  %p6780_p1 = scmp.lt.u32.totalorder %s6776_s27, %s8096_s6 }
   0x8   :  { %p6782_p2 = pnand %p6780_p1, %p6777_p0 }
   0xa   :  { %6785 = shalt.err (!%p6782_p2)
}
   0xb   :  { %s6786_s14 = scalar_lea.vmem %s49_s22, 96  ;;  %p6791_p4 = scmp.lt.s32.totalorder %s49_s22, %s49_s22 }
   0xc   :  { %p6787_p3 = scmp.ne.s32.totalorder %s49_s22, %s6786_s14  ;;  %p6792_p5 = scmp.lt.s32.totalorder %s6786_s14, %s6786_s14 }
   0xe   :  { %p6793_p6 = por %p6792_p5, %p6791_p4 }
  0x10   :  { %p6794_p7 = pnand %p6793_p6, %p6787_p3 }
  0x12   :  { %6797 = shalt.err (!%p6794_p7)
}
  0x13   :  { %s6896_s15 = smov 16   ;;  %s6897_s16 = smov 1  }
  0x14   :  { %54 = dma.hbm_to_vmem [thread:$0]  %s8096_s6, 96, %s49_s22, [#allocation6], %s6896_s15, %s6896_s15, %s6897_s16  }
  0x15   :  { %s6798_s21 = scalar_lea.hbm %s8095_s5, 96 }
  0x16   :  { %p6799_p8 = scmp.ne.s32.totalorder %s8095_s5, %s6798_s21  ;;  %p6802_p9 = scmp.lt.u32.totalorder %s6798_s21, %s8095_s5 }
  0x18   :  { %p6804_p10 = pnand %p6802_p9, %p6799_p8 }
  0x1a   :  { %6807 = shalt.err (!%p6804_p10)
}
  0x1b   :  { %s6808_s28 = scalar_lea.vmem %s6973_s24, 96  ;;  %p6813_p12 = scmp.lt.s32.totalorder %s6973_s24, %s6973_s24 }
  0x1c   :  { %p6809_p11 = scmp.ne.s32.totalorder %s6973_s24, %s6808_s28  ;;  %p6814_p13 = scmp.lt.s32.totalorder %s6808_s28, %s6808_s28 }
  0x1e   :  { %p6815_p0 = por %p6814_p13, %p6813_p12 }
  0x20   :  { %p6816_p1 = pnand %p6815_p0, %p6809_p11 }
  0x22   :  { %6819 = shalt.err (!%p6816_p1)
}
  0x23   :  { %42 = dma.hbm_to_vmem [thread:$0]  %s8095_s5, 96, %s6973_s24, [#allocation3], %s6896_s15, %s6896_s15, %s6897_s16  }
  0x24   :  { %s6898_s29 = smov [#allocation7]   ;;  %s6899_s13 = smov [#allocation8]  }
  0x25   :  { %s65_s30 = sshll.u32 %s6898_s29, 4  ;;  %s77_s14 = sshll.u32 %s6899_s13, 4  ;;  %s66_s30 = int_to_ptr.vmem [resolvable:$true] %s65_s30  ;;  %s78_s14 = int_to_ptr.vmem [resolvable:$true] %s77_s14 }
  0x26   :  { %s6820_s19 = scalar_lea.hbm %s8099_s9, 16 }
  0x27   :  { %p6821_p2 = scmp.ne.s32.totalorder %s8099_s9, %s6820_s19  ;;  %p6824_p3 = scmp.lt.u32.totalorder %s6820_s19, %s8099_s9 }
  0x29   :  { %p6826_p4 = pnand %p6824_p3, %p6821_p2 }
  0x2b   :  { %6829 = shalt.err (!%p6826_p4)
}
  0x2c   :  { %s6830_s5 = scalar_lea.vmem %s66_s30, 16  ;;  %s6834_s24 = scalar_lea.vmem %s66_s30, 32 }
  0x2d   :  { %p6831_p5 = scmp.ne.s32.totalorder %s66_s30, %s6830_s5  ;;  %p6835_p6 = scmp.lt.s32.totalorder %s66_s30, %s66_s30 }
  0x2e   :  { %p6836_p7 = scmp.lt.s32.totalorder %s6834_s24, %s6830_s5 }
  0x30   :  { %p6837_p8 = por %p6836_p7, %p6835_p6 }
  0x32   :  { %p6838_p9 = pnand %p6837_p8, %p6831_p5 }
  0x34   :  { %6841 = shalt.err (!%p6838_p9)
}
  0x35   :  { %68 = dma.hbm_to_vmem [thread:$0]  %s8099_s9, 16, %s66_s30, [#allocation6]  }
  0x36   :  { %s6842_s28 = scalar_lea.hbm %s8101_s11, 16 }
  0x37   :  { %p6843_p10 = scmp.ne.s32.totalorder %s8101_s11, %s6842_s28  ;;  %p6846_p11 = scmp.lt.u32.totalorder %s6842_s28, %s8101_s11 }
  0x39   :  { %p6848_p12 = pnand %p6846_p11, %p6843_p10 }
  0x3b   :  { %6851 = shalt.err (!%p6848_p12)
}
  0x3c   :  { %s6852_s17 = scalar_lea.vmem %s78_s14, 16  ;;  %s6856_s18 = scalar_lea.vmem %s78_s14, 32 }
  0x3d   :  { %p6853_p13 = scmp.ne.s32.totalorder %s78_s14, %s6852_s17  ;;  %p6857_p0 = scmp.lt.s32.totalorder %s78_s14, %s78_s14 }
  0x3e   :  { %p6858_p1 = scmp.lt.s32.totalorder %s6856_s18, %s6852_s17 }
  0x40   :  { %p6859_p2 = por %p6858_p1, %p6857_p0 }
  0x42   :  { %p6860_p3 = pnand %p6859_p2, %p6853_p13 }
  0x44   :  { %6863 = shalt.err (!%p6860_p3)
}
  0x45   :  { %80 = dma.hbm_to_vmem [thread:$0]  %s8101_s11, 16, %s78_s14, [#allocation9]  }
  0x46   :  { %6886 = dma.done.wait [#allocation3], 96  }
  0x47   :  { %6887 = vsyncadd [#allocation3], 4294967200 }
  0x48   :  { %6888 = dma.done.wait [#allocation6], 112  }
  0x49   :  { %6889 = vsyncadd [#allocation6], 4294967184 }
  0x4a   :  { %6890 = dma.done.wait [#allocation9], 16  }
  0x4b   :  { %6891 = vsyncadd [#allocation9], 4294967280  ;;  %v6900_v0 = vmov 0   ;;  %v95_v1 = vld [vmem:[%s8090_s0 + $0x10] sm:$0xff]  ;;  %v93_v2 = vld [vmem:[%s8090_s0] sm:$0xff]  ;;  %v97_v35 = vlaneseq  ;;  %vm131_vm8 = vcmask 523264  }
  0x4c   :  { %6609 = vset.pattern.permute.xlu1 %v6900_v0  ;;  %6608 = vset.pattern.permute.xlu0 %v6900_v0  ;;  %v828_v3 = vld [vmem:[%s8091_s1] sm:$0xf]  ;;  %v96_v4 = vld [vmem:[%s8090_s0 + $0x18] sm:$0xff]  ;;  %v94_v5 = vld [vmem:[%s8090_s0 + $0x8] sm:$0xff]  ;;  %v6901_v39 = vmov 0.0   ;;  %vm240_vm13 = vcmask 261120  }
  0x4d   :  { %106 = vperm.xlu1 %6609, %v95_v1   ;;  %100 = vperm.xlu0 %6608, %v93_v2   ;;  %vm1394_vm0 = vcmp.gt.s32.totalorder %v828_v3, 7  ;;  %vm1103_vm1 = vcmp.gt.s32.totalorder %v828_v3, 0  ;;  %v123_v6 = vld [vmem:[%s8092_s2] sm:$0xff]  ;;  %v124_v7 = vld [vmem:[%s8092_s2 + $0x8] sm:$0xff]  ;;  %v125_v8 = vld [vmem:[%s8092_s2 + $0x10] sm:$0xff]  ;;  %vm1893_vm2 = vcmp.gt.s32.totalorder %v828_v3, 6 }
  0x4e   :  { %v126_v9 = vld [vmem:[%s8092_s2 + $0x18] sm:$0xff]  ;;  %v1395_v10 = vsel %vm1394_vm0, 1, %v6900_v0  ;;  %v1104_v11 = vsel %vm1103_vm1, 1, %v6900_v0  ;;  %v6212_v12 = vpack.c.bf16 %v124_v7, %v123_v6  ;;  %vm1649_vm3 = vcmp.gt.s32.totalorder %v828_v3, 1  ;;  %v127_v14 = vld [vmem:[%s8092_s2 + $0x20] sm:$0xff]  ;;  %v128_v15 = vld [vmem:[%s8092_s2 + $0x28] sm:$0xff] }
  0x4f   :  { %v6216_v13 = vpack.c.bf16 %v126_v9, %v125_v8  ;;  %v1894_v16 = vsel %vm1893_vm2, 1, %v6900_v0  ;;  %v1650_v17 = vsel %vm1649_vm3, 1, %v6900_v0  ;;  %vm2386_vm4 = vcmp.gt.s32.totalorder %v828_v3, 5  ;;  %v129_v19 = vld [vmem:[%s8092_s2 + $0x30] sm:$0xff]  ;;  %v130_v20 = vld [vmem:[%s8092_s2 + $0x38] sm:$0xff]  ;;  %v229_v26 = vld [vmem:[%s8093_s3] sm:$0xff] }
  0x50   :  { %6213 = vmatprep.subr.bf16.mxu1 %v6212_v12  ;;  %vm2134_vm5 = vcmp.gt.s32.totalorder %v828_v3, 2  ;;  %v6220_v18 = vpack.c.bf16 %v128_v15, %v127_v14  ;;  %v2387_v21 = vsel %vm2386_vm4, 1, %v6900_v0  ;;  %vm2885_vm6 = vcmp.gt.s32.totalorder %v828_v3, 4  ;;  %v230_v27 = vld [vmem:[%s8093_s3 + $0x8] sm:$0xff]  ;;  %v5064_v28 = vld [vmem:[%s8093_s3 + $0x40] sm:$0xff]  ;;  %v5066_v32 = vld [vmem:[%s8093_s3 + $0x50] sm:$0xff] }
  0x51   :  { %109 = vperm.xlu1 %6609, %v96_v4   ;;  %103 = vperm.xlu0 %6608, %v94_v5   ;;  %v2135_v22 = vsel %vm2134_vm5, 1, %v6900_v0  ;;  %vm2641_vm7 = vcmp.gt.s32.totalorder %v828_v3, 3  ;;  %v6224_v23 = vpack.c.bf16 %v130_v20, %v129_v19  ;;  %v2886_v24 = vsel %vm2885_vm6, 1, %v6900_v0  ;;  %v5065_v30 = vld [vmem:[%s8093_s3 + $0x48] sm:$0xff]  ;;  %v5067_v33 = vld [vmem:[%s8093_s3 + $0x58] sm:$0xff]  ;;  %v231_v41 = vld [vmem:[%s8093_s3 + $0x10] sm:$0xff] }
  0x52   :  { %6215 = vmatpush3.bf16.msra.mxu1 %v6212_v12  ;;  %v2642_v25 = vsel %vm2641_vm7, 1, %v6900_v0  ;;  %v6228_v29 = vpack.c.bf16 %v230_v27, %v229_v26  ;;  %v6244_v31 = vpack.c.bf16 %v5065_v30, %v5064_v28  ;;  %v6248_v34 = vpack.c.bf16 %v5067_v33, %v5066_v32  ;;  %v232_v42 = vld [vmem:[%s8093_s3 + $0x18] sm:$0xff]  ;;  %v5055_v49 = vld [vmem:[%s8093_s3 + $0x20] sm:$0xff]  ;;  %v5056_v50 = vld [vmem:[%s8093_s3 + $0x28] sm:$0xff]  ;;  %s6906_s25 = smov 96   ;;  %s6907_s26 = smov [#allocation10]  }
  0x53   :  { %6217 = vmatprep.subr.bf16.mxu1 %v6216_v13  ;;  %v98_v36 = vand.u32 127, %v97_v35  ;;  %v6232_v46 = vpack.c.bf16 %v232_v42, %v231_v41  ;;  %v5082_v51 = vld [vmem:[%s8093_s3 + $0x80] sm:$0xff]  ;;  %v6236_v52 = vpack.c.bf16 %v5056_v50, %v5055_v49  ;;  %v5083_v53 = vld [vmem:[%s8093_s3 + $0x88] sm:$0xff]  ;;  %v5057_v55 = vld [vmem:[%s8093_s3 + $0x30] sm:$0xff]  ;;  %vm6903_vm14 = vmmov 0   ;;  %s5031_s27 = sshll.u32 %s6907_s26, 4  ;;  %s5032_s27 = int_to_ptr.vmem [resolvable:$true] %s5031_s27 }
  0x54   :  { %6245 = vmatprep.subr.bf16.mxu0 %v6244_v31  ;;  %v6260_v54 = vpack.c.bf16 %v5083_v53, %v5082_v51  ;;  %v5058_v56 = vld [vmem:[%s8093_s3 + $0x38] sm:$0xff]  ;;  %v5084_v57 = vld [vmem:[%s8093_s3 + $0x90] sm:$0xff]  ;;  %v5073_v63 = vld [vmem:[%s8093_s3 + $0x60] sm:$0xff]  ;;  %vm4843_vm7 = vcmask 785408   ;;  %p6869_p5 = scmp.lt.s32.totalorder %s5032_s27, %s5032_s27 }
  0x55   :  { %1397 = vperm.xlu1 %6609, %v1395_v10   ;;  %1106 = vperm.xlu0 %6608, %v1104_v11   ;;  %v5085_v58 = vld [vmem:[%s8093_s3 + $0x98] sm:$0xff]  ;;  %v6240_v61 = vpack.c.bf16 %v5058_v56, %v5057_v55  ;;  %v5074_v0 = vld [vmem:[%s8093_s3 + $0x68] sm:$0xff]  ;;  %v832_v3 = vld [vmem:[%s8094_s4] sm:$0xff]  ;;  %v8103_v11 = vmov 0.0|0.0  }
  0x56   :  { %6219 = vmatpush3.bf16.msra.mxu1 %v6216_v13  ;;  %6247 = vmatpush3.bf16.msra.mxu0 %v6244_v31  ;;  %v6264_v62 = vpack.c.bf16 %v5085_v58, %v5084_v57  ;;  %v833_v4 = vld [vmem:[%s8094_s4 + $0x8] sm:$0xff]  ;;  %v6252_v5 = vpack.c.bf16 %v5074_v0, %v5073_v63  ;;  %v5075_v6 = vld [vmem:[%s8093_s3 + $0x70] sm:$0xff]  ;;  %v5076_v7 = vld [vmem:[%s8093_s3 + $0x78] sm:$0xff] }
  0x57   :  { %6221 = vmatprep.subr.bf16.mxu1 %v6220_v18  ;;  %6249 = vmatprep.subr.bf16.mxu0 %v6248_v34  ;;  %v7165_v8 = vpack.c.bf16 %v833_v4, %v832_v3  ;;  %v834_v9 = vld [vmem:[%s8094_s4 + $0x10] sm:$0xff]  ;;  %v835_v10 = vld [vmem:[%s8094_s4 + $0x18] sm:$0xff]  ;;  %v6256_v12 = vpack.c.bf16 %v5076_v7, %v5075_v6  ;;  %v5091_v13 = vld [vmem:[%s8093_s3 + $0xa0] sm:$0xff] }
  0x58   :  { %v5092_v14 = vld [vmem:[%s8093_s3 + $0xa8] sm:$0xff]  ;;  %v7189_v15 = vpack.c.bf16 %v835_v10, %v834_v9  ;;  %v5093_v19 = vld [vmem:[%s8093_s3 + $0xb0] sm:$0xff]  ;;  %v5094_v20 = vld [vmem:[%s8093_s3 + $0xb8] sm:$0xff]  ;;  %s6864_s3 = scalar_lea.vmem %s5032_s27, 32 }
  0x59   :  { %1896 = vperm.xlu1 %6609, %v1894_v16   ;;  %1652 = vperm.xlu0 %6608, %v1650_v17   ;;  %v6268_v16 = vpack.c.bf16 %v5092_v14, %v5091_v13  ;;  %v5109_v17 = vld [vmem:[%s8094_s4 + $0x40] sm:$0xff]  ;;  %v5104_v28 = vld [vmem:[%s8094_s4 + $0x28] sm:$0xff]  ;;  %v5105_v33 = vld [vmem:[%s8094_s4 + $0x30] sm:$0xff]  ;;  %p6865_p4 = scmp.ne.s32.totalorder %s5032_s27, %s6864_s3  ;;  %p6870_p6 = scmp.lt.s32.totalorder %s6864_s3, %s6864_s3 }
  0x5a   :  { %6223 = vmatpush3.bf16.msra.mxu1 %v6220_v18  ;;  %6251 = vmatpush3.bf16.msra.mxu0 %v6248_v34  ;;  %v5110_v18 = vld [vmem:[%s8094_s4 + $0x48] sm:$0xff]  ;;  %v5103_v27 = vld [vmem:[%s8094_s4 + $0x20] sm:$0xff]  ;;  %v5106_v34 = vld [vmem:[%s8094_s4 + $0x38] sm:$0xff] }
  0x5b   :  { %6225 = vmatprep.subr.bf16.mxu1 %v6224_v23  ;;  %6261 = vmatprep.subr.bf16.mxu0 %v6260_v54  ;;  %v5124_v30 = vld [vmem:[%s8094_s4 + $0x88] sm:$0xff]  ;;  %v7258_v31 = vpack.c.bf16 %v5104_v28, %v5103_v27  ;;  %v5125_v35 = vld [vmem:[%s8094_s4 + $0x90] sm:$0xff]  ;;  %v7307_v42 = vld [vmem:[%s8097_s7 + $0x4] sm:$0xf]  ;;  %p6871_p7 = por %p6870_p6, %p6869_p5 }
  0x5c   :  { %v5118_v41 = vld [vmem:[%s8094_s4 + $0x68] sm:$0xff]  ;;  %v5131_v50 = vld [vmem:[%s8094_s4 + $0xb0] sm:$0xff]  ;;  %v5132_v51 = vld [vmem:[%s8094_s4 + $0xb8] sm:$0xff] }
  0x5d   :  { %2389 = vperm.xlu1 %6609, %v2387_v21   ;;  %2137 = vperm.xlu0 %6608, %v2135_v22   ;;  %v7216_v21 = vld [vmem:[%s8097_s7] sm:$0xf]  ;;  %v7218_v22 = vpack.c.bf16 %v5110_v18, %v5109_v17  ;;  %v7390_v6 = vld [vmem:[#allocation2 + $0x4] ss:$0 sm:$0xff]  ;;  %v7407_v28 = vld [vmem:[#allocation5] ss:$0 sm:$0xff]  ;;  %p6872_p8 = pnand %p6871_p7, %p6865_p4 }
  0x5e   :  { %6227 = vmatpush3.bf16.msra.mxu1 %v6224_v23  ;;  %v6272_v23 = vpack.c.bf16 %v5094_v20, %v5093_v19  ;;  %v5050_v53 = vld [vmem:[#allocation2] ss:$0 sm:$0xff]  ;;  %v5077_v27 = vld [vmem:[#allocation2 + $0x3] ss:$0 sm:$0xff] }
  0x5f   :  { %6229 = vmatprep.subr.bf16.mxu1 %v6228_v29 }
  0x61   :  { %2888 = vperm.xlu1 %6609, %v2886_v24   ;;  %2644 = vperm.xlu0 %6608, %v2642_v25   ;;  %v5111_v24 = vld [vmem:[%s8094_s4 + $0x50] sm:$0xff]  ;;  %v5112_v25 = vld [vmem:[%s8094_s4 + $0x58] sm:$0xff] }
  0x62   :  { %v7236_v26 = vpack.c.bf16 %v5112_v25, %v5111_v24 }
  0xcc   :  { %v107_v37 = vpop.permute.xlu1 %106  ;;  %v101_v38 = vpop.permute.xlu0 %100 }
  0xcd   :  { %vm111_vm9 = vcmp.eq.s32.totalorder %v101_v38, %v98_v36  ;;  %vm113_vm10 = vcmp.eq.s32.totalorder %v107_v37, %v98_v36  ;;  %v7284_v37 = vpack.c.bf16 %v5106_v34, %v5105_v33 }
  0xce   :  { %v5042_v40 = vsel %vm111_vm9, 1.0, %v6901_v39  ;;  %v5044_v45 = vsel %vm113_vm10, 1.0, %v6901_v39 }
  0xcf   :  { %5548 = vmatprep.mubr.msk.f32.mxu1 %vm131_vm8, %v5042_v40  ;;  %v5117_v40 = vld [vmem:[%s8094_s4 + $0x60] sm:$0xff] }
  0xd0   :  { %v110_v43 = vpop.permute.xlu1 %109  ;;  %v104_v44 = vpop.permute.xlu0 %103 }
  0xd1   :  { %vm112_vm11 = vcmp.eq.s32.totalorder %v104_v44, %v98_v36  ;;  %vm114_vm12 = vcmp.eq.s32.totalorder %v110_v43, %v98_v36  ;;  %v5126_v36 = vld [vmem:[%s8094_s4 + $0x98] sm:$0xff]  ;;  %v7309_v43 = vpack.c.bf16 %v5118_v41, %v5117_v40  ;;  %v5119_v44 = vld [vmem:[%s8094_s4 + $0x70] sm:$0xff] }
  0xd2   :  { %v5043_v47 = vsel %vm112_vm11, 1.0, %v6901_v39  ;;  %v5045_v48 = vsel %vm114_vm12, 1.0, %v6901_v39  ;;  %v7286_v38 = vpack.c.bf16 %v5126_v36, %v5125_v35 }
  0xd3   :  { %5549 = vmatmul.mubr.msk.f32.vlgmr.msra.gmra.mrb[0].mxu1 %vm131_vm8, %v5043_v47  ;;  %v5129_v47 = vld [vmem:[%s8094_s4 + $0xa0] sm:$0xff] }
  0xd4   :  { %5551 = vmatprep.mubr.msk.f32.mxu1 %vm131_vm8, %v5044_v45  ;;  %6231 = vmatpush3.bf16.msra.mxu1 %v6228_v29  ;;  %v5123_v29 = vld [vmem:[%s8094_s4 + $0x80] sm:$0xff]  ;;  %v5120_v45 = vld [vmem:[%s8094_s4 + $0x78] sm:$0xff] }
  0xd5   :  { %6233 = vmatprep.subr.bf16.mxu1 %v6232_v46  ;;  %v7260_v32 = vpack.c.bf16 %v5124_v30, %v5123_v29 }
  0xd7   :  { %5552 = vmatmul.mubr.msk.f32.gmra.mrb[2].mxu1 %vm131_vm8, %v5045_v48  ;;  %v5130_v48 = vld [vmem:[%s8094_s4 + $0xa8] sm:$0xff]  ;;  %s6904_s4 = smov 64  }
  0xd8   :  { %6235 = vmatpush3.bf16.msra.mxu1 %v6232_v46  ;;  %v7326_v46 = vpack.c.bf16 %v5120_v45, %v5119_v44  ;;  %v7342_v49 = vpack.c.bf16 %v5130_v48, %v5129_v47 }
  0xd9   :  { %6237 = vmatprep.subr.bf16.mxu1 %v6236_v52 }
 0x1a6   :  { %v7123_v59 = vpop.f32.mrb[0].mxu1 }
 0x1a7   :  { %v7125_v60 = vpop.f32.mrb[1].mxu1 }
 0x1a8   :  { %5562 = vmatprep.mubr.msk.f32.mxu1 %vm240_vm13, %v7125_v60  ;;  %5590 = vmatprep.mubr.msk.f32.mxu0 %vm240_vm13, %v7125_v60 }
 0x1a9   :  { %5563 = vmatmul.mubr.msk.f32.vlgmr.msra.gmra.mrb[4].mxu1 %vm240_vm13, %v7123_v59  ;;  %5591 = vmatmul.mubr.msk.f32.vlgmr.msra.gmra.mrb[0].mxu0 %vm240_vm13, %v7123_v59 }
 0x1aa   :  { %6239 = vmatpush3.bf16.msra.mxu1 %v6236_v52  ;;  %6263 = vmatpush3.bf16.msra.mxu0 %v6260_v54  ;;  %v7141_v1 = vpop.f32.mrb[2].mxu1  ;;  %v7356_v52 = vpack.c.bf16 %v5132_v51, %v5131_v50  ;;  %v7371_v54 = vld [vmem:[#allocation2 + $0x2] ss:$0 sm:$0xff]  ;;  %v7419_v51 = vld [vmem:[#allocation2 + $0x5] ss:$0 sm:$0xff] }
 0x1ab   :  { %v7143_v2 = vpop.f32.mrb[3].mxu1  ;;  %6241 = vmatprep.subr.bf16.mxu1 %v6240_v61  ;;  %6265 = vmatprep.subr.bf16.mxu0 %v6264_v62 }
 0x1ac   :  { %5565 = vmatprep.mubr.msk.f32.mxu1 %vm240_vm13, %v7143_v2  ;;  %5593 = vmatprep.mubr.msk.f32.mxu0 %vm240_vm13, %v7143_v2 }
 0x1ad   :  { %5566 = vmatmul.mubr.msk.f32.gmra.mrb[6].mxu1 %vm240_vm13, %v7141_v1  ;;  %5594 = vmatmul.mubr.msk.f32.gmra.mrb[2].mxu0 %vm240_vm13, %v7141_v1 }
 0x1ae   :  { %6243 = vmatpush3.bf16.msra.mxu1 %v6240_v61  ;;  %6267 = vmatpush3.bf16.msra.mxu0 %v6264_v62 }
 0x1af   :  { %5576 = vmatprep.mubr.msk.f32.mxu1 %vm240_vm13, %v7125_v60  ;;  %5618 = vmatprep.mubr.msk.f32.mxu0 %vm240_vm13, %v7125_v60 }
 0x1b0   :  { %6253 = vmatprep.subr.bf16.mxu1 %v6252_v5  ;;  %6276 = vmatprep.subr.bf16.mxu0 %v8103_v11 }
 0x1b1   :  { %5577 = vmatmul.mubr.msk.f32.vlgmr.msra.gmra.mrb[8].mxu1 %vm240_vm13, %v7123_v59  ;;  %5619 = vmatmul.mubr.msk.f32.vlgmr.msra.gmra.mrb[4].mxu0 %vm240_vm13, %v7123_v59 }
 0x1b2   :  { %6255 = vmatpush3.bf16.msra.mxu1 %v6252_v5  ;;  %6278 = vmatpush3.bf16.msra.mxu0 %v7165_v8  ;;  %v5059_v5 = vld [vmem:[#allocation2 + $0x1] ss:$0 sm:$0xff] }
 0x1b3   :  { %5579 = vmatprep.mubr.msk.f32.mxu1 %vm240_vm13, %v7143_v2  ;;  %5621 = vmatprep.mubr.msk.f32.mxu0 %vm240_vm13, %v7143_v2 }
 0x1b4   :  { %6257 = vmatprep.subr.bf16.mxu1 %v6256_v12  ;;  %6279 = vmatprep.subr.bf16.mxu0 %v8103_v11 }
 0x1b5   :  { %5580 = vmatmul.mubr.msk.f32.gmra.mrb[10].mxu1 %vm240_vm13, %v7141_v1  ;;  %5622 = vmatmul.mubr.msk.f32.gmra.mrb[6].mxu0 %vm240_vm13, %v7141_v1 }
 0x1b6   :  { %6259 = vmatpush3.bf16.msra.mxu1 %v6256_v12  ;;  %6281 = vmatpush3.bf16.msra.mxu0 %v7189_v15 }
 0x1b7   :  { %5604 = vmatprep.mubr.msk.f32.mxu1 %vm240_vm13, %v7125_v60  ;;  %6269 = vmatprep.subr.bf16.mxu1 %v6268_v16 }
 0x1b8   :  { %5646 = vmatprep.mubr.msk.f32.mxu0 %vm6903_vm14, %v6901_v39  ;;  %6288 = vmatprep.subr.bf16.mxu0 %v8103_v11 }
 0x1b9   :  { %5605 = vmatmul.mubr.msk.f32.vlgmr.msra.gmra.mrb[12].mxu1 %vm240_vm13, %v7123_v59  ;;  %5647 = vmatmul.mubr.msk.f32.vlgmr.msra.gmra.mrb[8].mxu0 %vm240_vm13, %v7216_v21 }
 0x1ba   :  { %6271 = vmatpush3.bf16.msra.mxu1 %v6268_v16  ;;  %6290 = vmatpush3.bf16.msra.mxu0 %v7218_v22 }
 0x1bb   :  { %5607 = vmatprep.mubr.msk.f32.mxu1 %vm240_vm13, %v7143_v2  ;;  %6273 = vmatprep.subr.bf16.mxu1 %v6272_v23 }
 0x1bc   :  { %6291 = vmatprep.subr.bf16.mxu0 %v8103_v11  ;;  %5668 = vmatprep.mubr.msk.f32.mxu0 %vm6903_vm14, %v6901_v39 }
 0x1bd   :  { %5608 = vmatmul.mubr.msk.f32.gmra.mrb[14].mxu1 %vm240_vm13, %v7141_v1 }
 0x1be   :  { %6275 = vmatpush3.bf16.msra.mxu1 %v6272_v23  ;;  %6293 = vmatpush3.bf16.msra.mxu0 %v7236_v26 }
 0x1bf   :  { %5632 = vmatprep.mubr.msk.f32.mxu1 %vm240_vm13, %v7125_v60  ;;  %6282 = vmatprep.subr.bf16.mxu1 %v8103_v11 }
 0x1c0   :  { %6300 = vmatprep.subr.bf16.mxu0 %v8103_v11 }
 0x1c1   :  { %5633 = vmatmul.mubr.msk.f32.vlgmr.msra.gmra.mrb[16].mxu1 %vm240_vm13, %v7123_v59  ;;  %5669 = vmatmul.mubr.msk.f32.vlgmr.msra.gmra.mrb[10].mxu0 %vm240_vm13, %v7216_v21 }
 0x1c2   :  { %6284 = vmatpush3.bf16.msra.mxu1 %v7258_v31  ;;  %6302 = vmatpush3.bf16.msra.mxu0 %v7260_v32 }
 0x1c3   :  { %5635 = vmatprep.mubr.msk.f32.mxu1 %vm240_vm13, %v7143_v2  ;;  %6285 = vmatprep.subr.bf16.mxu1 %v8103_v11 }
 0x1c4   :  { %6303 = vmatprep.subr.bf16.mxu0 %v8103_v11  ;;  %5690 = vmatprep.mubr.msk.f32.mxu0 %vm6903_vm14, %v6901_v39 }
 0x1c5   :  { %5636 = vmatmul.mubr.msk.f32.gmra.mrb[18].mxu1 %vm240_vm13, %v7141_v1 }
 0x1c6   :  { %6287 = vmatpush3.bf16.msra.mxu1 %v7284_v37  ;;  %6305 = vmatpush3.bf16.msra.mxu0 %v7286_v38 }
 0x1c7   :  { %5657 = vmatprep.mubr.msk.f32.mxu1 %vm6903_vm14, %v6901_v39  ;;  %6294 = vmatprep.subr.bf16.mxu1 %v8103_v11 }
 0x1c8   :  { %6312 = vmatprep.subr.bf16.mxu0 %v8103_v11 }
 0x1c9   :  { %5691 = vmatmul.mubr.msk.f32.vlgmr.msra.gmra.mrb[12].mxu0 %vm240_vm13, %v7307_v42  ;;  %5658 = vmatmul.mubr.msk.f32.vlgmr.msra.gmra.mrb[20].mxu1 %vm240_vm13, %v7216_v21 }
 0x1ca   :  { %6296 = vmatpush3.bf16.msra.mxu1 %v7309_v43  ;;  %5679 = vmatprep.mubr.msk.f32.mxu1 %vm6903_vm14, %v6901_v39 }
 0x1cb   :  { %6297 = vmatprep.subr.bf16.mxu1 %v8103_v11  ;;  %6314 = vmatpush3.bf16.msra.mxu0 %v7165_v8 }
 0x1cc   :  { %6315 = vmatprep.subr.bf16.mxu0 %v8103_v11  ;;  %5712 = vmatprep.mubr.msk.f32.mxu0 %vm6903_vm14, %v6901_v39 }
 0x1ce   :  { %6299 = vmatpush3.bf16.msra.mxu1 %v7326_v46 }
 0x1cf   :  { %6306 = vmatprep.subr.bf16.mxu1 %v8103_v11  ;;  %6317 = vmatpush3.bf16.msra.mxu0 %v7189_v15 }
 0x1d0   :  { %6324 = vmatprep.subr.bf16.mxu0 %v8103_v11 }
 0x1d1   :  { %5680 = vmatmul.mubr.msk.f32.vlgmr.msra.gmra.mrb[22].mxu1 %vm240_vm13, %v7307_v42 }
 0x1d2   :  { %6308 = vmatpush3.bf16.msra.mxu1 %v7342_v49  ;;  %5701 = vmatprep.mubr.msk.f32.mxu1 %vm6903_vm14, %v6901_v39 }
 0x1d3   :  { %6309 = vmatprep.subr.bf16.mxu1 %v8103_v11 }
 0x1d6   :  { %6311 = vmatpush3.bf16.msra.mxu1 %v7356_v52 }
 0x1d7   :  { %6318 = vmatprep.subr.bf16.mxu1 %v8103_v11 }
 0x1d9   :  { %5702 = vmatmul.mubr.msk.f32.vlgmr.msra.gmra.mrb[24].mxu1 %vm240_vm13, %v7307_v42 }
 0x1da   :  { %6320 = vmatpush3.bf16.msra.mxu1 %v7258_v31  ;;  %5723 = vmatprep.mubr.msk.f32.mxu1 %vm6903_vm14, %v6901_v39 }
 0x1db   :  { %6321 = vmatprep.subr.bf16.mxu1 %v8103_v11 }
 0x1de   :  { %6323 = vmatpush3.bf16.msra.mxu1 %v7284_v37 }
 0x1df   :  { %6330 = vmatprep.subr.bf16.mxu1 %v8103_v11 }
 0x27c   :  { %v5564_v55 = vpop.f32.mrb[4].mxu1  ;;  %v5592_v56 = vpop.f32.mrb[0].mxu0 }
 0x27d   :  { %v7373_v57 = vadd.f32 %v5564_v55, %v5050_v53  ;;  %v7376_v58 = vadd.f32 %v5592_v56, %v7371_v54  ;;  %v319_v59 = vpop.f32.mrb[5].mxu1  ;;  %v7378_v60 = vpop.f32.mrb[1].mxu0 }
 0x27e   :  { %v7409_v33 = vadd.f32 %v5050_v53, %v319_v59 }
 0x280   :  { %v5567_v61 = vpop.f32.mrb[6].mxu1  ;;  %v5595_v62 = vpop.f32.mrb[2].mxu0 }
 0x281   :  { %v7380_v63 = vadd.f32 %v5567_v61, %v5050_v53  ;;  %v7383_v0 = vadd.f32 %v5595_v62, %v7371_v54  ;;  %v329_v1 = vpop.f32.mrb[7].mxu1  ;;  %v525_v2 = vpop.f32.mrb[3].mxu0 }
 0x282   :  { %v7385_v3 = vadd.f32 %v5050_v53, %v329_v1  ;;  %v7388_v4 = vadd.f32 %v7371_v54, %v525_v2 }
 0x284   :  { %v5578_v7 = vpop.f32.mrb[8].mxu1  ;;  %v5620_v9 = vpop.f32.mrb[4].mxu0 }
 0x285   :  { %v7392_v10 = vadd.f32 %v5578_v7, %v5059_v5  ;;  %v7395_v12 = vadd.f32 %v5620_v9, %v7390_v6  ;;  %v417_v13 = vpop.f32.mrb[9].mxu1  ;;  %v711_v14 = vpop.f32.mrb[5].mxu0  ;;  %v7432_v9 = vld [vmem:[#allocation5 + $0x1] ss:$0 sm:$0xff] }
 0x286   :  { %v7398_v16 = vadd.f32 %v7390_v6, %v711_v14 }
 0x288   :  { %v5581_v17 = vpop.f32.mrb[10].mxu1  ;;  %v5623_v18 = vpop.f32.mrb[6].mxu0 }
 0x289   :  { %v7400_v19 = vadd.f32 %v5581_v17, %v5059_v5  ;;  %v427_v20 = vpop.f32.mrb[11].mxu1  ;;  %v721_v23 = vpop.f32.mrb[7].mxu0 }
 0x28a   :  { %v7402_v24 = vadd.f32 %v5059_v5, %v427_v20  ;;  %v7405_v25 = vadd.f32 %v7390_v6, %v721_v23  ;;  %v7434_v23 = vadd.f32 %v5059_v5, %v417_v13 }
 0x28c   :  { %v5606_v29 = vpop.f32.mrb[12].mxu1  ;;  %v912_v30 = vpop.f32.mrb[8].mxu0 }
 0x28d   :  { %v7411_v34 = vadd.f32 %v5606_v29, %v5077_v27  ;;  %v913_v35 = vadd.f32 %v7407_v28, %v912_v30  ;;  %v613_v36 = vpop.f32.mrb[13].mxu1  ;;  %v5648_v40 = vpop.f32.mrb[9].mxu0 }
 0x28e   :  { %v7414_v41 = vadd.f32 %v5077_v27, %v613_v36 }
 0x28f   :  { %v1082_v44 = vadd.f32 %v913_v35, %v7409_v33 }
 0x290   :  { %v5609_v45 = vpop.f32.mrb[14].mxu1 }
 0x291   :  { %v5115_v47 = vmul.f32 -1.442695, %v1082_v44  ;;  %v623_v48 = vpop.f32.mrb[15].mxu1  ;;  %v7438_v44 = vld [vmem:[#allocation5 + $0x4] ss:$0 sm:$0xff] }
 0x292   :  { %v7417_v50 = vadd.f32 %v5077_v27, %v623_v48  ;;  %v7440_v48 = vld [vmem:[#allocation5 + $0x3] ss:$0 sm:$0xff] }
 0x293   :  { %6610 = vpow2.f32 %v5115_v47 }
 0x294   :  { %v5634_v53 = vpop.f32.mrb[16].mxu1  ;;  %v1078_v55 = vpop.f32.mrb[10].mxu0 }
 0x295   :  { %v7422_v56 = vadd.f32 %v5634_v53, %v7419_v51  ;;  %v809_v59 = vpop.f32.mrb[17].mxu1  ;;  %v5670_v61 = vpop.f32.mrb[11].mxu0  ;;  %v7442_v53 = vld [vmem:[#allocation5 + $0x2] ss:$0 sm:$0xff] }
 0x296   :  { %v7425_v62 = vadd.f32 %v7419_v51, %v809_v59 }
 0x298   :  { %v7427_v1 = vpop.f32.mrb[18].mxu1 }
 0x299   :  { %v819_v2 = vpop.f32.mrb[19].mxu1 }
 0x29a   :  { %v7430_v7 = vadd.f32 %v7419_v51, %v819_v2  ;;  %v7446_v2 = vadd.f32 %v5609_v45, %v5077_v27 }
 0x29c   :  { %v1275_v14 = vpop.f32.mrb[12].mxu0  ;;  %v995_v17 = vpop.f32.mrb[20].mxu1 }
 0x29d   :  { %v6611_v20 = vpop.eup %6610  ;;  %v996_v29 = vadd.f32 %v7432_v9, %v995_v17  ;;  %v5659_v30 = vpop.f32.mrb[21].mxu1  ;;  %v1276_v59 = vadd.f32 %v7438_v44, %v1275_v14  ;;  %v1079_v17 = vadd.f32 %v7442_v53, %v1078_v55  ;;  %v7455_v14 = vadd.f32 %v7371_v54, %v7378_v60 }
 0x29e   :  { %v5692_v35 = vpop.f32.mrb[13].mxu0  ;;  %v1086_v36 = vadd.f32 1.0, %v6611_v20 }
 0x29f   :  { %v1089_v40 = vadd.f32 %v996_v29, %v7434_v23  ;;  %v1373_v29 = vrot.slane %v1276_v59, 4 }
 0x2a0   :  { %6612 = vrcp.f32 %v1086_v36  ;;  %v7451_v36 = vadd.f32 %v5623_v18, %v7390_v6 }
 0x2a1   :  { %v5116_v47 = vmul.f32 -1.442695, %v1089_v40 }
 0x2a3   :  { %6614 = vpow2.f32 %v5116_v47 }
 0x2a4   :  { %v1192_v5 = vpop.f32.mrb[22].mxu1 }
 0x2a5   :  { %v1193_v13 = vadd.f32 %v7440_v48, %v1192_v5  ;;  %v5681_v61 = vpop.f32.mrb[23].mxu1  ;;  %v1375_v5 = vadd.f32 %v1373_v29, %v7451_v36  ;;  %v7461_v29 = vpop.permute.xlu0 %1106 }
 0x2a6   :  { %vm1108_vm15 = vcmp.eq.s32.totalorder %v7461_v29, 1  ;;  %v4941_v29 = vld [vmem:[%s8100_s10 + $0x10] sm:$0xff] }
 0x2a7   :  { %v1363_v20 = vrot.slane %v1193_v13, 4  ;;  %v5136_v61 = vmul.f32 -1.442695, %v1375_v5 }
 0x2a9   :  { %v1365_v30 = vadd.f32 %v1363_v20, %v7446_v2  ;;  %v7459_v20 = vld [vmem:[#allocation5 + $0x5] ss:$0 sm:$0xff] }
 0x2aa   :  { %v6613_v35 = vpop.eup %6612 }
 0x2ab   :  { %v1096_v40 = vmul.f32 %v6613_v35, %v1079_v17  ;;  %v5135_v47 = vmul.f32 -1.442695, %v1365_v30 }
 0x2ac   :  { %v1358_v27 = vpop.f32.mrb[24].mxu1 }
 0x2ad   :  { %v6615_v45 = vpop.eup %6614  ;;  %6616 = vpow2.f32 %v5135_v47  ;;  %v5703_v55 = vpop.f32.mrb[25].mxu1  ;;  %v1097_v59 = vadd.f32 %v1096_v40, %v7455_v14  ;;  %v1359_v30 = vadd.f32 %v7459_v20, %v1358_v27 }
 0x2ae   :  { %v1093_v13 = vadd.f32 1.0, %v6615_v45 }
 0x2af   :  { %v1383_v55 = vrot.slane %v1359_v30, 4 }
 0x2b0   :  { %6618 = vrcp.f32 %v1093_v13 }
 0x2b1   :  { %6620 = vtanh.f32 %v1097_v59 }
 0x2b2   :  { %6622 = vpow2.f32 %v5136_v61 }
 0x2b7   :  { %v6617_v6 = vpop.eup %6616 }
 0x2b8   :  { %v1369_v18 = vadd.f32 1.0, %v6617_v6 }
 0x2ba   :  { %v6619_v17 = vpop.eup %6618  ;;  %6624 = vrcp.f32 %v1369_v18 }
 0x2bb   :  { %v1099_v54 = vsub.f32 1.0, %v6619_v17  ;;  %v6621_v60 = vpop.eup %6620  ;;  %v1101_v40 = vmul.f32 %v6619_v17, %v7216_v21 }
 0x2bc   :  { %v6623_v47 = vpop.eup %6622 }
 0x2bd   :  { %v1100_v35 = vmul.f32 %v6621_v60, %v1099_v54  ;;  %v1379_v45 = vadd.f32 1.0, %v6623_v47  ;;  %v7501_v60 = vpop.permute.xlu1 %1397 }
 0x2be   :  { %vm1399_vm0 = vcmp.eq.s32.totalorder %v7501_v60, 1 }
 0x2bf   :  { %v1102_v5 = vadd.f32 %v1101_v40, %v1100_v35  ;;  %6626 = vrcp.f32 %v1379_v45 }
 0x2c1   :  { %v7469_v59 = vsel %vm1108_vm15, %v1102_v5, %v7216_v21  ;;  %v7482_v21 = vadd.f32 %v7427_v1, %v7419_v51  ;;  %v1390_v1 = vrot.slane %v7307_v42, 4 }
 0x2c2   :  { %5713 = vmatmul.mubr.msk.f32.vlgmr.msra.gmra.mrb[14].mxu0 %vm240_vm13, %v7469_v59  ;;  %5724 = vmatmul.mubr.msk.f32.vlgmr.msra.gmra.mrb[26].mxu1 %vm240_vm13, %v7469_v59 }
 0x2c3   :  { %6326 = vmatpush3.bf16.msra.mxu0 %v7218_v22  ;;  %5734 = vmatprep.mubr.msk.f32.mxu0 %vm6903_vm14, %v6901_v39 }
 0x2c4   :  { %v6625_v27 = vpop.eup %6624  ;;  %6327 = vmatprep.subr.bf16.mxu0 %v8103_v11  ;;  %6332 = vmatpush3.bf16.msra.mxu1 %v7309_v43 }
 0x2c5   :  { %v1385_v13 = vmul.f32 %v6625_v27, %v1383_v55  ;;  %6333 = vmatprep.subr.bf16.mxu1 %v8103_v11  ;;  %5745 = vmatprep.mubr.msk.f32.mxu1 %vm6903_vm14, %v6901_v39 }
 0x2c7   :  { %v1386_v61 = vadd.f32 %v1385_v13, %v7482_v21  ;;  %6329 = vmatpush3.bf16.msra.mxu0 %v7236_v26 }
 0x2c8   :  { %6336 = vmatprep.subr.bf16.mxu0 %v8103_v11  ;;  %6335 = vmatpush3.bf16.msra.mxu1 %v7326_v46 }
 0x2c9   :  { %6628 = vtanh.f32 %v1386_v61  ;;  %6342 = vmatprep.subr.bf16.mxu1 %v8103_v11  ;;  %v6627_v51 = vpop.eup %6626 }
 0x2ca   :  { %5735 = vmatmul.mubr.msk.f32.vlgmr.msra.gmra.mrb[16].mxu0 %vm240_vm13, %v7469_v59  ;;  %v1388_v6 = vsub.f32 1.0, %v6627_v51  ;;  %v1392_v54 = vmul.f32 %v6627_v51, %v1390_v1 }
 0x2cb   :  { %6338 = vmatpush3.bf16.msra.mxu0 %v7260_v32  ;;  %5756 = vmatprep.mubr.msk.f32.mxu0 %vm6903_vm14, %v6901_v39 }
 0x2cc   :  { %6339 = vmatprep.subr.bf16.mxu0 %v8103_v11 }
 0x2cf   :  { %6341 = vmatpush3.bf16.msra.mxu0 %v7286_v38 }
 0x2d0   :  { %6348 = vmatprep.subr.bf16.mxu0 %v8103_v11 }
 0x2d3   :  { %v6629_v18 = vpop.eup %6628 }
 0x2d4   :  { %v1389_v17 = vmul.f32 %v6629_v18, %v1388_v6 }
 0x2d6   :  { %v1393_v30 = vadd.f32 %v1392_v54, %v1389_v17 }
 0x2d8   :  { %v1401_v35 = vrot.slane %v1393_v30, 4 }
 0x2da   :  { %v7507_v40 = vsel %vm1399_vm0, %v1401_v35, %v7307_v42 }
 0x2db   :  { %5746 = vmatmul.mubr.msk.f32.vlgmr.msra.gmra.mrb[28].mxu1 %vm240_vm13, %v7507_v40  ;;  %5757 = vmatmul.mubr.msk.f32.vlgmr.msra.gmra.mrb[18].mxu0 %vm240_vm13, %v7507_v40 }
 0x2dc   :  { %6344 = vmatpush3.bf16.msra.mxu1 %v7342_v49  ;;  %5767 = vmatprep.mubr.msk.f32.mxu1 %vm6903_vm14, %v6901_v39 }
 0x2dd   :  { %6345 = vmatprep.subr.bf16.mxu1 %v8103_v11  ;;  %6350 = vmatpush3.bf16.msra.mxu0 %v7165_v8 }
 0x2de   :  { %6351 = vmatprep.subr.bf16.mxu0 %v8103_v11  ;;  %5778 = vmatprep.mubr.msk.f32.mxu0 %vm6903_vm14, %v6901_v39 }
 0x2e0   :  { %6347 = vmatpush3.bf16.msra.mxu1 %v7356_v52 }
 0x2e1   :  { %6354 = vmatprep.subr.bf16.mxu1 %v8103_v11  ;;  %6353 = vmatpush3.bf16.msra.mxu0 %v7189_v15 }
 0x2e2   :  { %6360 = vmatprep.subr.bf16.mxu0 %v8103_v11 }
 0x2e3   :  { %5768 = vmatmul.mubr.msk.f32.vlgmr.msra.gmra.mrb[30].mxu1 %vm240_vm13, %v7507_v40 }
 0x2e4   :  { %6356 = vmatpush3.bf16.msra.mxu1 %v7258_v31  ;;  %5789 = vmatprep.mubr.msk.f32.mxu1 %vm6903_vm14, %v6901_v39 }
 0x2e5   :  { %6357 = vmatprep.subr.bf16.mxu1 %v8103_v11 }
 0x2e8   :  { %6359 = vmatpush3.bf16.msra.mxu1 %v7284_v37 }
 0x2e9   :  { %6366 = vmatprep.subr.bf16.mxu1 %v8103_v11 }
 0x395   :  { %v1473_v42 = vpop.f32.mrb[14].mxu0  ;;  %v1543_v47 = vpop.f32.mrb[26].mxu1 }
 0x396   :  { %v1474_v5 = vadd.f32 %v7407_v28, %v1473_v42  ;;  %v1544_v45 = vadd.f32 %v7432_v9, %v1543_v47  ;;  %v5714_v55 = vpop.f32.mrb[15].mxu0  ;;  %v5725_v27 = vpop.f32.mrb[27].mxu1 }
 0x398   :  { %v1618_v13 = vrot.slane %v1474_v5, 4  ;;  %v1628_v61 = vrot.slane %v1544_v45, 4 }
 0x39a   :  { %v1620_v51 = vadd.f32 %v1618_v13, %v7409_v33  ;;  %v1630_v6 = vadd.f32 %v1628_v61, %v7434_v23 }
 0x39c   :  { %v5140_v1 = vmul.f32 -1.442695, %v1620_v51  ;;  %v5141_v54 = vmul.f32 -1.442695, %v1630_v6 }
 0x39d   :  { %v1613_v18 = vpop.f32.mrb[16].mxu0 }
 0x39e   :  { %6630 = vpow2.f32 %v5140_v1  ;;  %v5736_v17 = vpop.f32.mrb[17].mxu0  ;;  %v1614_v33 = vadd.f32 %v7442_v53, %v1613_v18 }
 0x39f   :  { %6632 = vpow2.f32 %v5141_v54 }
 0x3a0   :  { %v1638_v51 = vrot.slane %v1614_v33, 4 }
 0x3a8   :  { %v6631_v30 = vpop.eup %6630 }
 0x3a9   :  { %v1624_v35 = vadd.f32 1.0, %v6631_v30  ;;  %v6633_v47 = vpop.eup %6632 }
 0x3aa   :  { %v1634_v13 = vadd.f32 1.0, %v6633_v47 }
 0x3ab   :  { %6634 = vrcp.f32 %v1624_v35 }
 0x3ae   :  { %v1728_v42 = vpop.f32.mrb[28].mxu1  ;;  %v1798_v11 = vpop.f32.mrb[18].mxu0 }
 0x3af   :  { %v1729_v55 = vadd.f32 %v7440_v48, %v1728_v42  ;;  %v5747_v5 = vpop.f32.mrb[29].mxu1  ;;  %v5758_v45 = vpop.f32.mrb[19].mxu0  ;;  %v1799_v27 = vadd.f32 %v7438_v44, %v1798_v11 }
 0x3b1   :  { %v1872_v23 = vadd.f32 %v1729_v55, %v7446_v2  ;;  %v1879_v1 = vadd.f32 %v1799_v27, %v7451_v36  ;;  %v1645_v2 = vrot.slane %v7469_v59, 4  ;;  %v7544_v27 = vpop.permute.xlu0 %1652 }
 0x3b2   :  { %vm1654_vm1 = vcmp.eq.s32.totalorder %v7544_v27, 1 }
 0x3b3   :  { %v5145_v61 = vmul.f32 -1.442695, %v1872_v23  ;;  %v5146_v42 = vmul.f32 -1.442695, %v1879_v1 }
 0x3b5   :  { %v6635_v6 = vpop.eup %6634  ;;  %6636 = vpow2.f32 %v5145_v61 }
 0x3b6   :  { %6638 = vrcp.f32 %v1634_v13  ;;  %v1640_v17 = vmul.f32 %v6635_v6, %v1638_v51  ;;  %v1868_v54 = vpop.f32.mrb[30].mxu1 }
 0x3b7   :  { %v5769_v30 = vpop.f32.mrb[31].mxu1 }
 0x3b8   :  { %v1641_v35 = vadd.f32 %v1640_v17, %v7455_v14  ;;  %v1869_v14 = vadd.f32 %v7459_v20, %v1868_v54  ;;  %v8105_v17 = vmov 0.0|0.0  }
 0x3ba   :  { %6640 = vtanh.f32 %v1641_v35  ;;  %v7578_v35 = vpop.permute.xlu1 %1896 }
 0x3bb   :  { %6642 = vpow2.f32 %v5146_v42  ;;  %vm1898_vm2 = vcmp.eq.s32.totalorder %v7578_v35, 1 }
 0x3bf   :  { %v6637_v18 = vpop.eup %6636 }
 0x3c0   :  { %v6639_v11 = vpop.eup %6638  ;;  %v1876_v5 = vadd.f32 1.0, %v6637_v18 }
 0x3c1   :  { %v1643_v47 = vsub.f32 1.0, %v6639_v11  ;;  %v1647_v45 = vmul.f32 %v6639_v11, %v1645_v2 }
 0x3c2   :  { %6644 = vrcp.f32 %v1876_v5 }
 0x3c4   :  { %v6641_v55 = vpop.eup %6640 }
 0x3c5   :  { %v1644_v36 = vmul.f32 %v6641_v55, %v1643_v47  ;;  %v6643_v33 = vpop.eup %6642 }
 0x3c6   :  { %v1883_v13 = vadd.f32 1.0, %v6643_v33 }
 0x3c7   :  { %v1648_v23 = vadd.f32 %v1647_v45, %v1644_v36 }
 0x3c8   :  { %6646 = vrcp.f32 %v1883_v13 }
 0x3c9   :  { %v1656_v61 = vrot.slane %v1648_v23, 4 }
 0x3cb   :  { %v7551_v51 = vsel %vm1654_vm1, %v1656_v61, %v7469_v59 }
 0x3cc   :  { %v6645_v1 = vpop.eup %6644  ;;  %5779 = vmatmul.mubr.msk.f32.vlgmr.msra.gmra.mrb[20].mxu0 %vm240_vm13, %v7551_v51  ;;  %5790 = vmatmul.mubr.msk.f32.vlgmr.msra.gmra.mrb[32].mxu1 %vm240_vm13, %v7551_v51 }
 0x3cd   :  { %v1886_v6 = vmul.f32 %v6645_v1, %v1869_v14  ;;  %6362 = vmatpush3.bf16.msra.mxu0 %v7218_v22  ;;  %5800 = vmatprep.mubr.msk.f32.mxu0 %vm6903_vm14, %v6901_v39 }
 0x3ce   :  { %6363 = vmatprep.subr.bf16.mxu0 %v8105_v17  ;;  %6368 = vmatpush3.bf16.msra.mxu1 %v7309_v43 }
 0x3cf   :  { %v1887_v59 = vadd.f32 %v1886_v6, %v7482_v21  ;;  %6369 = vmatprep.subr.bf16.mxu1 %v8105_v17  ;;  %5811 = vmatprep.mubr.msk.f32.mxu1 %vm6903_vm14, %v6901_v39 }
 0x3d1   :  { %6648 = vtanh.f32 %v1887_v59  ;;  %6365 = vmatpush3.bf16.msra.mxu0 %v7236_v26 }
 0x3d2   :  { %6372 = vmatprep.subr.bf16.mxu0 %v8105_v17  ;;  %6371 = vmatpush3.bf16.msra.mxu1 %v7326_v46  ;;  %v6647_v21 = vpop.eup %6646 }
 0x3d3   :  { %6378 = vmatprep.subr.bf16.mxu1 %v8105_v17  ;;  %v1889_v54 = vsub.f32 1.0, %v6647_v21  ;;  %v1891_v18 = vmul.f32 %v6647_v21, %v7507_v40 }
 0x3d4   :  { %5801 = vmatmul.mubr.msk.f32.vlgmr.msra.gmra.mrb[22].mxu0 %vm240_vm13, %v7551_v51 }
 0x3d5   :  { %6374 = vmatpush3.bf16.msra.mxu0 %v7260_v32  ;;  %5822 = vmatprep.mubr.msk.f32.mxu0 %vm6903_vm14, %v6901_v39 }
 0x3d6   :  { %6375 = vmatprep.subr.bf16.mxu0 %v8105_v17 }
 0x3d9   :  { %6377 = vmatpush3.bf16.msra.mxu0 %v7286_v38 }
 0x3da   :  { %6384 = vmatprep.subr.bf16.mxu0 %v8105_v17 }
 0x3db   :  { %v6649_v30 = vpop.eup %6648 }
 0x3dc   :  { %v1890_v42 = vmul.f32 %v6649_v30, %v1889_v54 }
 0x3de   :  { %v1892_v11 = vadd.f32 %v1891_v18, %v1890_v42 }
 0x3e0   :  { %v7585_v5 = vsel %vm1898_vm2, %v1892_v11, %v7507_v40 }
 0x3e1   :  { %5812 = vmatmul.mubr.msk.f32.vlgmr.msra.gmra.mrb[34].mxu1 %vm240_vm13, %v7585_v5  ;;  %5823 = vmatmul.mubr.msk.f32.vlgmr.msra.gmra.mrb[24].mxu0 %vm240_vm13, %v7585_v5 }
 0x3e2   :  { %6380 = vmatpush3.bf16.msra.mxu1 %v7342_v49  ;;  %5833 = vmatprep.mubr.msk.f32.mxu1 %vm6903_vm14, %v6901_v39 }
 0x3e3   :  { %6381 = vmatprep.subr.bf16.mxu1 %v8105_v17  ;;  %6386 = vmatpush3.bf16.msra.mxu0 %v7165_v8 }
 0x3e4   :  { %6387 = vmatprep.subr.bf16.mxu0 %v8105_v17  ;;  %5844 = vmatprep.mubr.msk.f32.mxu0 %vm6903_vm14, %v6901_v39 }
 0x3e6   :  { %6383 = vmatpush3.bf16.msra.mxu1 %v7356_v52 }
 0x3e7   :  { %6390 = vmatprep.subr.bf16.mxu1 %v8105_v17  ;;  %6389 = vmatpush3.bf16.msra.mxu0 %v7189_v15 }
 0x3e8   :  { %6396 = vmatprep.subr.bf16.mxu0 %v8105_v17 }
 0x3e9   :  { %5834 = vmatmul.mubr.msk.f32.vlgmr.msra.gmra.mrb[36].mxu1 %vm240_vm13, %v7585_v5 }
 0x3ea   :  { %6392 = vmatpush3.bf16.msra.mxu1 %v7258_v31  ;;  %5855 = vmatprep.mubr.msk.f32.mxu1 %vm6903_vm14, %v6901_v39 }
 0x3eb   :  { %6393 = vmatprep.subr.bf16.mxu1 %v8105_v17 }
 0x3ee   :  { %6395 = vmatpush3.bf16.msra.mxu1 %v7284_v37 }
 0x3ef   :  { %6402 = vmatprep.subr.bf16.mxu1 %v8105_v17 }
 0x49f   :  { %v1969_v40 = vpop.f32.mrb[20].mxu0  ;;  %v2039_v2 = vpop.f32.mrb[32].mxu1 }
 0x4a0   :  { %v1970_v47 = vadd.f32 %v7407_v28, %v1969_v40  ;;  %v5780_v55 = vpop.f32.mrb[21].mxu0  ;;  %v5791_v36 = vpop.f32.mrb[33].mxu1  ;;  %v2040_v45 = vadd.f32 %v7432_v9, %v2039_v2 }
 0x4a2   :  { %v2113_v33 = vadd.f32 %v1970_v47, %v7373_v57  ;;  %v2120_v13 = vadd.f32 %v2040_v45, %v7392_v10 }
 0x4a4   :  { %v5150_v23 = vmul.f32 -1.442695, %v2113_v33  ;;  %v5151_v1 = vmul.f32 -1.442695, %v2120_v13 }
 0x4a6   :  { %6650 = vpow2.f32 %v5150_v23 }
 0x4a7   :  { %v2109_v61 = vpop.f32.mrb[22].mxu0  ;;  %6652 = vpow2.f32 %v5151_v1 }
 0x4a8   :  { %v5802_v14 = vpop.f32.mrb[23].mxu0  ;;  %v2110_v33 = vadd.f32 %v7442_v53, %v2109_v61  ;;  %v7621_v61 = vpop.permute.xlu0 %2137 }
 0x4a9   :  { %vm2139_vm3 = vcmp.eq.s32.totalorder %v7621_v61, 1 }
 0x4b0   :  { %v6651_v6 = vpop.eup %6650 }
 0x4b1   :  { %v2117_v59 = vadd.f32 1.0, %v6651_v6  ;;  %v6653_v40 = vpop.eup %6652 }
 0x4b2   :  { %v2124_v36 = vadd.f32 1.0, %v6653_v40 }
 0x4b3   :  { %6654 = vrcp.f32 %v2117_v59 }
 0x4b4   :  { %v2210_v21 = vpop.f32.mrb[34].mxu1  ;;  %v2280_v54 = vpop.f32.mrb[24].mxu0 }
 0x4b5   :  { %v2211_v30 = vadd.f32 %v7440_v48, %v2210_v21  ;;  %v2281_v42 = vadd.f32 %v7438_v44, %v2280_v54  ;;  %v5813_v18 = vpop.f32.mrb[35].mxu1  ;;  %v5824_v11 = vpop.f32.mrb[25].mxu0 }
 0x4b7   :  { %v2355_v2 = vrot.slane %v2211_v30, 4  ;;  %v2365_v47 = vrot.slane %v2281_v42, 4 }
 0x4b9   :  { %v2357_v55 = vadd.f32 %v2355_v2, %v7417_v50  ;;  %v2367_v23 = vadd.f32 %v2365_v47, %v7405_v25 }
 0x4bb   :  { %v5155_v45 = vmul.f32 -1.442695, %v2357_v55  ;;  %v5156_v21 = vmul.f32 -1.442695, %v2367_v23 }
 0x4bc   :  { %v2350_v13 = vpop.f32.mrb[36].mxu1 }
 0x4bd   :  { %v6655_v14 = vpop.eup %6654  ;;  %6656 = vpow2.f32 %v5155_v45  ;;  %v5835_v1 = vpop.f32.mrb[37].mxu1  ;;  %v2351_v55 = vadd.f32 %v7459_v20, %v2350_v13 }
 0x4be   :  { %6658 = vrcp.f32 %v2124_v36  ;;  %v2127_v6 = vmul.f32 %v6655_v14, %v2110_v33 }
 0x4bf   :  { %v2375_v23 = vrot.slane %v2351_v55, 4 }
 0x4c0   :  { %v2128_v59 = vadd.f32 %v2127_v6, %v7376_v58  ;;  %v2382_v6 = vrot.slane %v7585_v5, 4 }
 0x4c2   :  { %6660 = vtanh.f32 %v2128_v59 }
 0x4c3   :  { %6662 = vpow2.f32 %v5156_v21 }
 0x4c7   :  { %v6657_v54 = vpop.eup %6656 }
 0x4c8   :  { %v6659_v30 = vpop.eup %6658  ;;  %v2361_v42 = vadd.f32 1.0, %v6657_v54 }
 0x4c9   :  { %v2130_v18 = vsub.f32 1.0, %v6659_v30  ;;  %v2132_v2 = vmul.f32 %v6659_v30, %v7551_v51 }
 0x4ca   :  { %6664 = vrcp.f32 %v2361_v42  ;;  %v7657_v42 = vpop.permute.xlu1 %2389 }
 0x4cb   :  { %vm2391_vm4 = vcmp.eq.s32.totalorder %v7657_v42, 1 }
 0x4cc   :  { %v6661_v11 = vpop.eup %6660 }
 0x4cd   :  { %v2131_v40 = vmul.f32 %v6661_v11, %v2130_v18  ;;  %v6663_v47 = vpop.eup %6662 }
 0x4ce   :  { %v2371_v45 = vadd.f32 1.0, %v6663_v47 }
 0x4cf   :  { %v2133_v36 = vadd.f32 %v2132_v2, %v2131_v40 }
 0x4d0   :  { %6666 = vrcp.f32 %v2371_v45 }
 0x4d1   :  { %v7629_v33 = vsel %vm2139_vm3, %v2133_v36, %v7551_v51 }
 0x4d2   :  { %5845 = vmatmul.mubr.msk.f32.vlgmr.msra.gmra.mrb[26].mxu0 %vm240_vm13, %v7629_v33  ;;  %5856 = vmatmul.mubr.msk.f32.vlgmr.msra.gmra.mrb[38].mxu1 %vm240_vm13, %v7629_v33 }
 0x4d3   :  { %6398 = vmatpush3.bf16.msra.mxu0 %v7218_v22  ;;  %5866 = vmatprep.mubr.msk.f32.mxu0 %vm6903_vm14, %v6901_v39 }
 0x4d4   :  { %v6665_v13 = vpop.eup %6664  ;;  %6399 = vmatprep.subr.bf16.mxu0 %v8105_v17  ;;  %6404 = vmatpush3.bf16.msra.mxu1 %v7309_v43 }
 0x4d5   :  { %v2377_v51 = vmul.f32 %v6665_v13, %v2375_v23  ;;  %6405 = vmatprep.subr.bf16.mxu1 %v8105_v17  ;;  %5877 = vmatprep.mubr.msk.f32.mxu1 %vm6903_vm14, %v6901_v39 }
 0x4d7   :  { %v2378_v14 = vadd.f32 %v2377_v51, %v7430_v7  ;;  %6401 = vmatpush3.bf16.msra.mxu0 %v7236_v26 }
 0x4d8   :  { %6408 = vmatprep.subr.bf16.mxu0 %v8105_v17  ;;  %6407 = vmatpush3.bf16.msra.mxu1 %v7326_v46 }
 0x4d9   :  { %6668 = vtanh.f32 %v2378_v14  ;;  %6414 = vmatprep.subr.bf16.mxu1 %v8105_v17 }
 0x4da   :  { %5867 = vmatmul.mubr.msk.f32.vlgmr.msra.gmra.mrb[28].mxu0 %vm240_vm13, %v7629_v33  ;;  %v6667_v1 = vpop.eup %6666 }
 0x4db   :  { %6410 = vmatpush3.bf16.msra.mxu0 %v7260_v32  ;;  %5888 = vmatprep.mubr.msk.f32.mxu0 %vm6903_vm14, %v6901_v39  ;;  %v2380_v59 = vsub.f32 1.0, %v6667_v1  ;;  %v2384_v30 = vmul.f32 %v6667_v1, %v2382_v6 }
 0x4dc   :  { %6411 = vmatprep.subr.bf16.mxu0 %v8105_v17 }
 0x4df   :  { %6413 = vmatpush3.bf16.msra.mxu0 %v7286_v38 }
 0x4e0   :  { %6420 = vmatprep.subr.bf16.mxu0 %v8105_v17 }
 0x4e3   :  { %v6669_v21 = vpop.eup %6668 }
 0x4e4   :  { %v2381_v54 = vmul.f32 %v6669_v21, %v2380_v59 }
 0x4e6   :  { %v2385_v18 = vadd.f32 %v2384_v30, %v2381_v54 }
 0x4e8   :  { %v2393_v11 = vrot.slane %v2385_v18, 4 }
 0x4ea   :  { %v7663_v40 = vsel %vm2391_vm4, %v2393_v11, %v7585_v5 }
 0x4eb   :  { %5878 = vmatmul.mubr.msk.f32.vlgmr.msra.gmra.mrb[40].mxu1 %vm240_vm13, %v7663_v40  ;;  %5889 = vmatmul.mubr.msk.f32.vlgmr.msra.gmra.mrb[30].mxu0 %vm240_vm13, %v7663_v40 }
 0x4ec   :  { %6416 = vmatpush3.bf16.msra.mxu1 %v7342_v49  ;;  %5899 = vmatprep.mubr.msk.f32.mxu1 %vm6903_vm14, %v6901_v39 }
 0x4ed   :  { %6417 = vmatprep.subr.bf16.mxu1 %v8105_v17  ;;  %6422 = vmatpush3.bf16.msra.mxu0 %v7165_v8 }
 0x4ee   :  { %6423 = vmatprep.subr.bf16.mxu0 %v8105_v17  ;;  %5910 = vmatprep.mubr.msk.f32.mxu0 %vm6903_vm14, %v6901_v39 }
 0x4f0   :  { %6419 = vmatpush3.bf16.msra.mxu1 %v7356_v52 }
 0x4f1   :  { %6426 = vmatprep.subr.bf16.mxu1 %v8105_v17  ;;  %6425 = vmatpush3.bf16.msra.mxu0 %v7189_v15 }
 0x4f2   :  { %6432 = vmatprep.subr.bf16.mxu0 %v8105_v17 }
 0x4f3   :  { %5900 = vmatmul.mubr.msk.f32.vlgmr.msra.gmra.mrb[42].mxu1 %vm240_vm13, %v7663_v40 }
 0x4f4   :  { %6428 = vmatpush3.bf16.msra.mxu1 %v7258_v31  ;;  %5921 = vmatprep.mubr.msk.f32.mxu1 %vm6903_vm14, %v6901_v39 }
 0x4f5   :  { %6429 = vmatprep.subr.bf16.mxu1 %v8105_v17 }
 0x4f8   :  { %6431 = vmatpush3.bf16.msra.mxu1 %v7284_v37 }
 0x4f9   :  { %6438 = vmatprep.subr.bf16.mxu1 %v8105_v17 }
 0x5a5   :  { %v2465_v5 = vpop.f32.mrb[26].mxu0  ;;  %v2535_v2 = vpop.f32.mrb[38].mxu1 }
 0x5a6   :  { %v2466_v47 = vadd.f32 %v7407_v28, %v2465_v5  ;;  %v2536_v55 = vadd.f32 %v7432_v9, %v2535_v2  ;;  %v5846_v36 = vpop.f32.mrb[27].mxu0  ;;  %v5857_v45 = vpop.f32.mrb[39].mxu1 }
 0x5a8   :  { %v2610_v23 = vrot.slane %v2466_v47, 4  ;;  %v2620_v13 = vrot.slane %v2536_v55, 4 }
 0x5aa   :  { %v2612_v51 = vadd.f32 %v2610_v23, %v7373_v57  ;;  %v2622_v1 = vadd.f32 %v2620_v13, %v7392_v10 }
 0x5ac   :  { %v5160_v14 = vmul.f32 -1.442695, %v2612_v51  ;;  %v5161_v21 = vmul.f32 -1.442695, %v2622_v1 }
 0x5ad   :  { %v2605_v6 = vpop.f32.mrb[28].mxu0 }
 0x5ae   :  { %6670 = vpow2.f32 %v5160_v14  ;;  %v5868_v59 = vpop.f32.mrb[29].mxu0  ;;  %v2606_v57 = vadd.f32 %v7442_v53, %v2605_v6 }
 0x5af   :  { %6672 = vpow2.f32 %v5161_v21 }
 0x5b0   :  { %v2630_v13 = vrot.slane %v2606_v57, 4  ;;  %v7700_v57 = vpop.permute.xlu0 %2644 }
 0x5b1   :  { %vm2646_vm5 = vcmp.eq.s32.totalorder %v7700_v57, 1 }
 0x5b8   :  { %v6671_v54 = vpop.eup %6670 }
 0x5b9   :  { %v2616_v30 = vadd.f32 1.0, %v6671_v54  ;;  %v6673_v5 = vpop.eup %6672 }
 0x5ba   :  { %v2626_v45 = vadd.f32 1.0, %v6673_v5 }
 0x5bb   :  { %6674 = vrcp.f32 %v2616_v30 }
 0x5be   :  { %v2720_v18 = vpop.f32.mrb[40].mxu1  ;;  %v2790_v11 = vpop.f32.mrb[30].mxu0 }
 0x5bf   :  { %v2721_v2 = vadd.f32 %v7440_v48, %v2720_v18  ;;  %v5879_v47 = vpop.f32.mrb[41].mxu1  ;;  %v5890_v55 = vpop.f32.mrb[31].mxu0  ;;  %v2791_v36 = vadd.f32 %v7438_v44, %v2790_v11 }
 0x5c1   :  { %v2864_v10 = vadd.f32 %v2721_v2, %v7417_v50  ;;  %v2871_v51 = vadd.f32 %v2791_v36, %v7405_v25  ;;  %v2637_v50 = vrot.slane %v7629_v33, 4 }
 0x5c3   :  { %v5165_v23 = vmul.f32 -1.442695, %v2864_v10  ;;  %v5166_v30 = vmul.f32 -1.442695, %v2871_v51 }
 0x5c5   :  { %v6675_v14 = vpop.eup %6674  ;;  %6676 = vpow2.f32 %v5165_v23 }
 0x5c6   :  { %6678 = vrcp.f32 %v2626_v45  ;;  %v2632_v1 = vmul.f32 %v6675_v14, %v2630_v13  ;;  %v2860_v59 = vpop.f32.mrb[42].mxu1 }
 0x5c7   :  { %v5901_v21 = vpop.f32.mrb[43].mxu1 }
 0x5c8   :  { %v2633_v54 = vadd.f32 %v2632_v1, %v7376_v58  ;;  %v2861_v58 = vadd.f32 %v7459_v20, %v2860_v59  ;;  %v7734_v59 = vpop.permute.xlu1 %2888 }
 0x5c9   :  { %vm2890_vm6 = vcmp.eq.s32.totalorder %v7734_v59, 1 }
 0x5ca   :  { %6680 = vtanh.f32 %v2633_v54 }
 0x5cb   :  { %6682 = vpow2.f32 %v5166_v30 }
 0x5cf   :  { %v6677_v6 = vpop.eup %6676 }
 0x5d0   :  { %v6679_v18 = vpop.eup %6678  ;;  %v2868_v11 = vadd.f32 1.0, %v6677_v6 }
 0x5d1   :  { %v2635_v5 = vsub.f32 1.0, %v6679_v18  ;;  %v2639_v47 = vmul.f32 %v6679_v18, %v2637_v50 }
 0x5d2   :  { %6684 = vrcp.f32 %v2868_v11 }
 0x5d4   :  { %v6681_v2 = vpop.eup %6680 }
 0x5d5   :  { %v2636_v25 = vmul.f32 %v6681_v2, %v2635_v5  ;;  %v6683_v55 = vpop.eup %6682 }
 0x5d6   :  { %v2875_v10 = vadd.f32 1.0, %v6683_v55 }
 0x5d7   :  { %v2640_v36 = vadd.f32 %v2639_v47, %v2636_v25 }
 0x5d8   :  { %6686 = vrcp.f32 %v2875_v10 }
 0x5d9   :  { %v2648_v45 = vrot.slane %v2640_v36, 4 }
 0x5db   :  { %v7707_v23 = vsel %vm2646_vm5, %v2648_v45, %v7629_v33 }
 0x5dc   :  { %v6685_v13 = vpop.eup %6684  ;;  %5911 = vmatmul.mubr.msk.f32.vlgmr.msra.gmra.mrb[32].mxu0 %vm240_vm13, %v7707_v23  ;;  %5922 = vmatmul.mubr.msk.f32.vlgmr.msra.gmra.mrb[44].mxu1 %vm240_vm13, %v7707_v23 }
 0x5dd   :  { %v2878_v51 = vmul.f32 %v6685_v13, %v2861_v58  ;;  %6434 = vmatpush3.bf16.msra.mxu0 %v7218_v22  ;;  %5932 = vmatprep.mubr.msk.f32.mxu0 %vm6903_vm14, %v6901_v39 }
 0x5de   :  { %6435 = vmatprep.subr.bf16.mxu0 %v8105_v17  ;;  %6440 = vmatpush3.bf16.msra.mxu1 %v7309_v43 }
 0x5df   :  { %v2879_v33 = vadd.f32 %v2878_v51, %v7430_v7  ;;  %6441 = vmatprep.subr.bf16.mxu1 %v8105_v17  ;;  %5943 = vmatprep.mubr.msk.f32.mxu1 %vm6903_vm14, %v6901_v39 }
 0x5e1   :  { %6688 = vtanh.f32 %v2879_v33  ;;  %6437 = vmatpush3.bf16.msra.mxu0 %v7236_v26 }
 0x5e2   :  { %6444 = vmatprep.subr.bf16.mxu0 %v8105_v17  ;;  %6443 = vmatpush3.bf16.msra.mxu1 %v7326_v46  ;;  %v6687_v7 = vpop.eup %6686 }
 0x5e3   :  { %6450 = vmatprep.subr.bf16.mxu1 %v8105_v17  ;;  %v2881_v14 = vsub.f32 1.0, %v6687_v7  ;;  %v2883_v54 = vmul.f32 %v6687_v7, %v7663_v40 }
 0x5e4   :  { %5933 = vmatmul.mubr.msk.f32.vlgmr.msra.gmra.mrb[34].mxu0 %vm240_vm13, %v7707_v23 }
 0x5e5   :  { %6446 = vmatpush3.bf16.msra.mxu0 %v7260_v32  ;;  %5954 = vmatprep.mubr.msk.f32.mxu0 %vm6903_vm14, %v6901_v39 }
 0x5e6   :  { %6447 = vmatprep.subr.bf16.mxu0 %v8105_v17 }
 0x5e9   :  { %6449 = vmatpush3.bf16.msra.mxu0 %v7286_v38 }
 0x5ea   :  { %6456 = vmatprep.subr.bf16.mxu0 %v8105_v17 }
 0x5eb   :  { %v6689_v1 = vpop.eup %6688 }
 0x5ec   :  { %v2882_v21 = vmul.f32 %v6689_v1, %v2881_v14 }
 0x5ee   :  { %v2884_v30 = vadd.f32 %v2883_v54, %v2882_v21 }
 0x5f0   :  { %v7741_v6 = vsel %vm2890_vm6, %v2884_v30, %v7663_v40 }
 0x5f1   :  { %5944 = vmatmul.mubr.msk.f32.vlgmr.msra.gmra.mrb[46].mxu1 %vm240_vm13, %v7741_v6  ;;  %5955 = vmatmul.mubr.msk.f32.vlgmr.msra.gmra.mrb[36].mxu0 %vm240_vm13, %v7741_v6 }
 0x5f2   :  { %6452 = vmatpush3.bf16.msra.mxu1 %v7342_v49  ;;  %5965 = vmatprep.mubr.msk.f32.mxu1 %vm6903_vm14, %v6901_v39 }
 0x5f3   :  { %6453 = vmatprep.subr.bf16.mxu1 %v8105_v17  ;;  %6458 = vmatpush3.bf16.msra.mxu0 %v7165_v8 }
 0x5f4   :  { %6459 = vmatprep.subr.bf16.mxu0 %v8105_v17  ;;  %5976 = vmatprep.mubr.msk.f32.mxu0 %vm6903_vm14, %v6901_v39 }
 0x5f6   :  { %6455 = vmatpush3.bf16.msra.mxu1 %v7356_v52 }
 0x5f7   :  { %6462 = vmatprep.subr.bf16.mxu1 %v8105_v17  ;;  %6461 = vmatpush3.bf16.msra.mxu0 %v7189_v15 }
 0x5f8   :  { %6468 = vmatprep.subr.bf16.mxu0 %v8105_v17 }
 0x5f9   :  { %5966 = vmatmul.mubr.msk.f32.vlgmr.msra.gmra.mrb[48].mxu1 %vm240_vm13, %v7741_v6 }
 0x5fa   :  { %6464 = vmatpush3.bf16.msra.mxu1 %v7258_v31  ;;  %5987 = vmatprep.mubr.msk.f32.mxu1 %vm6903_vm14, %v6901_v39 }
 0x5fb   :  { %6465 = vmatprep.subr.bf16.mxu1 %v8105_v17 }
 0x5fe   :  { %6467 = vmatpush3.bf16.msra.mxu1 %v7284_v37 }
 0x5ff   :  { %6474 = vmatprep.subr.bf16.mxu1 %v8105_v17 }
 0x6af   :  { %v2961_v40 = vpop.f32.mrb[32].mxu0  ;;  %v3031_v18 = vpop.f32.mrb[44].mxu1 }
 0x6b0   :  { %v2962_v11 = vadd.f32 %v7407_v28, %v2961_v40  ;;  %v5912_v50 = vpop.f32.mrb[33].mxu0  ;;  %v5923_v5 = vpop.f32.mrb[45].mxu1  ;;  %v3032_v2 = vadd.f32 %v7432_v9, %v3031_v18 }
 0x6b2   :  { %v3105_v25 = vadd.f32 %v2962_v11, %v7385_v3  ;;  %v3112_v55 = vadd.f32 %v3032_v2, %v7402_v24 }
 0x6b4   :  { %v5170_v47 = vmul.f32 -1.442695, %v3105_v25  ;;  %v5171_v45 = vmul.f32 -1.442695, %v3112_v55 }
 0x6b6   :  { %6690 = vpow2.f32 %v5170_v47 }
 0x6b7   :  { %v3101_v36 = vpop.f32.mrb[34].mxu0  ;;  %6692 = vpow2.f32 %v5171_v45 }
 0x6b8   :  { %v5934_v10 = vpop.f32.mrb[35].mxu0  ;;  %v3102_v11 = vadd.f32 %v7442_v53, %v3101_v36 }
 0x6c0   :  { %v6691_v58 = vpop.eup %6690 }
 0x6c1   :  { %v3109_v13 = vadd.f32 1.0, %v6691_v58  ;;  %v6693_v1 = vpop.eup %6692 }
 0x6c2   :  { %v3116_v40 = vadd.f32 1.0, %v6693_v1 }
 0x6c3   :  { %6694 = vrcp.f32 %v3109_v13 }
 0x6c4   :  { %v3196_v51 = vpop.f32.mrb[46].mxu1  ;;  %v3266_v33 = vpop.f32.mrb[36].mxu0 }
 0x6c5   :  { %v3197_v28 = vadd.f32 %v7440_v48, %v3196_v51  ;;  %v3267_v7 = vadd.f32 %v7438_v44, %v3266_v33  ;;  %v5945_v9 = vpop.f32.mrb[47].mxu1  ;;  %v5956_v14 = vpop.f32.mrb[37].mxu0 }
 0x6c7   :  { %v3341_v21 = vrot.slane %v3197_v28, 4  ;;  %v3351_v54 = vrot.slane %v3267_v7, 4 }
 0x6c9   :  { %v3343_v30 = vadd.f32 %v3341_v21, %v7411_v34  ;;  %v3353_v50 = vadd.f32 %v3351_v54, %v7395_v12  ;;  %v3368_v21 = vrot.slane %v7741_v6, 4 }
 0x6cb   :  { %v5175_v18 = vmul.f32 -1.442695, %v3343_v30  ;;  %v5176_v47 = vmul.f32 -1.442695, %v3353_v50 }
 0x6cc   :  { %v3336_v5 = vpop.f32.mrb[48].mxu1 }
 0x6cd   :  { %v6695_v2 = vpop.eup %6694  ;;  %6696 = vpow2.f32 %v5175_v18  ;;  %v5967_v25 = vpop.f32.mrb[49].mxu1  ;;  %v3337_v33 = vadd.f32 %v7459_v20, %v3336_v5 }
 0x6ce   :  { %6698 = vrcp.f32 %v3116_v40  ;;  %v3119_v48 = vmul.f32 %v6695_v2, %v3102_v11  ;;  %v7839_v2 = vld [vmem:[#allocation5] ss:$0 sm:$0xff] }
 0x6cf   :  { %v3361_v14 = vrot.slane %v3337_v33, 4 }
 0x6d0   :  { %v3120_v44 = vadd.f32 %v3119_v48, %v7388_v4  ;;  %v7842_v48 = vld [vmem:[#allocation5 + $0x1] ss:$0 sm:$0xff] }
 0x6d2   :  { %6700 = vtanh.f32 %v3120_v44 }
 0x6d3   :  { %6702 = vpow2.f32 %v5176_v47 }
 0x6d7   :  { %v6697_v55 = vpop.eup %6696 }
 0x6d8   :  { %v6699_v10 = vpop.eup %6698  ;;  %v3347_v45 = vadd.f32 1.0, %v6697_v55 }
 0x6d9   :  { %v3122_v58 = vsub.f32 1.0, %v6699_v10  ;;  %v3124_v36 = vmul.f32 %v6699_v10, %v7707_v23 }
 0x6da   :  { %6704 = vrcp.f32 %v3347_v45 }
 0x6dc   :  { %v6701_v13 = vpop.eup %6700 }
 0x6dd   :  { %v3123_v53 = vmul.f32 %v6701_v13, %v3122_v58  ;;  %v6703_v51 = vpop.eup %6702 }
 0x6de   :  { %v3357_v7 = vadd.f32 1.0, %v6703_v51 }
 0x6df   :  { %v3125_v28 = vadd.f32 %v3124_v36, %v3123_v53 }
 0x6e0   :  { %6706 = vrcp.f32 %v3357_v7 }
 0x6e1   :  { %v7782_v9 = vsel %vm2890_vm6, %v3125_v28, %v7707_v23 }
 0x6e2   :  { %5977 = vmatmul.mubr.msk.f32.vlgmr.msra.gmra.mrb[38].mxu0 %vm240_vm13, %v7782_v9  ;;  %5988 = vmatmul.mubr.msk.f32.vlgmr.msra.gmra.mrb[50].mxu1 %vm240_vm13, %v7782_v9 }
 0x6e3   :  { %6470 = vmatpush3.bf16.msra.mxu0 %v7218_v22  ;;  %5998 = vmatprep.mubr.msk.f32.mxu0 %vm6903_vm14, %v6901_v39 }
 0x6e4   :  { %v6705_v20 = vpop.eup %6704  ;;  %6471 = vmatprep.subr.bf16.mxu0 %v8105_v17  ;;  %6476 = vmatpush3.bf16.msra.mxu1 %v7309_v43 }
 0x6e5   :  { %v3363_v23 = vmul.f32 %v6705_v20, %v3361_v14  ;;  %6477 = vmatprep.subr.bf16.mxu1 %v8105_v17  ;;  %6009 = vmatprep.mubr.msk.f32.mxu1 %vm6903_vm14, %v6901_v39 }
 0x6e7   :  { %v3364_v59 = vadd.f32 %v3363_v23, %v7422_v56  ;;  %6473 = vmatpush3.bf16.msra.mxu0 %v7236_v26 }
 0x6e8   :  { %6480 = vmatprep.subr.bf16.mxu0 %v8105_v17  ;;  %6479 = vmatpush3.bf16.msra.mxu1 %v7326_v46 }
 0x6e9   :  { %6708 = vtanh.f32 %v3364_v59  ;;  %6486 = vmatprep.subr.bf16.mxu1 %v8105_v17  ;;  %v7847_v59 = vld [vmem:[#allocation5 + $0x3] ss:$0 sm:$0xff] }
 0x6ea   :  { %5999 = vmatmul.mubr.msk.f32.vlgmr.msra.gmra.mrb[40].mxu0 %vm240_vm13, %v7782_v9  ;;  %v6707_v1 = vpop.eup %6706 }
 0x6eb   :  { %6482 = vmatpush3.bf16.msra.mxu0 %v7260_v32  ;;  %6020 = vmatprep.mubr.msk.f32.mxu0 %vm6903_vm14, %v6901_v39  ;;  %v3366_v54 = vsub.f32 1.0, %v6707_v1  ;;  %v3370_v18 = vmul.f32 %v6707_v1, %v3368_v21 }
 0x6ec   :  { %6483 = vmatprep.subr.bf16.mxu0 %v8105_v17 }
 0x6ef   :  { %6485 = vmatpush3.bf16.msra.mxu0 %v7286_v38 }
 0x6f0   :  { %6492 = vmatprep.subr.bf16.mxu0 %v8105_v17 }
 0x6f3   :  { %v6709_v30 = vpop.eup %6708 }
 0x6f4   :  { %v3367_v40 = vmul.f32 %v6709_v30, %v3366_v54  ;;  %v7850_v54 = vld [vmem:[#allocation5 + $0x2] ss:$0 sm:$0xff]  ;;  %v7853_v30 = vld [vmem:[#allocation5 + $0x4] ss:$0 sm:$0xff] }
 0x6f6   :  { %v3371_v11 = vadd.f32 %v3370_v18, %v3367_v40 }
 0x6f8   :  { %v3373_v50 = vrot.slane %v3371_v11, 4 }
 0x6fa   :  { %v7813_v5 = vsel %vm2646_vm5, %v3373_v50, %v7741_v6 }
 0x6fb   :  { %6010 = vmatmul.mubr.msk.f32.vlgmr.msra.gmra.mrb[52].mxu1 %vm240_vm13, %v7813_v5  ;;  %6021 = vmatmul.mubr.msk.f32.vlgmr.msra.gmra.mrb[42].mxu0 %vm240_vm13, %v7813_v5 }
 0x6fc   :  { %6488 = vmatpush3.bf16.msra.mxu1 %v7342_v49  ;;  %6031 = vmatprep.mubr.msk.f32.mxu1 %vm6903_vm14, %v6901_v39 }
 0x6fd   :  { %6489 = vmatprep.subr.bf16.mxu1 %v8105_v17  ;;  %6494 = vmatpush3.bf16.msra.mxu0 %v7165_v8 }
 0x6fe   :  { %6495 = vmatprep.subr.bf16.mxu0 %v8105_v17  ;;  %6042 = vmatprep.mubr.msk.f32.mxu0 %vm6903_vm14, %v6901_v39 }
 0x700   :  { %6491 = vmatpush3.bf16.msra.mxu1 %v7356_v52 }
 0x701   :  { %6498 = vmatprep.subr.bf16.mxu1 %v8105_v17  ;;  %6497 = vmatpush3.bf16.msra.mxu0 %v7189_v15 }
 0x702   :  { %6504 = vmatprep.subr.bf16.mxu0 %v8105_v17 }
 0x703   :  { %6032 = vmatmul.mubr.msk.f32.vlgmr.msra.gmra.mrb[54].mxu1 %vm240_vm13, %v7813_v5 }
 0x704   :  { %6500 = vmatpush3.bf16.msra.mxu1 %v7258_v31  ;;  %6053 = vmatprep.mubr.msk.f32.mxu1 %vm6903_vm14, %v6901_v39 }
 0x705   :  { %6501 = vmatprep.subr.bf16.mxu1 %v8105_v17 }
 0x708   :  { %6503 = vmatpush3.bf16.msra.mxu1 %v7284_v37 }
 0x709   :  { %6510 = vmatprep.subr.bf16.mxu1 %v8105_v17 }
 0x7b5   :  { %v3445_v57 = vpop.f32.mrb[38].mxu0  ;;  %v3515_v6 = vpop.f32.mrb[50].mxu1 }
 0x7b6   :  { %v3446_v25 = vadd.f32 %v7839_v2, %v3445_v57  ;;  %v3516_v44 = vadd.f32 %v7842_v48, %v3515_v6  ;;  %v5978_v47 = vpop.f32.mrb[39].mxu0  ;;  %v5989_v55 = vpop.f32.mrb[51].mxu1 }
 0x7b8   :  { %v3590_v10 = vrot.slane %v3446_v25, 4  ;;  %v3600_v45 = vrot.slane %v3516_v44, 4 }
 0x7ba   :  { %v3592_v58 = vadd.f32 %v3590_v10, %v7385_v3  ;;  %v3602_v53 = vadd.f32 %v3600_v45, %v7402_v24 }
 0x7bc   :  { %v5180_v13 = vmul.f32 -1.442695, %v3592_v58  ;;  %v5181_v33 = vmul.f32 -1.442695, %v3602_v53 }
 0x7bd   :  { %v3585_v36 = vpop.f32.mrb[40].mxu0 }
 0x7be   :  { %6710 = vpow2.f32 %v5180_v13  ;;  %v6000_v51 = vpop.f32.mrb[41].mxu0  ;;  %v3586_v24 = vadd.f32 %v7850_v54, %v3585_v36 }
 0x7bf   :  { %6712 = vpow2.f32 %v5181_v33 }
 0x7c0   :  { %v3610_v57 = vrot.slane %v3586_v24, 4 }
 0x7c8   :  { %v6711_v28 = vpop.eup %6710 }
 0x7c9   :  { %v3596_v7 = vadd.f32 1.0, %v6711_v28  ;;  %v6713_v23 = vpop.eup %6712 }
 0x7ca   :  { %v3606_v11 = vadd.f32 1.0, %v6713_v23  ;;  %v7860_v23 = vld [vmem:[#allocation5 + $0x5] ss:$0 sm:$0xff] }
 0x7cb   :  { %6714 = vrcp.f32 %v3596_v7 }
 0x7ce   :  { %v3694_v14 = vpop.f32.mrb[52].mxu1  ;;  %v3764_v20 = vpop.f32.mrb[42].mxu0 }
 0x7cf   :  { %v3695_v1 = vadd.f32 %v7847_v59, %v3694_v14  ;;  %v6011_v21 = vpop.f32.mrb[53].mxu1  ;;  %v6022_v3 = vpop.f32.mrb[43].mxu0  ;;  %v3765_v40 = vadd.f32 %v7853_v30, %v3764_v20 }
 0x7d1   :  { %v3838_v18 = vadd.f32 %v3695_v1, %v7411_v34  ;;  %v3845_v6 = vadd.f32 %v3765_v40, %v7395_v12  ;;  %v3617_v34 = vrot.slane %v7782_v9, 4 }
 0x7d3   :  { %v5185_v50 = vmul.f32 -1.442695, %v3838_v18  ;;  %v5186_v45 = vmul.f32 -1.442695, %v3845_v6 }
 0x7d5   :  { %v6715_v25 = vpop.eup %6714  ;;  %6716 = vpow2.f32 %v5185_v50 }
 0x7d6   :  { %6718 = vrcp.f32 %v3606_v11  ;;  %v3612_v44 = vmul.f32 %v6715_v25, %v3610_v57  ;;  %v3834_v47 = vpop.f32.mrb[54].mxu1 }
 0x7d7   :  { %v6033_v55 = vpop.f32.mrb[55].mxu1 }
 0x7d8   :  { %v3613_v10 = vadd.f32 %v3612_v44, %v7388_v4  ;;  %v3835_v4 = vadd.f32 %v7860_v23, %v3834_v47 }
 0x7da   :  { %6720 = vtanh.f32 %v3613_v10 }
 0x7db   :  { %6722 = vpow2.f32 %v5186_v45 }
 0x7df   :  { %v6717_v58 = vpop.eup %6716 }
 0x7e0   :  { %v6719_v13 = vpop.eup %6718  ;;  %v3842_v53 = vadd.f32 1.0, %v6717_v58 }
 0x7e1   :  { %v3615_v36 = vsub.f32 1.0, %v6719_v13  ;;  %v3619_v33 = vmul.f32 %v6719_v13, %v3617_v34 }
 0x7e2   :  { %6724 = vrcp.f32 %v3842_v53 }
 0x7e4   :  { %v6721_v51 = vpop.eup %6720 }
 0x7e5   :  { %v3616_v12 = vmul.f32 %v6721_v51, %v3615_v36  ;;  %v6723_v28 = vpop.eup %6722 }
 0x7e6   :  { %v3849_v14 = vadd.f32 1.0, %v6723_v28 }
 0x7e7   :  { %v3620_v7 = vadd.f32 %v3619_v33, %v3616_v12 }
 0x7e8   :  { %6726 = vrcp.f32 %v3849_v14 }
 0x7e9   :  { %v3622_v20 = vrot.slane %v3620_v7, 4 }
 0x7eb   :  { %v7866_v1 = vsel %vm2391_vm4, %v3622_v20, %v7782_v9 }
 0x7ec   :  { %v6725_v21 = vpop.eup %6724  ;;  %6043 = vmatmul.mubr.msk.f32.vlgmr.msra.gmra.mrb[44].mxu0 %vm240_vm13, %v7866_v1  ;;  %6054 = vmatmul.mubr.msk.f32.vlgmr.msra.gmra.mrb[56].mxu1 %vm240_vm13, %v7866_v1 }
 0x7ed   :  { %v3852_v3 = vmul.f32 %v6725_v21, %v3835_v4  ;;  %6506 = vmatpush3.bf16.msra.mxu0 %v7218_v22  ;;  %6064 = vmatprep.mubr.msk.f32.mxu0 %vm6903_vm14, %v6901_v39 }
 0x7ee   :  { %6507 = vmatprep.subr.bf16.mxu0 %v8105_v17  ;;  %6512 = vmatpush3.bf16.msra.mxu1 %v7309_v43 }
 0x7ef   :  { %v3853_v42 = vadd.f32 %v3852_v3, %v7422_v56  ;;  %6513 = vmatprep.subr.bf16.mxu1 %v8105_v17  ;;  %6075 = vmatprep.mubr.msk.f32.mxu1 %vm6903_vm14, %v6901_v39 }
 0x7f1   :  { %6728 = vtanh.f32 %v3853_v42  ;;  %6509 = vmatpush3.bf16.msra.mxu0 %v7236_v26 }
 0x7f2   :  { %6516 = vmatprep.subr.bf16.mxu0 %v8105_v17  ;;  %6515 = vmatpush3.bf16.msra.mxu1 %v7326_v46  ;;  %v6727_v56 = vpop.eup %6726 }
 0x7f3   :  { %6522 = vmatprep.subr.bf16.mxu1 %v8105_v17  ;;  %v3855_v9 = vsub.f32 1.0, %v6727_v56  ;;  %v3857_v18 = vmul.f32 %v6727_v56, %v7813_v5 }
 0x7f4   :  { %6065 = vmatmul.mubr.msk.f32.vlgmr.msra.gmra.mrb[46].mxu0 %vm240_vm13, %v7866_v1 }
 0x7f5   :  { %6518 = vmatpush3.bf16.msra.mxu0 %v7260_v32  ;;  %6086 = vmatprep.mubr.msk.f32.mxu0 %vm6903_vm14, %v6901_v39 }
 0x7f6   :  { %6519 = vmatprep.subr.bf16.mxu0 %v8105_v17 }
 0x7f9   :  { %6521 = vmatpush3.bf16.msra.mxu0 %v7286_v38 }
 0x7fa   :  { %6528 = vmatprep.subr.bf16.mxu0 %v8105_v17 }
 0x7fb   :  { %v6729_v24 = vpop.eup %6728 }
 0x7fc   :  { %v3856_v40 = vmul.f32 %v6729_v24, %v3855_v9 }
 0x7fe   :  { %v3858_v11 = vadd.f32 %v3857_v18, %v3856_v40 }
 0x800   :  { %v7897_v50 = vsel %vm2139_vm3, %v3858_v11, %v7813_v5 }
 0x801   :  { %6076 = vmatmul.mubr.msk.f32.vlgmr.msra.gmra.mrb[58].mxu1 %vm240_vm13, %v7897_v50  ;;  %6087 = vmatmul.mubr.msk.f32.vlgmr.msra.gmra.mrb[48].mxu0 %vm240_vm13, %v7897_v50 }
 0x802   :  { %6524 = vmatpush3.bf16.msra.mxu1 %v7342_v49  ;;  %6097 = vmatprep.mubr.msk.f32.mxu1 %vm6903_vm14, %v6901_v39 }
 0x803   :  { %6525 = vmatprep.subr.bf16.mxu1 %v8105_v17  ;;  %6530 = vmatpush3.bf16.msra.mxu0 %v7165_v8 }
 0x804   :  { %6531 = vmatprep.subr.bf16.mxu0 %v8105_v17  ;;  %6108 = vmatprep.mubr.msk.f32.mxu0 %vm6903_vm14, %v6901_v39 }
 0x806   :  { %6527 = vmatpush3.bf16.msra.mxu1 %v7356_v52 }
 0x807   :  { %6534 = vmatprep.subr.bf16.mxu1 %v8105_v17  ;;  %6533 = vmatpush3.bf16.msra.mxu0 %v7189_v15 }
 0x808   :  { %6540 = vmatprep.subr.bf16.mxu0 %v8105_v17 }
 0x809   :  { %6098 = vmatmul.mubr.msk.f32.vlgmr.msra.gmra.mrb[60].mxu1 %vm240_vm13, %v7897_v50 }
 0x80a   :  { %6536 = vmatpush3.bf16.msra.mxu1 %v7258_v31  ;;  %6119 = vmatprep.mubr.msk.f32.mxu1 %vm6903_vm14, %v6901_v39 }
 0x80b   :  { %6537 = vmatprep.subr.bf16.mxu1 %v8105_v17 }
 0x80e   :  { %6539 = vmatpush3.bf16.msra.mxu1 %v7284_v37 }
 0x80f   :  { %6546 = vmatprep.subr.bf16.mxu1 %v8105_v17 }
 0x8bf   :  { %v3929_v8 = vpop.f32.mrb[44].mxu0  ;;  %v3999_v61 = vpop.f32.mrb[56].mxu1 }
 0x8c0   :  { %v3930_v15 = vadd.f32 %v7839_v2, %v3929_v8  ;;  %v6044_v5 = vpop.f32.mrb[45].mxu0  ;;  %v6055_v57 = vpop.f32.mrb[57].mxu1  ;;  %v4000_v6 = vadd.f32 %v7842_v48, %v3999_v61 }
 0x8c2   :  { %v4073_v25 = vadd.f32 %v3930_v15, %v7380_v63  ;;  %v4080_v44 = vadd.f32 %v4000_v6, %v7400_v19 }
 0x8c4   :  { %v5190_v31 = vmul.f32 -1.442695, %v4073_v25  ;;  %v5191_v10 = vmul.f32 -1.442695, %v4080_v44 }
 0x8c6   :  { %6730 = vpow2.f32 %v5190_v31 }
 0x8c7   :  { %v4069_v47 = vpop.f32.mrb[46].mxu0  ;;  %6732 = vpow2.f32 %v5191_v10 }
 0x8c8   :  { %v6066_v55 = vpop.f32.mrb[47].mxu0  ;;  %v4070_v4 = vadd.f32 %v7850_v54, %v4069_v47 }
 0x8d0   :  { %v6731_v37 = vpop.eup %6730 }
 0x8d1   :  { %v4077_v45 = vadd.f32 1.0, %v6731_v37  ;;  %v6733_v12 = vpop.eup %6732 }
 0x8d2   :  { %v4084_v14 = vadd.f32 1.0, %v6733_v12 }
 0x8d3   :  { %6734 = vrcp.f32 %v4077_v45 }
 0x8d4   :  { %v4164_v58 = vpop.f32.mrb[58].mxu1  ;;  %v4234_v13 = vpop.f32.mrb[48].mxu0 }
 0x8d5   :  { %v4165_v53 = vadd.f32 %v7847_v59, %v4164_v58  ;;  %v4235_v34 = vadd.f32 %v7853_v30, %v4234_v13  ;;  %v6077_v36 = vpop.f32.mrb[59].mxu1  ;;  %v6088_v51 = vpop.f32.mrb[49].mxu0 }
 0x8d7   :  { %v4309_v33 = vrot.slane %v4165_v53, 4  ;;  %v4319_v28 = vrot.slane %v4235_v34, 4 }
 0x8d9   :  { %v4311_v7 = vadd.f32 %v4309_v33, %v7414_v41  ;;  %v4321_v21 = vadd.f32 %v4319_v28, %v7398_v16 }
 0x8db   :  { %v5195_v20 = vmul.f32 -1.442695, %v4311_v7  ;;  %v5196_v40 = vmul.f32 -1.442695, %v4321_v21 }
 0x8dc   :  { %v4304_v3 = vpop.f32.mrb[60].mxu1 }
 0x8dd   :  { %v6735_v42 = vpop.eup %6734  ;;  %6736 = vpow2.f32 %v5195_v20  ;;  %v6099_v56 = vpop.f32.mrb[61].mxu1  ;;  %v4305_v25 = vadd.f32 %v7860_v23, %v4304_v3 }
 0x8de   :  { %6738 = vrcp.f32 %v4084_v14  ;;  %v4087_v9 = vmul.f32 %v6735_v42, %v4070_v4 }
 0x8df   :  { %v4329_v55 = vrot.slane %v4305_v25, 4 }
 0x8e0   :  { %v4088_v24 = vadd.f32 %v4087_v9, %v7383_v0 }
 0x8e2   :  { %6740 = vtanh.f32 %v4088_v24 }
 0x8e3   :  { %6742 = vpow2.f32 %v5196_v40 }
 0x8e7   :  { %v6737_v18 = vpop.eup %6736 }
 0x8e8   :  { %v6739_v11 = vpop.eup %6738  ;;  %v4315_v8 = vadd.f32 1.0, %v6737_v18 }
 0x8e9   :  { %v4090_v61 = vsub.f32 1.0, %v6739_v11  ;;  %v4092_v57 = vmul.f32 %v6739_v11, %v7866_v1 }
 0x8ea   :  { %6744 = vrcp.f32 %v4315_v8 }
 0x8ec   :  { %v6741_v15 = vpop.eup %6740 }
 0x8ed   :  { %v4091_v5 = vmul.f32 %v6741_v15, %v4090_v61  ;;  %v6743_v6 = vpop.eup %6742 }
 0x8ee   :  { %v4325_v44 = vadd.f32 1.0, %v6743_v6 }
 0x8ef   :  { %v4093_v31 = vadd.f32 %v4092_v57, %v4091_v5 }
 0x8f0   :  { %6746 = vrcp.f32 %v4325_v44 }
 0x8f1   :  { %v7938_v47 = vsel %vm1898_vm2, %v4093_v31, %v7866_v1 }
 0x8f2   :  { %6109 = vmatmul.mubr.msk.f32.vlgmr.msra.gmra.mrb[50].mxu0 %vm240_vm13, %v7938_v47  ;;  %6120 = vmatmul.mubr.msk.f32.vlgmr.msra.gmra.mrb[62].mxu1 %vm240_vm13, %v7938_v47 }
 0x8f3   :  { %6542 = vmatpush3.bf16.msra.mxu0 %v7218_v22  ;;  %6130 = vmatprep.mubr.msk.f32.mxu0 %vm6903_vm14, %v6901_v39 }
 0x8f4   :  { %v6745_v10 = vpop.eup %6744  ;;  %6543 = vmatprep.subr.bf16.mxu0 %v8105_v17  ;;  %6548 = vmatpush3.bf16.msra.mxu1 %v7309_v43 }
 0x8f5   :  { %v4331_v35 = vmul.f32 %v6745_v10, %v4329_v55  ;;  %6549 = vmatprep.subr.bf16.mxu1 %v8105_v17  ;;  %6141 = vmatprep.mubr.msk.f32.mxu1 %vm6903_vm14, %v6901_v39 }
 0x8f7   :  { %v4332_v1 = vadd.f32 %v4331_v35, %v7425_v62  ;;  %6545 = vmatpush3.bf16.msra.mxu0 %v7236_v26  ;;  %v4336_v26 = vrot.slane %v7897_v50, 4  ;;  %v4851_v35 = vld [vmem:[%s8098_s8 + $0x30] sm:$0xff] }
 0x8f8   :  { %6552 = vmatprep.subr.bf16.mxu0 %v8105_v17  ;;  %6551 = vmatpush3.bf16.msra.mxu1 %v7326_v46 }
 0x8f9   :  { %6748 = vtanh.f32 %v4332_v1  ;;  %6558 = vmatprep.subr.bf16.mxu1 %v8105_v17 }
 0x8fa   :  { %6131 = vmatmul.mubr.msk.f32.vlgmr.msra.gmra.mrb[52].mxu0 %vm240_vm13, %v7938_v47  ;;  %v6747_v22 = vpop.eup %6746 }
 0x8fb   :  { %6554 = vmatpush3.bf16.msra.mxu0 %v7260_v32  ;;  %6152 = vmatprep.mubr.msk.f32.mxu0 %vm6903_vm14, %v6901_v39  ;;  %v4334_v43 = vsub.f32 1.0, %v6747_v22  ;;  %v4338_v45 = vmul.f32 %v6747_v22, %v4336_v26  ;;  %v4585_v22 = vrot.slane %v7938_v47, 4 }
 0x8fc   :  { %6555 = vmatprep.subr.bf16.mxu0 %v8105_v17 }
 0x8ff   :  { %6557 = vmatpush3.bf16.msra.mxu0 %v7286_v38  ;;  %v4845_v38 = vld [vmem:[%s8098_s8] sm:$0xff] }
 0x900   :  { %6564 = vmatprep.subr.bf16.mxu0 %v8105_v17 }
 0x903   :  { %v6749_v46 = vpop.eup %6748 }
 0x904   :  { %v4335_v37 = vmul.f32 %v6749_v46, %v4334_v43 }
 0x906   :  { %v4339_v58 = vadd.f32 %v4338_v45, %v4335_v37  ;;  %v4853_v37 = vld [vmem:[%s8098_s8 + $0x40] sm:$0xff]  ;;  %v4854_v45 = vld [vmem:[%s8098_s8 + $0x48] sm:$0xff] }
 0x908   :  { %v4341_v13 = vrot.slane %v4339_v58, 4 }
 0x90a   :  { %v7969_v32 = vsel %vm1654_vm1, %v4341_v13, %v7897_v50  ;;  %v4848_v50 = vld [vmem:[%s8098_s8 + $0x18] sm:$0xff] }
 0x90b   :  { %6142 = vmatmul.mubr.msk.f32.vlgmr.msra.gmra.mrb[64].mxu1 %vm240_vm13, %v7969_v32  ;;  %6153 = vmatmul.mubr.msk.f32.vlgmr.msra.gmra.mrb[54].mxu0 %vm240_vm13, %v7969_v32 }
 0x90c   :  { %6560 = vmatpush3.bf16.msra.mxu1 %v7342_v49  ;;  %6163 = vmatprep.mubr.msk.f32.mxu1 %vm6903_vm14, %v6901_v39  ;;  %v4846_v49 = vld [vmem:[%s8098_s8 + $0x8] sm:$0xff] }
 0x90d   :  { %6561 = vmatprep.subr.bf16.mxu1 %v8105_v17  ;;  %6198 = vmatprep.mubr.msk.f32.mxu0 %vm6903_vm14, %v6901_v39  ;;  %v6565_v27 = vpack.c.bf16 %v4846_v49, %v4845_v38 }
 0x90f   :  { %6566 = vmatpush3.bf16.msra.mxu0 %v6565_v27  ;;  %v4855_v27 = vld [vmem:[%s8098_s8 + $0x50] sm:$0xff] }
 0x910   :  { %6563 = vmatpush3.bf16.msra.mxu1 %v7356_v52  ;;  %v4847_v52 = vld [vmem:[%s8098_s8 + $0x10] sm:$0xff]  ;;  %6567 = vmatprep.subr.bf16.mxu0 %v8105_v17 }
 0x911   :  { %6588 = vmatprep.subr.bf16.mxu1 %v8105_v17  ;;  %v6568_v53 = vpack.c.bf16 %v4848_v50, %v4847_v52  ;;  %v6577_v52 = vpack.c.bf16 %v4854_v45, %v4853_v37  ;;  %v4856_v50 = vld [vmem:[%s8098_s8 + $0x58] sm:$0xff] }
 0x913   :  { %6164 = vmatmul.mubr.msk.f32.vlgmr.msra.gmra.mrb[66].mxu1 %vm240_vm13, %v7969_v32  ;;  %6569 = vmatpush3.bf16.msra.mxu0 %v6568_v53 }
 0x914   :  { %6209 = vmatprep.mubr.msk.f32.mxu1 %vm6903_vm14, %v6901_v39  ;;  %6570 = vmatprep.subr.bf16.mxu0 %v8105_v17 }
 0x9c5   :  { %v4413_v39 = vpop.f32.mrb[50].mxu0  ;;  %v4483_v34 = vpop.f32.mrb[62].mxu1 }
 0x9c6   :  { %v4414_v36 = vadd.f32 %v7839_v2, %v4413_v39  ;;  %v4484_v51 = vadd.f32 %v7842_v48, %v4483_v34  ;;  %v6110_v12 = vpop.f32.mrb[51].mxu0  ;;  %v6121_v33 = vpop.f32.mrb[63].mxu1 }
 0x9c8   :  { %v4558_v28 = vrot.slane %v4414_v36, 4  ;;  %v4568_v7 = vrot.slane %v4484_v51, 4  ;;  %v6580_v51 = vpack.c.bf16 %v4856_v50, %v4855_v27 }
 0x9ca   :  { %v4560_v14 = vadd.f32 %v4558_v28, %v7380_v63  ;;  %v4570_v4 = vadd.f32 %v4568_v7, %v7400_v19  ;;  %v4857_v28 = vld [vmem:[%s8098_s8 + $0x60] sm:$0xff]  ;;  %v4858_v7 = vld [vmem:[%s8098_s8 + $0x68] sm:$0xff] }
 0x9cc   :  { %v5200_v20 = vmul.f32 -1.442695, %v4560_v14  ;;  %v5201_v42 = vmul.f32 -1.442695, %v4570_v4  ;;  %v4859_v14 = vld [vmem:[%s8098_s8 + $0x70] sm:$0xff] }
 0x9cd   :  { %v4553_v21 = vpop.f32.mrb[52].mxu0 }
 0x9ce   :  { %6750 = vpow2.f32 %v5200_v20  ;;  %v6132_v3 = vpop.f32.mrb[53].mxu0  ;;  %v4554_v63 = vadd.f32 %v7850_v54, %v4553_v21  ;;  %v4860_v20 = vld [vmem:[%s8098_s8 + $0x78] sm:$0xff] }
 0x9cf   :  { %6752 = vpow2.f32 %v5201_v42  ;;  %v6586_v4 = vpack.c.bf16 %v4860_v20, %v4859_v14  ;;  %v4940_v3 = vld [vmem:[%s8100_s10 + $0x8] sm:$0xff] }
 0x9d0   :  { %v4578_v5 = vrot.slane %v4554_v63, 4 }
 0x9d8   :  { %v6751_v56 = vpop.eup %6750 }
 0x9d9   :  { %v4564_v9 = vadd.f32 1.0, %v6751_v56  ;;  %v6753_v48 = vpop.eup %6752 }
 0x9da   :  { %v4574_v61 = vadd.f32 1.0, %v6753_v48 }
 0x9db   :  { %6754 = vrcp.f32 %v4564_v9 }
 0x9de   :  { %v4662_v2 = vpop.f32.mrb[64].mxu1  ;;  %v4732_v24 = vpop.f32.mrb[54].mxu0 }
 0x9df   :  { %v4663_v40 = vadd.f32 %v7847_v59, %v4662_v2  ;;  %v6143_v18 = vpop.f32.mrb[65].mxu1  ;;  %v6154_v11 = vpop.f32.mrb[55].mxu0  ;;  %v4733_v8 = vadd.f32 %v7853_v30, %v4732_v24 }
 0x9e1   :  { %v4806_v19 = vadd.f32 %v4663_v40, %v7414_v41  ;;  %v4813_v57 = vadd.f32 %v4733_v8, %v7398_v16  ;;  %v4849_v41 = vld [vmem:[%s8098_s8 + $0x20] sm:$0xff]  ;;  %v4850_v16 = vld [vmem:[%s8098_s8 + $0x28] sm:$0xff] }
 0x9e2   :  { %v6571_v1 = vpack.c.bf16 %v4850_v16, %v4849_v41 }
 0x9e3   :  { %v5205_v15 = vmul.f32 -1.442695, %v4806_v19  ;;  %v5206_v55 = vmul.f32 -1.442695, %v4813_v57 }
 0x9e4   :  { %6572 = vmatpush3.bf16.msra.mxu0 %v6571_v1 }
 0x9e5   :  { %v6755_v6 = vpop.eup %6754  ;;  %6756 = vpow2.f32 %v5205_v15  ;;  %6573 = vmatprep.subr.bf16.mxu0 %v8105_v17 }
 0x9e6   :  { %6758 = vrcp.f32 %v4574_v61  ;;  %v4580_v25 = vmul.f32 %v6755_v6, %v4578_v5  ;;  %v4802_v31 = vpop.f32.mrb[66].mxu1  ;;  %v5207_v5 = vld [vmem:[#allocation7] ss:$0 sm:$0xff] }
 0x9e7   :  { %v6165_v44 = vpop.f32.mrb[67].mxu1  ;;  %v4803_v34 = vadd.f32 %v7860_v23, %v4802_v31 }
 0x9e8   :  { %v4581_v59 = vadd.f32 %v4580_v25, %v7383_v0  ;;  %v4852_v0 = vld [vmem:[%s8098_s8 + $0x38] sm:$0xff]  ;;  %s6905_s8 = smov 32   ;;  %v5208_v44 = vld [vmem:[#allocation8] ss:$0 sm:$0xff] }
 0x9e9   :  { %v6574_v43 = vpack.c.bf16 %v4852_v0, %v4851_v35 }
 0x9ea   :  { %6760 = vtanh.f32 %v4581_v59 }
 0x9eb   :  { %6762 = vpow2.f32 %v5206_v55  ;;  %6575 = vmatpush3.bf16.msra.mxu0 %v6574_v43 }
 0x9ec   :  { %6576 = vmatprep.subr.bf16.mxu0 %v8105_v17 }
 0x9ef   :  { %v6757_v54 = vpop.eup %6756  ;;  %6578 = vmatpush3.bf16.msra.mxu0 %v6577_v52 }
 0x9f0   :  { %v6759_v30 = vpop.eup %6758  ;;  %v4810_v10 = vadd.f32 1.0, %v6757_v54  ;;  %6579 = vmatprep.subr.bf16.mxu0 %v8105_v17 }
 0x9f1   :  { %v4583_v26 = vsub.f32 1.0, %v6759_v30  ;;  %v4587_v13 = vmul.f32 %v6759_v30, %v4585_v22 }
 0x9f2   :  { %6764 = vrcp.f32 %v4810_v10 }
 0x9f3   :  { %6581 = vmatpush3.bf16.msra.mxu0 %v6580_v51 }
 0x9f4   :  { %v6761_v46 = vpop.eup %6760  ;;  %6582 = vmatprep.subr.bf16.mxu0 %v8105_v17 }
 0x9f5   :  { %v4584_v58 = vmul.f32 %v6761_v46, %v4583_v26  ;;  %v6763_v38 = vpop.eup %6762 }
 0x9f6   :  { %v4817_v53 = vadd.f32 1.0, %v6763_v38 }
 0x9f7   :  { %v4588_v49 = vadd.f32 %v4587_v13, %v4584_v58 }
 0x9f8   :  { %6766 = vrcp.f32 %v4817_v53 }
 0x9f9   :  { %v4590_v39 = vrot.slane %v4588_v49, 4 }
 0x9fb   :  { %v4592_v36 = vsel %vm1399_vm0, %v4590_v39, %v7938_v47  ;;  %v6583_v47 = vpack.c.bf16 %v4858_v7, %v4857_v28 }
 0x9fc   :  { %v6765_v12 = vpop.eup %6764  ;;  %v4833_v33 = vrot.slane %v4592_v36, 2 }
 0x9fd   :  { %v4820_v23 = vmul.f32 %v6765_v12, %v4803_v34  ;;  %6584 = vmatpush3.bf16.msra.mxu0 %v6583_v47 }
 0x9fe   :  { %4834 = vrot.lane.b32.xlu1 %v4833_v33, %s6904_s4  ;;  %6585 = vmatprep.subr.bf16.mxu0 %v8105_v17 }
 0x9ff   :  { %v4821_v60 = vadd.f32 %v4820_v23, %v7425_v62  ;;  %v4939_v62 = vld [vmem:[%s8100_s10] sm:$0xff] }
 0xa00   :  { %v6589_v56 = vpack.c.bf16 %v4940_v3, %v4939_v62 }
 0xa01   :  { %6768 = vtanh.f32 %v4821_v60  ;;  %6587 = vmatpush3.bf16.msra.mxu0 %v6586_v4 }
 0xa02   :  { %v6767_v21 = vpop.eup %6766  ;;  %6590 = vmatpush3.bf16.msra.mxu1 %v6589_v56 }
 0xa03   :  { %v4823_v42 = vsub.f32 1.0, %v6767_v21  ;;  %v4825_v24 = vmul.f32 %v6767_v21, %v7969_v32  ;;  %6591 = vmatprep.subr.bf16.mxu1 %v8105_v17  ;;  %v4942_v17 = vld [vmem:[%s8100_s10 + $0x18] sm:$0xff] }
 0xa0b   :  { %v6769_v9 = vpop.eup %6768 }
 0xa0c   :  { %v4824_v2 = vmul.f32 %v6769_v9, %v4823_v42 }
 0xa0e   :  { %v4826_v48 = vadd.f32 %v4825_v24, %v4824_v2 }
 0xa10   :  { %v4827_v40 = vsel %vm1108_vm15, %v4826_v48, %v7969_v32  ;;  %v6592_v32 = vpack.c.bf16 %v4942_v17, %v4941_v29 }
 0xa11   :  { %4829 = vrot.lane.b32.xlu0 %v4827_v40, %s6905_s8  ;;  %v4837_v18 = vrot.slane %v4827_v40, 2 }
 0xa12   :  { %6593 = vmatpush3.bf16.msra.mxu1 %v6592_v32 }
 0xa15   :  { %4838 = vrot.lane.b32.xlu0 %v4837_v18, %s6906_s25 }
 0xa70   :  { %v4835_v8 = vpop.permute.xlu1 %4834 }
 0xa83   :  { %v4830_v11 = vpop.permute.xlu0 %4829 }
 0xa84   :  { %v4841_v63 = vsel %vm240_vm13, %v4592_v36, %v4830_v11 }
 0xa85   :  { %v4842_v19 = vsel %vm131_vm8, %v4841_v63, %v4835_v8  ;;  %vm5023_vm8 = vcmask 17408  }
 0xa87   :  { %v4839_v61 = vpop.permute.xlu0 %4838 }
 0xa88   :  { %v4844_v15 = vsel %vm4843_vm7, %v4842_v19, %v4839_v61 }
 0xa89   :  { %6199 = vmatmul.mubr.f32.vlgmr.msra.gmra.mrb[56].mxu0 %v4844_v15 }
 0xb5c   :  { %v4934_v57 = vpop.f32.mrb[56].mxu0 }
 0xb5d   :  { %v4935_v6 = vadd.f32 %v5207_v5, %v4934_v57  ;;  %v6200_v25 = vpop.f32.mrb[57].mxu0 }
 0xb5f   :  { %v4938_v31 = vmax.f32 %v4935_v6, 0.0 }
 0xb61   :  { %6210 = vmatmul.mubr.msk.f32.vlgmr.msra.gmra.mrb[68].mxu1 %vm240_vm13, %v4938_v31 }
 0xc34   :  { %v5019_v59 = vpop.f32.mrb[68].mxu1 }
 0xc35   :  { %v5020_v55 = vadd.f32 %v5208_v44, %v5019_v59  ;;  %v6211_v54 = vpop.f32.mrb[69].mxu1 }
 0xc37   :  { %5024 = vst.msk [vmem:[#allocation10] sm:$0x3] %vm5023_vm8, %v5020_v55 }
 0xc38   :  { %6875 = shalt.err (!%p6872_p8)
}
 0xc39   :  { %s6876_s6 = scalar_lea.hbm %s8102_s12, 32 }
 0xc3a   :  { %p6877_p9 = scmp.ne.s32.totalorder %s8102_s12, %s6876_s6  ;;  %p6880_p10 = scmp.lt.u32.totalorder %s6876_s6, %s8102_s12 }
 0xc3c   :  { %p6882_p11 = pnand %p6880_p10, %p6877_p9 }
 0xc3e   :  { %6885 = shalt.err (!%p6882_p11)
}
 0xc3f   :  { %5034 = dma.vmem_to_hbm [thread:$0]  %s5032_s27, 32, %s8102_s12, [#allocation4]  }
 0xc40   :  { %6892 = dma.done.wait [#allocation4], 32  }
 0xc41   :  { %6893 = vsyncadd [#allocation4], 4294967264 }
 0xc42   :  { %5038 = vsyncpa [#allocation3], 1 }
 0xc43   :  { %5039 = vsyncpa [#allocation6], 1 }
 0xc44   :  { %5040 = vsyncpa [#allocation9], 1 }
 0xc45   :  { %5041 = vsyncpa [#allocation4], 1 }

</bundles_post_ra>
